<compile_context>
chip_gen: v7x
topology: tpu7x:2x2x1
jax: 0.10.0
libtpu: 0.0.40
codegen_flags: <defaults>
</compile_context>

<pallas_src>
import math

import jax
import jax.numpy as jnp
from jax.experimental import pallas as pl
from jax.experimental.pallas import tpu as pltpu

# ---------------- configuration (small, consistent with the module) ----------
B = 2            # batch
L = 8            # sequence length
LS = 8           # structure length (assumed == L; sequence mask reused)
SEQ_DIM = 24     # seq_hidden_dim
STRUCT_DIM = 16  # struct_hidden_dim
H = 32           # denoiser hidden_dim
NH = 4           # num_heads
HD = H // NH     # head dim
C = H // 2       # condition_dim
INTER = 4 * H    # FFN intermediate dim
NUM_LAYERS = 2
EPS = 1e-5

BL = B * L
OUT_PAD = 128                    # pad SEQ_DIM(24) -> 128 lanes for a dense store
NUM_LN = NUM_LAYERS * 3 + 1      # 3 conditional LNs per block + output norm

# ---- token slab row offsets (lane width = H = 32) ----------------------------
TOK_X = 0                        # (BL, SEQ_DIM)   noisy-embedding rows
TOK_S = TOK_X + BL               # (B*LS, STRUCT_DIM) structure rows
TOK_ADD = TOK_S + B * LS         # (BL, H)         seq_b + time_emb + cond_emb
TOK_MASK = TOK_ADD + BL          # (BL, LS)        additive key-mask, query-broadcast
TOK_CS = TOK_MASK + BL           # (NUM_LN*BL, H)  folded conditional-LN scales
TOK_CSH = TOK_CS + NUM_LN * BL   # (NUM_LN*BL, H)  folded conditional-LN shifts
TOK_ROWS = TOK_CSH + NUM_LN * BL

# ---- projection slab row offsets (lane width = 128) ---------------------------
PROJ_SEQ = 0                     # (SEQ_DIM, H)
PROJ_STRUCT = PROJ_SEQ + SEQ_DIM      # (STRUCT_DIM, H)   (24 -> multiple of 8)
PROJ_OUT = PROJ_STRUCT + STRUCT_DIM   # (H, OUT_PAD)      (40 -> multiple of 8)
PROJ_ROWS = PROJ_OUT + H

# ---- FFN slab per-layer row offsets (lane width = 128) ------------------------
FFN_GATE = 0
FFN_UP = H
FFN_DOWN = 2 * H
FFN_ROWS = 2 * H + INTER

# ---- bias slab rows (lane width = 128) -----------------------------------------
B_OUTPB = 0
B_STRUCTB = 1
B_LAYER = 2                      # + 5*layer: 0 sa_o, 1 ca_o, 2 gate, 3 up, 4 ffn_out
B_QB = B_LAYER + 5 * NUM_LAYERS  # + (layer*2 + t)*NH + head : scaled Q bias per head
BIAS_ROWS = 32                   # 2 + 5*NUM_LAYERS + 2*2*NH = 28, padded to 32


# ---------------- fused Pallas kernel ------------------------------------------
def fused_denoiser_kernel(tok_ref, qkv_w_ref, o_w_ref, ffn_w_ref, proj_w_ref,
                          bias_ref, y_ref, attnw_ref):
    """Whole StructureAwareDenoiser forward for the full batch, one invocation.

    tok_ref    : (TOK_ROWS, H)        packed per-token tensors (see offsets above)
    qkv_w_ref  : (NUM_LAYERS*6*NH, H, HD)  per-head q/k/v weights (q pre-scaled)
    o_w_ref    : (NUM_LAYERS*2*NH, HD, H)  per-head attention output weights
    ffn_w_ref  : (NUM_LAYERS, FFN_ROWS, 128) gate/up/down weights
    proj_w_ref : (PROJ_ROWS, 128)     seq/struct input proj + padded output proj
    bias_ref   : (BIAS_ROWS, 128)     all remaining bias rows
    """

    def bias_row(r, width=H):
        return bias_ref[r:r + 1, 0:width]                   # (1, width)

    def cond_ln(h, idx):
        # Single-pass stats; mean / inv-std folded into the precomputed
        # (FiLM x LN-affine) per-token scale/shift.
        m = jnp.mean(h, axis=-1, keepdims=True)
        msq = jnp.mean(h * h, axis=-1, keepdims=True)
        r = jax.lax.rsqrt(msq - m * m + EPS)
        sc = tok_ref[TOK_CS + idx * BL:TOK_CS + (idx + 1) * BL, :]
        sh = tok_ref[TOK_CSH + idx * BL:TOK_CSH + (idx + 1) * BL, :]
        a = sc * r
        return h * a + (sh - m * a)

    # additive key-mask bias, already broadcast over query rows: (B, L, LS)
    maskb = tok_ref[TOK_MASK:TOK_MASK + BL, 0:LS].reshape(B, L, LS)

    def attention(q_src, kv_src, layer, t, lk, save_layer=None):
        # q_src: (BL, H); kv_src: (B*lk, H); t = 0 self-attn, 1 cross-attn.
        # Per-head weights are pre-split (static leading index, no lane slicing);
        # scores / p@v are B-batched einsums; output projection accumulated per
        # head, so no lane-axis concatenate is needed.
        acc = None
        for hh in range(NH):
            wbase = (layer * 6 + 3 * t) * NH
            wq = qkv_w_ref[wbase + 0 * NH + hh]              # (H, HD), 1/sqrt(HD) folded
            wk = qkv_w_ref[wbase + 1 * NH + hh]              # (H, HD), k-bias dropped
            wv = qkv_w_ref[wbase + 2 * NH + hh]              # (H, HD), v-bias folded out
            bq = bias_ref[B_QB + (layer * 2 + t) * NH + hh:
                          B_QB + (layer * 2 + t) * NH + hh + 1, 0:HD]

            q = jnp.dot(q_src, wq, preferred_element_type=jnp.float32) + bq   # (BL, HD)
            k = jnp.dot(kv_src, wk, preferred_element_type=jnp.float32)       # (B*lk, HD)
            v = jnp.dot(kv_src, wv, preferred_element_type=jnp.float32)

            s = jnp.einsum('bqd,bkd->bqk', q.reshape(B, L, HD), k.reshape(B, lk, HD),
                           preferred_element_type=jnp.float32)                # (B, L, lk)
            s = s + maskb
            s = s - jnp.max(s, axis=-1, keepdims=True)       # keeps all-masked rows finite
            e = jnp.exp(s)
            prob = e * pl.reciprocal(jnp.sum(e, axis=-1, keepdims=True), approx=True)

            if save_layer is not None:
                attnw_ref[save_layer * NH + hh] = prob.astype(attnw_ref.dtype)

            o = jnp.einsum('bqk,bkd->bqd', prob, v.reshape(B, lk, HD),
                           preferred_element_type=jnp.float32).reshape(BL, HD)
            contrib = jnp.dot(o, o_w_ref[(layer * 2 + t) * NH + hh],
                              preferred_element_type=jnp.float32)             # (BL, H)
            acc = contrib if acc is None else acc + contrib
        return acc

    # --- input projections + (timestep + condition embedding + seq bias) add ---
    x_in = tok_ref[TOK_X:TOK_X + BL, 0:SEQ_DIM]
    s_in = tok_ref[TOK_S:TOK_S + B * LS, 0:STRUCT_DIM]
    add_rows = tok_ref[TOK_ADD:TOK_ADD + BL, :]

    x = jnp.dot(x_in, proj_w_ref[PROJ_SEQ:PROJ_SEQ + SEQ_DIM, 0:H],
                preferred_element_type=jnp.float32) + add_rows                 # (BL, H)
    struct = jnp.dot(s_in, proj_w_ref[PROJ_STRUCT:PROJ_STRUCT + STRUCT_DIM, 0:H],
                     preferred_element_type=jnp.float32) + bias_row(B_STRUCTB)  # (B*LS, H)

    for layer in range(NUM_LAYERS):
        # --- self-attention sub-block ---
        h = cond_ln(x, 3 * layer + 0)
        x = x + attention(h, h, layer, 0, L) + bias_row(B_LAYER + 5 * layer + 0)

        # --- cross-modal attention sub-block (keys/values = structure) ---
        h = cond_ln(x, 3 * layer + 1)
        x = x + attention(h, struct, layer, 1, LS, save_layer=layer) \
              + bias_row(B_LAYER + 5 * layer + 1)

        # --- gated feed-forward (SiLU gate, i.e. SwiGLU) ---
        h = cond_ln(x, 3 * layer + 2)
        g = jnp.dot(h, ffn_w_ref[layer, FFN_GATE:FFN_GATE + H, :],
                    preferred_element_type=jnp.float32) \
            + bias_row(B_LAYER + 5 * layer + 2, INTER)
        u = jnp.dot(h, ffn_w_ref[layer, FFN_UP:FFN_UP + H, :],
                    preferred_element_type=jnp.float32) \
            + bias_row(B_LAYER + 5 * layer + 3, INTER)
        ff = jnp.dot(g * jax.nn.sigmoid(g) * u,
                     ffn_w_ref[layer, FFN_DOWN:FFN_DOWN + INTER, 0:H],
                     preferred_element_type=jnp.float32) \
            + bias_row(B_LAYER + 5 * layer + 4)
        x = x + ff

    # --- output norm (conditional LN, zero-init modulation folded in) + proj ---
    h = cond_ln(x, 3 * NUM_LAYERS)
    y = jnp.dot(h, proj_w_ref[PROJ_OUT:PROJ_OUT + H, :],
                preferred_element_type=jnp.float32) + bias_row(B_OUTPB, OUT_PAD)
    y_ref[...] = y.astype(y_ref.dtype)


_VMEM = pl.BlockSpec(memory_space=pltpu.MemorySpace.VMEM)


def fused_denoiser_call(tok, qkv_w, o_w, ffn_w, proj_w, bias):
    return pl.pallas_call(
        fused_denoiser_kernel,
        out_shape=[jax.ShapeDtypeStruct((BL, OUT_PAD), jnp.float32),
                   jax.ShapeDtypeStruct((NUM_LAYERS * NH, B, L, LS), jnp.float32)],
        in_specs=[_VMEM] * 6,            # whole arrays VMEM-resident (no grid)
        out_specs=[_VMEM, _VMEM],
    )(tok, qkv_w, o_w, ffn_w, proj_w, bias)


# ---------------- parameters (module-natural shapes; packed in the wrapper) -----
def init_params(key):
    keys = iter(jax.random.split(key, 80))

    def w(shape, scale=0.02):
        return (scale * jax.random.normal(next(keys), shape)).astype(jnp.float32)

    def ones(shape):
        return jnp.ones(shape, jnp.float32)

    def zeros(shape):
        return jnp.zeros(shape, jnp.float32)

    p = {}
    p['seq_w'] = w((SEQ_DIM, H)); p['seq_b'] = w((H,), 0.01)
    p['struct_w'] = w((STRUCT_DIM, H)); p['struct_b'] = w((H,), 0.01)
    # AF3TimestepEmbedding MLP (sinusoidal -> Linear -> SiLU -> Linear)
    p['time_w1'] = w((H, H)); p['time_b1'] = zeros((H,))
    p['time_w2'] = w((H, H)); p['time_b2'] = zeros((H,))
    # AF3AdaptiveConditioning (embedding -> MLP -> (B, C) signal)
    p['acond_emb'] = w((3, H))
    p['acond_w1'] = w((H, C)); p['acond_b1'] = zeros((C,))
    p['acond_w2'] = w((C, C)); p['acond_b2'] = zeros((C,))
    # ConditionEmbedding (num_classes=3, dropout inert at eval)
    p['cond_emb'] = w((3, H))

    for pre in ('sa', 'ca'):
        for name in ('q', 'k', 'v', 'o'):
            p[f'{pre}_{name}_w'] = w((NUM_LAYERS, H, H))
            p[f'{pre}_{name}_b'] = w((NUM_LAYERS, H), 0.01)

    p['ln_g'] = ones((NUM_LAYERS, 3, H)); p['ln_b'] = zeros((NUM_LAYERS, 3, H))
    p['ln_sw'] = w((NUM_LAYERS, 3, C, H)); p['ln_sb'] = zeros((NUM_LAYERS, 3, H))
    p['ln_tw'] = w((NUM_LAYERS, 3, C, H)); p['ln_tb'] = zeros((NUM_LAYERS, 3, H))

    p['ff_gate_w'] = w((NUM_LAYERS, H, INTER)); p['ff_gate_b'] = w((NUM_LAYERS, INTER), 0.01)
    p['ff_up_w'] = w((NUM_LAYERS, H, INTER)); p['ff_up_b'] = w((NUM_LAYERS, INTER), 0.01)
    p['ff_down_w'] = w((NUM_LAYERS, INTER, H)); p['ff_down_b'] = w((NUM_LAYERS, H), 0.01)

    p['out_g'] = ones((H,)); p['out_b'] = zeros((H,))
    p['out_sw'] = w((C, H)); p['out_sb'] = zeros((H,))
    p['out_tw'] = w((C, H)); p['out_tb'] = zeros((H,))
    # note: real AF3ConditionalZeroInit zero-inits this weight; random here so
    # the synthetic test exercises the full path.
    p['out_pw'] = w((H, SEQ_DIM)); p['out_pb'] = w((SEQ_DIM,), 0.01)
    p['out_mw'] = w((C, H)); p['out_mb'] = zeros((H,))
    return p


# ---------------- plain-JAX glue (tiny O(B*H) per-batch work + packing) ----------
def timestep_embedding(t, dim):
    half = dim // 2
    freqs = jnp.exp(-math.log(10000.0) *
                    jnp.arange(half, dtype=jnp.float32) / float(half))
    args = t.astype(jnp.float32)[:, None] * freqs[None, :]
    return jnp.concatenate([jnp.sin(args), jnp.cos(args)], axis=-1)


def denoiser_forward(params, noisy_embeddings, timesteps, attention_mask,
                     structure_features, peptide_type):
    p = params
    inv_sqrt_hd = 1.0 / math.sqrt(HD)

    # --- timestep embedding MLP ---
    te = timestep_embedding(timesteps, H)
    te = te @ p['time_w1'] + p['time_b1']
    te = jax.nn.silu(te) @ p['time_w2'] + p['time_b2']              # (B, H)

    # --- conditions: _process_conditions_for_cfg semantics, use_cfg=False ---
    pt = jnp.clip(peptide_type, 0, 2)
    acond = p['acond_emb'][pt]
    cond = jax.nn.silu(acond @ p['acond_w1'] + p['acond_b1'])
    cond = cond @ p['acond_w2'] + p['acond_b2']                     # (B, C)
    cond_emb = p['cond_emb'][pt]                                    # (B, H)

    # per-token additive bias for the projected input (seq_b folded in)
    add_bias = p['seq_b'][None, :] + te + cond_emb                  # (B, H)
    add_rows = jnp.broadcast_to(add_bias[:, None, :], (B, L, H)).reshape(BL, H)

    # conditional-LN FiLM folded with the LN affine:
    #   (hn*g + b)*(1+scale) + shift == hn*[g*(1+scale)] + [b*(1+scale)+shift]
    # TODO(synk): verify FiLM-vs-affine order against AF3EnhancedConditionalLayerNorm.
    scale = jnp.einsum('bc,lich->libh', cond, p['ln_sw']) + p['ln_sb'][:, :, None, :]
    shift = jnp.einsum('bc,lich->libh', cond, p['ln_tw']) + p['ln_tb'][:, :, None, :]
    cscale = (p['ln_g'][:, :, None, :] * (1.0 + scale)).reshape(NUM_LAYERS * 3, B, H)
    cshift = (p['ln_b'][:, :, None, :] * (1.0 + scale) + shift).reshape(NUM_LAYERS * 3, B, H)

    # final LN + AF3ConditionalZeroInit modulation folded into the last scale/shift
    oscale = cond @ p['out_sw'] + p['out_sb']
    oshift = cond @ p['out_tw'] + p['out_tb']
    out_mod = 1.0 + cond @ p['out_mw'] + p['out_mb']                # (B, H)
    last_scale = (p['out_g'] * (1.0 + oscale)) * out_mod
    last_shift = (p['out_b'] * (1.0 + oscale) + oshift) * out_mod
    cscale = jnp.concatenate([cscale, last_scale[None]], axis=0)    # (NUM_LN, B, H)
    cshift = jnp.concatenate([cshift, last_shift[None]], axis=0)
    cscale = jnp.broadcast_to(cscale[:, :, None, :], (NUM_LN, B, L, H)).reshape(NUM_LN * BL, H)
    cshift = jnp.broadcast_to(cshift[:, :, None, :], (NUM_LN, B, L, H)).reshape(NUM_LN * BL, H)

    # additive key-mask bias, pre-broadcast over query rows
    mb = (attention_mask.astype(jnp.float32) - 1.0) * 1e9           # (B, L) over keys
    mask_rows = jnp.broadcast_to(mb[:, None, :], (B, L, L)).reshape(BL, L)

    # --- token slab (rows x 32 lanes) ---
    def padlane(a, width):
        return jnp.pad(a, ((0, 0), (0, width - a.shape[-1])))

    x_flat = noisy_embeddings.reshape(BL, SEQ_DIM)
    s_flat = structure_features.reshape(B * LS, STRUCT_DIM)
    tok = jnp.concatenate([padlane(x_flat, H), padlane(s_flat, H), add_rows,
                           padlane(mask_rows, H), cscale, cshift], axis=0)
    assert tok.shape == (TOK_ROWS, H)

    # --- per-head attention weights (Q pre-scaled by 1/sqrt(HD)) ---
    def heads_cols(wm):   # (LAYERS, H, H) -> (LAYERS, NH, H, HD): per-head column blocks
        return wm.reshape(NUM_LAYERS, H, NH, HD).transpose(0, 2, 1, 3)

    def heads_rows(wm):   # (LAYERS, H, H) -> (LAYERS, NH, HD, H): per-head row blocks
        return wm.reshape(NUM_LAYERS, NH, HD, H)

    attn_qkv_w = jnp.stack([
        heads_cols(p['sa_q_w'] * inv_sqrt_hd), heads_cols(p['sa_k_w']), heads_cols(p['sa_v_w']),
        heads_cols(p['ca_q_w'] * inv_sqrt_hd), heads_cols(p['ca_k_w']), heads_cols(p['ca_v_w'])],
        axis=1).reshape(NUM_LAYERS * 6 * NH, H, HD)
    attn_o_w = jnp.stack([heads_rows(p['sa_o_w']), heads_rows(p['ca_o_w'])],
                         axis=1).reshape(NUM_LAYERS * 2 * NH, HD, H)

    # --- FFN weight slab ---
    ffn_w = jnp.concatenate(
        [p['ff_gate_w'], p['ff_up_w'],
         jnp.pad(p['ff_down_w'], ((0, 0), (0, 0), (0, INTER - H)))], axis=1)
    assert ffn_w.shape == (NUM_LAYERS, FFN_ROWS, 128)

    # --- input/output projection slab (output proj padded to 128 lanes) ---
    proj_w = jnp.concatenate([
        jnp.pad(p['seq_w'], ((0, 0), (0, OUT_PAD - H))),
        jnp.pad(p['struct_w'], ((0, 0), (0, OUT_PAD - H))),
        jnp.pad(p['out_pw'], ((0, 0), (0, OUT_PAD - SEQ_DIM)))], axis=0)
    assert proj_w.shape == (PROJ_ROWS, OUT_PAD)

    # --- bias slab: K biases dropped (constant per softmax row, exact);
    #     V biases folded into the attention output bias (softmax rows sum to 1).
    sa_o_b_eff = p['sa_o_b'] + jnp.einsum('lh,lhk->lk', p['sa_v_b'], p['sa_o_w'])
    ca_o_b_eff = p['ca_o_b'] + jnp.einsum('lh,lhk->lk', p['ca_v_b'], p['ca_o_w'])

    def brow(v):
        return jnp.pad(v[None, :], ((0, 0), (0, OUT_PAD - v.shape[0])))

    rows = [brow(p['out_pb']), brow(p['struct_b'])]
    for layer in range(NUM_LAYERS):
        rows += [brow(sa_o_b_eff[layer]), brow(ca_o_b_eff[layer]),
                 brow(p['ff_gate_b'][layer]), brow(p['ff_up_b'][layer]),
                 brow(p['ff_down_b'][layer])]
    for layer in range(NUM_LAYERS):
        for qb in (p['sa_q_b'], p['ca_q_b']):
            for hh in range(NH):
                rows.append(brow(qb[layer, hh * HD:(hh + 1) * HD] * inv_sqrt_hd))
    rows.append(jnp.zeros((BIAS_ROWS - len(rows), OUT_PAD), jnp.float32))
    bias = jnp.concatenate(rows, axis=0)
    assert bias.shape == (BIAS_ROWS, OUT_PAD)

    y_pad, attnw = fused_denoiser_call(tok, attn_qkv_w, attn_o_w, ffn_w, proj_w, bias)

    denoised = y_pad[:, :SEQ_DIM].reshape(B, L, SEQ_DIM)
    cross_attention_weights = attnw.reshape(NUM_LAYERS, NH, B, L, LS).transpose(2, 0, 1, 3, 4)
    return denoised, cross_attention_weights                        # (B, layers, NH, L, LS)


# ---------------- main -----------------------------------------------------------
if __name__ == "__main__":
    key = jax.random.PRNGKey(0)
    kp, k1, k2 = jax.random.split(key, 3)
    params = init_params(kp)

    noisy_embeddings = jax.random.normal(k1, (B, L, SEQ_DIM), jnp.float32)
    structure_features = jax.random.normal(k2, (B, LS, STRUCT_DIM), jnp.float32)
    timesteps = jnp.array([10, 500], dtype=jnp.int32)
    attention_mask = jnp.ones((B, L), jnp.float32).at[1, -2:].set(0.0)
    peptide_type = jnp.array([0, 2], dtype=jnp.int32)

    fwd = jax.jit(denoiser_forward)
    denoised, cross_attn = fwd(params, noisy_embeddings, timesteps,
                               attention_mask, structure_features, peptide_type)
    jax.block_until_ready((denoised, cross_attn))

    assert denoised.shape == (B, L, SEQ_DIM)
    assert cross_attn.shape == (B, NUM_LAYERS, NH, L, LS)
    assert bool(jnp.all(jnp.isfinite(denoised)))
    assert bool(jnp.all(jnp.isfinite(cross_attn)))
    print("KERNEL_OK")
</pallas_src>

<mosaic_0001>
module attributes {stable_mosaic.version = 11 : i64} {
  func.func @fused_denoiser_kernel(%arg0: memref<288x32xf32, #tpu.memory_space<vmem>>, %arg1: memref<48x32x8xf32, #tpu.memory_space<vmem>>, %arg2: memref<16x8x32xf32, #tpu.memory_space<vmem>>, %arg3: memref<2x192x128xf32, #tpu.memory_space<vmem>>, %arg4: memref<72x128xf32, #tpu.memory_space<vmem>>, %arg5: memref<32x128xf32, #tpu.memory_space<vmem>>, %arg6: memref<16x128xf32, #tpu.memory_space<vmem>>, %arg7: memref<8x2x8x8xf32, #tpu.memory_space<vmem>>) attributes {dimension_semantics = [], scalar_prefetch = 0 : i64, scratch_operands = 0 : i64, tpu.core_type = #tpu.core_type<tc>} {
    %c48 = arith.constant 48 : index
    %c0 = arith.constant 0 : index
    %0 = vector.load %arg0[%c48, %c0] : memref<288x32xf32, #tpu.memory_space<vmem>>, vector<16x8xf32>
    %1 = vector.shape_cast %0 : vector<16x8xf32> to vector<2x8x8xf32>
    %c0_0 = arith.constant 0 : index
    %c0_1 = arith.constant 0 : index
    %2 = vector.load %arg0[%c0_0, %c0_1] : memref<288x32xf32, #tpu.memory_space<vmem>>, vector<16x24xf32>
    %c16 = arith.constant 16 : index
    %c0_2 = arith.constant 0 : index
    %3 = vector.load %arg0[%c16, %c0_2] : memref<288x32xf32, #tpu.memory_space<vmem>>, vector<16x16xf32>
    %c32 = arith.constant 32 : index
    %c0_3 = arith.constant 0 : index
    %4 = vector.load %arg0[%c32, %c0_3] : memref<288x32xf32, #tpu.memory_space<vmem>>, vector<16x32xf32>
    %c0_4 = arith.constant 0 : index
    %c0_5 = arith.constant 0 : index
    %5 = vector.load %arg4[%c0_4, %c0_5] : memref<72x128xf32, #tpu.memory_space<vmem>>, vector<24x32xf32>
    %cst = arith.constant dense<0.000000e+00> : vector<16x32xf32>
    %6 = tpu.matmul %2, %5, %cst {dimension_numbers = #tpu.dot_dimension_numbers<[1], [0], [0], [1], [0, 0, 1, 1], [], []>} : vector<16x24xf32>, vector<24x32xf32>, vector<16x32xf32> -> vector<16x32xf32>
    %7 = arith.addf %6, %4 : vector<16x32xf32>
    %c24 = arith.constant 24 : index
    %c0_6 = arith.constant 0 : index
    %8 = vector.load %arg4[%c24, %c0_6] : memref<72x128xf32, #tpu.memory_space<vmem>>, vector<16x32xf32>
    %cst_7 = arith.constant dense<0.000000e+00> : vector<16x32xf32>
    %9 = tpu.matmul %3, %8, %cst_7 {dimension_numbers = #tpu.dot_dimension_numbers<[1], [0], [0], [1], [0, 0, 1, 1], [], []>} : vector<16x16xf32>, vector<16x32xf32>, vector<16x32xf32> -> vector<16x32xf32>
    %c1 = arith.constant 1 : index
    %c0_8 = arith.constant 0 : index
    %10 = vector.load %arg5[%c1, %c0_8] : memref<32x128xf32, #tpu.memory_space<vmem>>, vector<1x32xf32>
    %11 = vector.broadcast %10 : vector<1x32xf32> to vector<16x32xf32>
    %12 = arith.addf %9, %11 : vector<16x32xf32>
    %cst_9 = arith.constant dense<0.000000e+00> : vector<16xf32>
    %13 = vector.multi_reduction <add>, %7, %cst_9 [1] : vector<16x32xf32> to vector<16xf32>
    %14 = vector.shape_cast %13 : vector<16xf32> to vector<16x1xf32>
    %cst_10 = arith.constant 3.200000e+01 : f32
    %15 = vector.broadcast %cst_10 : f32 to vector<16x1xf32>
    %16 = arith.divf %14, %15 : vector<16x1xf32>
    %17 = arith.mulf %7, %7 : vector<16x32xf32>
    %cst_11 = arith.constant dense<0.000000e+00> : vector<16xf32>
    %18 = vector.multi_reduction <add>, %17, %cst_11 [1] : vector<16x32xf32> to vector<16xf32>
    %19 = vector.shape_cast %18 : vector<16xf32> to vector<16x1xf32>
    %cst_12 = arith.constant 3.200000e+01 : f32
    %20 = vector.broadcast %cst_12 : f32 to vector<16x1xf32>
    %21 = arith.divf %19, %20 : vector<16x1xf32>
    %22 = arith.mulf %16, %16 : vector<16x1xf32>
    %23 = arith.subf %21, %22 : vector<16x1xf32>
    %cst_13 = arith.constant 9.99999974E-6 : f32
    %24 = vector.broadcast %cst_13 : f32 to vector<16x1xf32>
    %25 = arith.addf %23, %24 : vector<16x1xf32>
    %26 = math.rsqrt %25 : vector<16x1xf32>
    %c64 = arith.constant 64 : index
    %c0_14 = arith.constant 0 : index
    %27 = vector.load %arg0[%c64, %c0_14] : memref<288x32xf32, #tpu.memory_space<vmem>>, vector<16x32xf32>
    %c176 = arith.constant 176 : index
    %c0_15 = arith.constant 0 : index
    %28 = vector.load %arg0[%c176, %c0_15] : memref<288x32xf32, #tpu.memory_space<vmem>>, vector<16x32xf32>
    %29 = vector.broadcast %26 : vector<16x1xf32> to vector<16x32xf32>
    %30 = arith.mulf %27, %29 : vector<16x32xf32>
    %31 = arith.mulf %7, %30 : vector<16x32xf32>
    %32 = vector.broadcast %16 : vector<16x1xf32> to vector<16x32xf32>
    %33 = arith.mulf %32, %30 : vector<16x32xf32>
    %34 = arith.subf %28, %33 : vector<16x32xf32>
    %35 = arith.addf %31, %34 : vector<16x32xf32>
    %c0_16 = arith.constant 0 : index
    %c0_17 = arith.constant 0 : index
    %c0_18 = arith.constant 0 : index
    %36 = vector.load %arg1[%c0_16, %c0_17, %c0_18] : memref<48x32x8xf32, #tpu.memory_space<vmem>>, vector<1x32x8xf32>
    %37 = vector.shape_cast %36 : vector<1x32x8xf32> to vector<32x8xf32>
    %c4 = arith.constant 4 : index
    %c0_19 = arith.constant 0 : index
    %c0_20 = arith.constant 0 : index
    %38 = vector.load %arg1[%c4, %c0_19, %c0_20] : memref<48x32x8xf32, #tpu.memory_space<vmem>>, vector<1x32x8xf32>
    %39 = vector.shape_cast %38 : vector<1x32x8xf32> to vector<32x8xf32>
    %c8 = arith.constant 8 : index
    %c0_21 = arith.constant 0 : index
    %c0_22 = arith.constant 0 : index
    %40 = vector.load %arg1[%c8, %c0_21, %c0_22] : memref<48x32x8xf32, #tpu.memory_space<vmem>>, vector<1x32x8xf32>
    %41 = vector.shape_cast %40 : vector<1x32x8xf32> to vector<32x8xf32>
    %c12 = arith.constant 12 : index
    %c0_23 = arith.constant 0 : index
    %42 = vector.load %arg5[%c12, %c0_23] : memref<32x128xf32, #tpu.memory_space<vmem>>, vector<1x8xf32>
    %cst_24 = arith.constant dense<0.000000e+00> : vector<16x8xf32>
    %43 = tpu.matmul %35, %37, %cst_24 {dimension_numbers = #tpu.dot_dimension_numbers<[1], [0], [0], [1], [0, 0, 1, 1], [], []>} : vector<16x32xf32>, vector<32x8xf32>, vector<16x8xf32> -> vector<16x8xf32>
    %44 = vector.broadcast %42 : vector<1x8xf32> to vector<16x8xf32>
    %45 = arith.addf %43, %44 : vector<16x8xf32>
    %cst_25 = arith.constant dense<0.000000e+00> : vector<16x8xf32>
    %46 = tpu.matmul %35, %39, %cst_25 {dimension_numbers = #tpu.dot_dimension_numbers<[1], [0], [0], [1], [0, 0, 1, 1], [], []>} : vector<16x32xf32>, vector<32x8xf32>, vector<16x8xf32> -> vector<16x8xf32>
    %cst_26 = arith.constant dense<0.000000e+00> : vector<16x8xf32>
    %47 = tpu.matmul %35, %41, %cst_26 {dimension_numbers = #tpu.dot_dimension_numbers<[1], [0], [0], [1], [0, 0, 1, 1], [], []>} : vector<16x32xf32>, vector<32x8xf32>, vector<16x8xf32> -> vector<16x8xf32>
    %48 = vector.shape_cast %45 : vector<16x8xf32> to vector<2x8x8xf32>
    %49 = vector.shape_cast %46 : vector<16x8xf32> to vector<2x8x8xf32>
    "tpu.trace_start"() <{level = 10 : i32, message = "bqd,bkd->bqk"}> : () -> ()
    %cst_27 = arith.constant dense<0.000000e+00> : vector<2x8x8xf32>
    %50 = tpu.matmul %48, %49, %cst_27 {dimension_numbers = #tpu.dot_dimension_numbers<[2], [2], [1], [1], [0, 0, 0, 1, 1, 1], [0], [0]>} : vector<2x8x8xf32>, vector<2x8x8xf32>, vector<2x8x8xf32> -> vector<2x8x8xf32>
    "tpu.trace_stop"() : () -> ()
    %51 = arith.addf %50, %1 : vector<2x8x8xf32>
    %cst_28 = arith.constant dense<0xFF800000> : vector<2x8xf32>
    %52 = vector.multi_reduction <maximumf>, %51, %cst_28 [2] : vector<2x8x8xf32> to vector<2x8xf32>
    %53 = vector.shape_cast %52 : vector<2x8xf32> to vector<2x8x1xf32>
    %54 = vector.broadcast %53 : vector<2x8x1xf32> to vector<2x8x8xf32>
    %55 = arith.subf %51, %54 : vector<2x8x8xf32>
    %56 = math.exp %55 : vector<2x8x8xf32>
    %cst_29 = arith.constant dense<0.000000e+00> : vector<2x8xf32>
    %57 = vector.multi_reduction <add>, %56, %cst_29 [2] : vector<2x8x8xf32> to vector<2x8xf32>
    %58 = vector.shape_cast %57 : vector<2x8xf32> to vector<2x8x1xf32>
    %59 = tpu.reciprocal %58 {approx = true} : vector<2x8x1xf32> -> vector<2x8x1xf32>
    %60 = vector.broadcast %59 : vector<2x8x1xf32> to vector<2x8x8xf32>
    %61 = arith.mulf %56, %60 : vector<2x8x8xf32>
    %62 = vector.shape_cast %47 : vector<16x8xf32> to vector<2x8x8xf32>
    "tpu.trace_start"() <{level = 10 : i32, message = "bqk,bkd->bqd"}> : () -> ()
    %cst_30 = arith.constant dense<0.000000e+00> : vector<2x8x8xf32>
    %63 = tpu.matmul %61, %62, %cst_30 {dimension_numbers = #tpu.dot_dimension_numbers<[2], [1], [1], [2], [0, 0, 0, 1, 1, 2], [0], [0]>} : vector<2x8x8xf32>, vector<2x8x8xf32>, vector<2x8x8xf32> -> vector<2x8x8xf32>
    "tpu.trace_stop"() : () -> ()
    %64 = vector.shape_cast %63 : vector<2x8x8xf32> to vector<16x8xf32>
    %c0_31 = arith.constant 0 : index
    %c0_32 = arith.constant 0 : index
    %c0_33 = arith.constant 0 : index
    %65 = vector.load %arg2[%c0_31, %c0_32, %c0_33] : memref<16x8x32xf32, #tpu.memory_space<vmem>>, vector<1x8x32xf32>
    %66 = vector.shape_cast %65 : vector<1x8x32xf32> to vector<8x32xf32>
    %cst_34 = arith.constant dense<0.000000e+00> : vector<16x32xf32>
    %67 = tpu.matmul %64, %66, %cst_34 {dimension_numbers = #tpu.dot_dimension_numbers<[1], [0], [0], [1], [0, 0, 1, 1], [], []>} : vector<16x8xf32>, vector<8x32xf32>, vector<16x32xf32> -> vector<16x32xf32>
    %c1_35 = arith.constant 1 : index
    %c0_36 = arith.constant 0 : index
    %c0_37 = arith.constant 0 : index
    %68 = vector.load %arg1[%c1_35, %c0_36, %c0_37] : memref<48x32x8xf32, #tpu.memory_space<vmem>>, vector<1x32x8xf32>
    %69 = vector.shape_cast %68 : vector<1x32x8xf32> to vector<32x8xf32>
    %c5 = arith.constant 5 : index
    %c0_38 = arith.constant 0 : index
    %c0_39 = arith.constant 0 : index
    %70 = vector.load %arg1[%c5, %c0_38, %c0_39] : memref<48x32x8xf32, #tpu.memory_space<vmem>>, vector<1x32x8xf32>
    %71 = vector.shape_cast %70 : vector<1x32x8xf32> to vector<32x8xf32>
    %c9 = arith.constant 9 : index
    %c0_40 = arith.constant 0 : index
    %c0_41 = arith.constant 0 : index
    %72 = vector.load %arg1[%c9, %c0_40, %c0_41] : memref<48x32x8xf32, #tpu.memory_space<vmem>>, vector<1x32x8xf32>
    %73 = vector.shape_cast %72 : vector<1x32x8xf32> to vector<32x8xf32>
    %c13 = arith.constant 13 : index
    %c0_42 = arith.constant 0 : index
    %74 = vector.load %arg5[%c13, %c0_42] : memref<32x128xf32, #tpu.memory_space<vmem>>, vector<1x8xf32>
    %cst_43 = arith.constant dense<0.000000e+00> : vector<16x8xf32>
    %75 = tpu.matmul %35, %69, %cst_43 {dimension_numbers = #tpu.dot_dimension_numbers<[1], [0], [0], [1], [0, 0, 1, 1], [], []>} : vector<16x32xf32>, vector<32x8xf32>, vector<16x8xf32> -> vector<16x8xf32>
    %76 = vector.broadcast %74 : vector<1x8xf32> to vector<16x8xf32>
    %77 = arith.addf %75, %76 : vector<16x8xf32>
    %cst_44 = arith.constant dense<0.000000e+00> : vector<16x8xf32>
    %78 = tpu.matmul %35, %71, %cst_44 {dimension_numbers = #tpu.dot_dimension_numbers<[1], [0], [0], [1], [0, 0, 1, 1], [], []>} : vector<16x32xf32>, vector<32x8xf32>, vector<16x8xf32> -> vector<16x8xf32>
    %cst_45 = arith.constant dense<0.000000e+00> : vector<16x8xf32>
    %79 = tpu.matmul %35, %73, %cst_45 {dimension_numbers = #tpu.dot_dimension_numbers<[1], [0], [0], [1], [0, 0, 1, 1], [], []>} : vector<16x32xf32>, vector<32x8xf32>, vector<16x8xf32> -> vector<16x8xf32>
    %80 = vector.shape_cast %77 : vector<16x8xf32> to vector<2x8x8xf32>
    %81 = vector.shape_cast %78 : vector<16x8xf32> to vector<2x8x8xf32>
    "tpu.trace_start"() <{level = 10 : i32, message = "bqd,bkd->bqk"}> : () -> ()
    %cst_46 = arith.constant dense<0.000000e+00> : vector<2x8x8xf32>
    %82 = tpu.matmul %80, %81, %cst_46 {dimension_numbers = #tpu.dot_dimension_numbers<[2], [2], [1], [1], [0, 0, 0, 1, 1, 1], [0], [0]>} : vector<2x8x8xf32>, vector<2x8x8xf32>, vector<2x8x8xf32> -> vector<2x8x8xf32>
    "tpu.trace_stop"() : () -> ()
    %83 = arith.addf %82, %1 : vector<2x8x8xf32>
    %cst_47 = arith.constant dense<0xFF800000> : vector<2x8xf32>
    %84 = vector.multi_reduction <maximumf>, %83, %cst_47 [2] : vector<2x8x8xf32> to vector<2x8xf32>
    %85 = vector.shape_cast %84 : vector<2x8xf32> to vector<2x8x1xf32>
    %86 = vector.broadcast %85 : vector<2x8x1xf32> to vector<2x8x8xf32>
    %87 = arith.subf %83, %86 : vector<2x8x8xf32>
    %88 = math.exp %87 : vector<2x8x8xf32>
    %cst_48 = arith.constant dense<0.000000e+00> : vector<2x8xf32>
    %89 = vector.multi_reduction <add>, %88, %cst_48 [2] : vector<2x8x8xf32> to vector<2x8xf32>
    %90 = vector.shape_cast %89 : vector<2x8xf32> to vector<2x8x1xf32>
    %91 = tpu.reciprocal %90 {approx = true} : vector<2x8x1xf32> -> vector<2x8x1xf32>
    %92 = vector.broadcast %91 : vector<2x8x1xf32> to vector<2x8x8xf32>
    %93 = arith.mulf %88, %92 : vector<2x8x8xf32>
    %94 = vector.shape_cast %79 : vector<16x8xf32> to vector<2x8x8xf32>
    "tpu.trace_start"() <{level = 10 : i32, message = "bqk,bkd->bqd"}> : () -> ()
    %cst_49 = arith.constant dense<0.000000e+00> : vector<2x8x8xf32>
    %95 = tpu.matmul %93, %94, %cst_49 {dimension_numbers = #tpu.dot_dimension_numbers<[2], [1], [1], [2], [0, 0, 0, 1, 1, 2], [0], [0]>} : vector<2x8x8xf32>, vector<2x8x8xf32>, vector<2x8x8xf32> -> vector<2x8x8xf32>
    "tpu.trace_stop"() : () -> ()
    %96 = vector.shape_cast %95 : vector<2x8x8xf32> to vector<16x8xf32>
    %c1_50 = arith.constant 1 : index
    %c0_51 = arith.constant 0 : index
    %c0_52 = arith.constant 0 : index
    %97 = vector.load %arg2[%c1_50, %c0_51, %c0_52] : memref<16x8x32xf32, #tpu.memory_space<vmem>>, vector<1x8x32xf32>
    %98 = vector.shape_cast %97 : vector<1x8x32xf32> to vector<8x32xf32>
    %cst_53 = arith.constant dense<0.000000e+00> : vector<16x32xf32>
    %99 = tpu.matmul %96, %98, %cst_53 {dimension_numbers = #tpu.dot_dimension_numbers<[1], [0], [0], [1], [0, 0, 1, 1], [], []>} : vector<16x8xf32>, vector<8x32xf32>, vector<16x32xf32> -> vector<16x32xf32>
    %100 = arith.addf %67, %99 : vector<16x32xf32>
    %c2 = arith.constant 2 : index
    %c0_54 = arith.constant 0 : index
    %c0_55 = arith.constant 0 : index
    %101 = vector.load %arg1[%c2, %c0_54, %c0_55] : memref<48x32x8xf32, #tpu.memory_space<vmem>>, vector<1x32x8xf32>
    %102 = vector.shape_cast %101 : vector<1x32x8xf32> to vector<32x8xf32>
    %c6 = arith.constant 6 : index
    %c0_56 = arith.constant 0 : index
    %c0_57 = arith.constant 0 : index
    %103 = vector.load %arg1[%c6, %c0_56, %c0_57] : memref<48x32x8xf32, #tpu.memory_space<vmem>>, vector<1x32x8xf32>
    %104 = vector.shape_cast %103 : vector<1x32x8xf32> to vector<32x8xf32>
    %c10 = arith.constant 10 : index
    %c0_58 = arith.constant 0 : index
    %c0_59 = arith.constant 0 : index
    %105 = vector.load %arg1[%c10, %c0_58, %c0_59] : memref<48x32x8xf32, #tpu.memory_space<vmem>>, vector<1x32x8xf32>
    %106 = vector.shape_cast %105 : vector<1x32x8xf32> to vector<32x8xf32>
    %c14 = arith.constant 14 : index
    %c0_60 = arith.constant 0 : index
    %107 = vector.load %arg5[%c14, %c0_60] : memref<32x128xf32, #tpu.memory_space<vmem>>, vector<1x8xf32>
    %cst_61 = arith.constant dense<0.000000e+00> : vector<16x8xf32>
    %108 = tpu.matmul %35, %102, %cst_61 {dimension_numbers = #tpu.dot_dimension_numbers<[1], [0], [0], [1], [0, 0, 1, 1], [], []>} : vector<16x32xf32>, vector<32x8xf32>, vector<16x8xf32> -> vector<16x8xf32>
    %109 = vector.broadcast %107 : vector<1x8xf32> to vector<16x8xf32>
    %110 = arith.addf %108, %109 : vector<16x8xf32>
    %cst_62 = arith.constant dense<0.000000e+00> : vector<16x8xf32>
    %111 = tpu.matmul %35, %104, %cst_62 {dimension_numbers = #tpu.dot_dimension_numbers<[1], [0], [0], [1], [0, 0, 1, 1], [], []>} : vector<16x32xf32>, vector<32x8xf32>, vector<16x8xf32> -> vector<16x8xf32>
    %cst_63 = arith.constant dense<0.000000e+00> : vector<16x8xf32>
    %112 = tpu.matmul %35, %106, %cst_63 {dimension_numbers = #tpu.dot_dimension_numbers<[1], [0], [0], [1], [0, 0, 1, 1], [], []>} : vector<16x32xf32>, vector<32x8xf32>, vector<16x8xf32> -> vector<16x8xf32>
    %113 = vector.shape_cast %110 : vector<16x8xf32> to vector<2x8x8xf32>
    %114 = vector.shape_cast %111 : vector<16x8xf32> to vector<2x8x8xf32>
    "tpu.trace_start"() <{level = 10 : i32, message = "bqd,bkd->bqk"}> : () -> ()
    %cst_64 = arith.constant dense<0.000000e+00> : vector<2x8x8xf32>
    %115 = tpu.matmul %113, %114, %cst_64 {dimension_numbers = #tpu.dot_dimension_numbers<[2], [2], [1], [1], [0, 0, 0, 1, 1, 1], [0], [0]>} : vector<2x8x8xf32>, vector<2x8x8xf32>, vector<2x8x8xf32> -> vector<2x8x8xf32>
    "tpu.trace_stop"() : () -> ()
    %116 = arith.addf %115, %1 : vector<2x8x8xf32>
    %cst_65 = arith.constant dense<0xFF800000> : vector<2x8xf32>
    %117 = vector.multi_reduction <maximumf>, %116, %cst_65 [2] : vector<2x8x8xf32> to vector<2x8xf32>
    %118 = vector.shape_cast %117 : vector<2x8xf32> to vector<2x8x1xf32>
    %119 = vector.broadcast %118 : vector<2x8x1xf32> to vector<2x8x8xf32>
    %120 = arith.subf %116, %119 : vector<2x8x8xf32>
    %121 = math.exp %120 : vector<2x8x8xf32>
    %cst_66 = arith.constant dense<0.000000e+00> : vector<2x8xf32>
    %122 = vector.multi_reduction <add>, %121, %cst_66 [2] : vector<2x8x8xf32> to vector<2x8xf32>
    %123 = vector.shape_cast %122 : vector<2x8xf32> to vector<2x8x1xf32>
    %124 = tpu.reciprocal %123 {approx = true} : vector<2x8x1xf32> -> vector<2x8x1xf32>
    %125 = vector.broadcast %124 : vector<2x8x1xf32> to vector<2x8x8xf32>
    %126 = arith.mulf %121, %125 : vector<2x8x8xf32>
    %127 = vector.shape_cast %112 : vector<16x8xf32> to vector<2x8x8xf32>
    "tpu.trace_start"() <{level = 10 : i32, message = "bqk,bkd->bqd"}> : () -> ()
    %cst_67 = arith.constant dense<0.000000e+00> : vector<2x8x8xf32>
    %128 = tpu.matmul %126, %127, %cst_67 {dimension_numbers = #tpu.dot_dimension_numbers<[2], [1], [1], [2], [0, 0, 0, 1, 1, 2], [0], [0]>} : vector<2x8x8xf32>, vector<2x8x8xf32>, vector<2x8x8xf32> -> vector<2x8x8xf32>
    "tpu.trace_stop"() : () -> ()
    %129 = vector.shape_cast %128 : vector<2x8x8xf32> to vector<16x8xf32>
    %c2_68 = arith.constant 2 : index
    %c0_69 = arith.constant 0 : index
    %c0_70 = arith.constant 0 : index
    %130 = vector.load %arg2[%c2_68, %c0_69, %c0_70] : memref<16x8x32xf32, #tpu.memory_space<vmem>>, vector<1x8x32xf32>
    %131 = vector.shape_cast %130 : vector<1x8x32xf32> to vector<8x32xf32>
    %cst_71 = arith.constant dense<0.000000e+00> : vector<16x32xf32>
    %132 = tpu.matmul %129, %131, %cst_71 {dimension_numbers = #tpu.dot_dimension_numbers<[1], [0], [0], [1], [0, 0, 1, 1], [], []>} : vector<16x8xf32>, vector<8x32xf32>, vector<16x32xf32> -> vector<16x32xf32>
    %133 = arith.addf %100, %132 : vector<16x32xf32>
    %c3 = arith.constant 3 : index
    %c0_72 = arith.constant 0 : index
    %c0_73 = arith.constant 0 : index
    %134 = vector.load %arg1[%c3, %c0_72, %c0_73] : memref<48x32x8xf32, #tpu.memory_space<vmem>>, vector<1x32x8xf32>
    %135 = vector.shape_cast %134 : vector<1x32x8xf32> to vector<32x8xf32>
    %c7 = arith.constant 7 : index
    %c0_74 = arith.constant 0 : index
    %c0_75 = arith.constant 0 : index
    %136 = vector.load %arg1[%c7, %c0_74, %c0_75] : memref<48x32x8xf32, #tpu.memory_space<vmem>>, vector<1x32x8xf32>
    %137 = vector.shape_cast %136 : vector<1x32x8xf32> to vector<32x8xf32>
    %c11 = arith.constant 11 : index
    %c0_76 = arith.constant 0 : index
    %c0_77 = arith.constant 0 : index
    %138 = vector.load %arg1[%c11, %c0_76, %c0_77] : memref<48x32x8xf32, #tpu.memory_space<vmem>>, vector<1x32x8xf32>
    %139 = vector.shape_cast %138 : vector<1x32x8xf32> to vector<32x8xf32>
    %c15 = arith.constant 15 : index
    %c0_78 = arith.constant 0 : index
    %140 = vector.load %arg5[%c15, %c0_78] : memref<32x128xf32, #tpu.memory_space<vmem>>, vector<1x8xf32>
    %cst_79 = arith.constant dense<0.000000e+00> : vector<16x8xf32>
    %141 = tpu.matmul %35, %135, %cst_79 {dimension_numbers = #tpu.dot_dimension_numbers<[1], [0], [0], [1], [0, 0, 1, 1], [], []>} : vector<16x32xf32>, vector<32x8xf32>, vector<16x8xf32> -> vector<16x8xf32>
    %142 = vector.broadcast %140 : vector<1x8xf32> to vector<16x8xf32>
    %143 = arith.addf %141, %142 : vector<16x8xf32>
    %cst_80 = arith.constant dense<0.000000e+00> : vector<16x8xf32>
    %144 = tpu.matmul %35, %137, %cst_80 {dimension_numbers = #tpu.dot_dimension_numbers<[1], [0], [0], [1], [0, 0, 1, 1], [], []>} : vector<16x32xf32>, vector<32x8xf32>, vector<16x8xf32> -> vector<16x8xf32>
    %cst_81 = arith.constant dense<0.000000e+00> : vector<16x8xf32>
    %145 = tpu.matmul %35, %139, %cst_81 {dimension_numbers = #tpu.dot_dimension_numbers<[1], [0], [0], [1], [0, 0, 1, 1], [], []>} : vector<16x32xf32>, vector<32x8xf32>, vector<16x8xf32> -> vector<16x8xf32>
    %146 = vector.shape_cast %143 : vector<16x8xf32> to vector<2x8x8xf32>
    %147 = vector.shape_cast %144 : vector<16x8xf32> to vector<2x8x8xf32>
    "tpu.trace_start"() <{level = 10 : i32, message = "bqd,bkd->bqk"}> : () -> ()
    %cst_82 = arith.constant dense<0.000000e+00> : vector<2x8x8xf32>
    %148 = tpu.matmul %146, %147, %cst_82 {dimension_numbers = #tpu.dot_dimension_numbers<[2], [2], [1], [1], [0, 0, 0, 1, 1, 1], [0], [0]>} : vector<2x8x8xf32>, vector<2x8x8xf32>, vector<2x8x8xf32> -> vector<2x8x8xf32>
    "tpu.trace_stop"() : () -> ()
    %149 = arith.addf %148, %1 : vector<2x8x8xf32>
    %cst_83 = arith.constant dense<0xFF800000> : vector<2x8xf32>
    %150 = vector.multi_reduction <maximumf>, %149, %cst_83 [2] : vector<2x8x8xf32> to vector<2x8xf32>
    %151 = vector.shape_cast %150 : vector<2x8xf32> to vector<2x8x1xf32>
    %152 = vector.broadcast %151 : vector<2x8x1xf32> to vector<2x8x8xf32>
    %153 = arith.subf %149, %152 : vector<2x8x8xf32>
    %154 = math.exp %153 : vector<2x8x8xf32>
    %cst_84 = arith.constant dense<0.000000e+00> : vector<2x8xf32>
    %155 = vector.multi_reduction <add>, %154, %cst_84 [2] : vector<2x8x8xf32> to vector<2x8xf32>
    %156 = vector.shape_cast %155 : vector<2x8xf32> to vector<2x8x1xf32>
    %157 = tpu.reciprocal %156 {approx = true} : vector<2x8x1xf32> -> vector<2x8x1xf32>
    %158 = vector.broadcast %157 : vector<2x8x1xf32> to vector<2x8x8xf32>
    %159 = arith.mulf %154, %158 : vector<2x8x8xf32>
    %160 = vector.shape_cast %145 : vector<16x8xf32> to vector<2x8x8xf32>
    "tpu.trace_start"() <{level = 10 : i32, message = "bqk,bkd->bqd"}> : () -> ()
    %cst_85 = arith.constant dense<0.000000e+00> : vector<2x8x8xf32>
    %161 = tpu.matmul %159, %160, %cst_85 {dimension_numbers = #tpu.dot_dimension_numbers<[2], [1], [1], [2], [0, 0, 0, 1, 1, 2], [0], [0]>} : vector<2x8x8xf32>, vector<2x8x8xf32>, vector<2x8x8xf32> -> vector<2x8x8xf32>
    "tpu.trace_stop"() : () -> ()
    %162 = vector.shape_cast %161 : vector<2x8x8xf32> to vector<16x8xf32>
    %c3_86 = arith.constant 3 : index
    %c0_87 = arith.constant 0 : index
    %c0_88 = arith.constant 0 : index
    %163 = vector.load %arg2[%c3_86, %c0_87, %c0_88] : memref<16x8x32xf32, #tpu.memory_space<vmem>>, vector<1x8x32xf32>
    %164 = vector.shape_cast %163 : vector<1x8x32xf32> to vector<8x32xf32>
    %cst_89 = arith.constant dense<0.000000e+00> : vector<16x32xf32>
    %165 = tpu.matmul %162, %164, %cst_89 {dimension_numbers = #tpu.dot_dimension_numbers<[1], [0], [0], [1], [0, 0, 1, 1], [], []>} : vector<16x8xf32>, vector<8x32xf32>, vector<16x32xf32> -> vector<16x32xf32>
    %166 = arith.addf %133, %165 : vector<16x32xf32>
    %167 = arith.addf %7, %166 : vector<16x32xf32>
    %c2_90 = arith.constant 2 : index
    %c0_91 = arith.constant 0 : index
    %168 = vector.load %arg5[%c2_90, %c0_91] : memref<32x128xf32, #tpu.memory_space<vmem>>, vector<1x32xf32>
    %169 = vector.broadcast %168 : vector<1x32xf32> to vector<16x32xf32>
    %170 = arith.addf %167, %169 : vector<16x32xf32>
    %cst_92 = arith.constant dense<0.000000e+00> : vector<16xf32>
    %171 = vector.multi_reduction <add>, %170, %cst_92 [1] : vector<16x32xf32> to vector<16xf32>
    %172 = vector.shape_cast %171 : vector<16xf32> to vector<16x1xf32>
    %cst_93 = arith.constant 3.200000e+01 : f32
    %173 = vector.broadcast %cst_93 : f32 to vector<16x1xf32>
    %174 = arith.divf %172, %173 : vector<16x1xf32>
    %175 = arith.mulf %170, %170 : vector<16x32xf32>
    %cst_94 = arith.constant dense<0.000000e+00> : vector<16xf32>
    %176 = vector.multi_reduction <add>, %175, %cst_94 [1] : vector<16x32xf32> to vector<16xf32>
    %177 = vector.shape_cast %176 : vector<16xf32> to vector<16x1xf32>
    %cst_95 = arith.constant 3.200000e+01 : f32
    %178 = vector.broadcast %cst_95 : f32 to vector<16x1xf32>
    %179 = arith.divf %177, %178 : vector<16x1xf32>
    %180 = arith.mulf %174, %174 : vector<16x1xf32>
    %181 = arith.subf %179, %180 : vector<16x1xf32>
    %cst_96 = arith.constant 9.99999974E-6 : f32
    %182 = vector.broadcast %cst_96 : f32 to vector<16x1xf32>
    %183 = arith.addf %181, %182 : vector<16x1xf32>
    %184 = math.rsqrt %183 : vector<16x1xf32>
    %c80 = arith.constant 80 : index
    %c0_97 = arith.constant 0 : index
    %185 = vector.load %arg0[%c80, %c0_97] : memref<288x32xf32, #tpu.memory_space<vmem>>, vector<16x32xf32>
    %c192 = arith.constant 192 : index
    %c0_98 = arith.constant 0 : index
    %186 = vector.load %arg0[%c192, %c0_98] : memref<288x32xf32, #tpu.memory_space<vmem>>, vector<16x32xf32>
    %187 = vector.broadcast %184 : vector<16x1xf32> to vector<16x32xf32>
    %188 = arith.mulf %185, %187 : vector<16x32xf32>
    %189 = arith.mulf %170, %188 : vector<16x32xf32>
    %190 = vector.broadcast %174 : vector<16x1xf32> to vector<16x32xf32>
    %191 = arith.mulf %190, %188 : vector<16x32xf32>
    %192 = arith.subf %186, %191 : vector<16x32xf32>
    %193 = arith.addf %189, %192 : vector<16x32xf32>
    %c12_99 = arith.constant 12 : index
    %c0_100 = arith.constant 0 : index
    %c0_101 = arith.constant 0 : index
    %194 = vector.load %arg1[%c12_99, %c0_100, %c0_101] : memref<48x32x8xf32, #tpu.memory_space<vmem>>, vector<1x32x8xf32>
    %195 = vector.shape_cast %194 : vector<1x32x8xf32> to vector<32x8xf32>
    %c16_102 = arith.constant 16 : index
    %c0_103 = arith.constant 0 : index
    %c0_104 = arith.constant 0 : index
    %196 = vector.load %arg1[%c16_102, %c0_103, %c0_104] : memref<48x32x8xf32, #tpu.memory_space<vmem>>, vector<1x32x8xf32>
    %197 = vector.shape_cast %196 : vector<1x32x8xf32> to vector<32x8xf32>
    %c20 = arith.constant 20 : index
    %c0_105 = arith.constant 0 : index
    %c0_106 = arith.constant 0 : index
    %198 = vector.load %arg1[%c20, %c0_105, %c0_106] : memref<48x32x8xf32, #tpu.memory_space<vmem>>, vector<1x32x8xf32>
    %199 = vector.shape_cast %198 : vector<1x32x8xf32> to vector<32x8xf32>
    %c16_107 = arith.constant 16 : index
    %c0_108 = arith.constant 0 : index
    %200 = vector.load %arg5[%c16_107, %c0_108] : memref<32x128xf32, #tpu.memory_space<vmem>>, vector<1x8xf32>
    %cst_109 = arith.constant dense<0.000000e+00> : vector<16x8xf32>
    %201 = tpu.matmul %193, %195, %cst_109 {dimension_numbers = #tpu.dot_dimension_numbers<[1], [0], [0], [1], [0, 0, 1, 1], [], []>} : vector<16x32xf32>, vector<32x8xf32>, vector<16x8xf32> -> vector<16x8xf32>
    %202 = vector.broadcast %200 : vector<1x8xf32> to vector<16x8xf32>
    %203 = arith.addf %201, %202 : vector<16x8xf32>
    %cst_110 = arith.constant dense<0.000000e+00> : vector<16x8xf32>
    %204 = tpu.matmul %12, %197, %cst_110 {dimension_numbers = #tpu.dot_dimension_numbers<[1], [0], [0], [1], [0, 0, 1, 1], [], []>} : vector<16x32xf32>, vector<32x8xf32>, vector<16x8xf32> -> vector<16x8xf32>
    %cst_111 = arith.constant dense<0.000000e+00> : vector<16x8xf32>
    %205 = tpu.matmul %12, %199, %cst_111 {dimension_numbers = #tpu.dot_dimension_numbers<[1], [0], [0], [1], [0, 0, 1, 1], [], []>} : vector<16x32xf32>, vector<32x8xf32>, vector<16x8xf32> -> vector<16x8xf32>
    %206 = vector.shape_cast %203 : vector<16x8xf32> to vector<2x8x8xf32>
    %207 = vector.shape_cast %204 : vector<16x8xf32> to vector<2x8x8xf32>
    "tpu.trace_start"() <{level = 10 : i32, message = "bqd,bkd->bqk"}> : () -> ()
    %cst_112 = arith.constant dense<0.000000e+00> : vector<2x8x8xf32>
    %208 = tpu.matmul %206, %207, %cst_112 {dimension_numbers = #tpu.dot_dimension_numbers<[2], [2], [1], [1], [0, 0, 0, 1, 1, 1], [0], [0]>} : vector<2x8x8xf32>, vector<2x8x8xf32>, vector<2x8x8xf32> -> vector<2x8x8xf32>
    "tpu.trace_stop"() : () -> ()
    %209 = arith.addf %208, %1 : vector<2x8x8xf32>
    %cst_113 = arith.constant dense<0xFF800000> : vector<2x8xf32>
    %210 = vector.multi_reduction <maximumf>, %209, %cst_113 [2] : vector<2x8x8xf32> to vector<2x8xf32>
    %211 = vector.shape_cast %210 : vector<2x8xf32> to vector<2x8x1xf32>
    %212 = vector.broadcast %211 : vector<2x8x1xf32> to vector<2x8x8xf32>
    %213 = arith.subf %209, %212 : vector<2x8x8xf32>
    %214 = math.exp %213 : vector<2x8x8xf32>
    %cst_114 = arith.constant dense<0.000000e+00> : vector<2x8xf32>
    %215 = vector.multi_reduction <add>, %214, %cst_114 [2] : vector<2x8x8xf32> to vector<2x8xf32>
    %216 = vector.shape_cast %215 : vector<2x8xf32> to vector<2x8x1xf32>
    %217 = tpu.reciprocal %216 {approx = true} : vector<2x8x1xf32> -> vector<2x8x1xf32>
    %218 = vector.broadcast %217 : vector<2x8x1xf32> to vector<2x8x8xf32>
    %219 = arith.mulf %214, %218 : vector<2x8x8xf32>
    %c0_115 = arith.constant 0 : index
    %c0_116 = arith.constant 0 : index
    %c0_117 = arith.constant 0 : index
    %c0_118 = arith.constant 0 : index
    %220 = vector.load %arg7[%c0_115, %c0_116, %c0_117, %c0_118] : memref<8x2x8x8xf32, #tpu.memory_space<vmem>>, vector<1x2x8x8xf32>
    %221 = vector.shape_cast %220 : vector<1x2x8x8xf32> to vector<2x8x8xf32>
    %222 = vector.shape_cast %219 : vector<2x8x8xf32> to vector<1x2x8x8xf32>
    tpu.vector_store %arg7[%c0_115, %c0_116, %c0_117, %c0_118], %222 {strides = array<i32>} : memref<8x2x8x8xf32, #tpu.memory_space<vmem>>, vector<1x2x8x8xf32>,
    %223 = vector.shape_cast %205 : vector<16x8xf32> to vector<2x8x8xf32>
    "tpu.trace_start"() <{level = 10 : i32, message = "bqk,bkd->bqd"}> : () -> ()
    %cst_119 = arith.constant dense<0.000000e+00> : vector<2x8x8xf32>
    %224 = tpu.matmul %219, %223, %cst_119 {dimension_numbers = #tpu.dot_dimension_numbers<[2], [1], [1], [2], [0, 0, 0, 1, 1, 2], [0], [0]>} : vector<2x8x8xf32>, vector<2x8x8xf32>, vector<2x8x8xf32> -> vector<2x8x8xf32>
    "tpu.trace_stop"() : () -> ()
    %225 = vector.shape_cast %224 : vector<2x8x8xf32> to vector<16x8xf32>
    %c4_120 = arith.constant 4 : index
    %c0_121 = arith.constant 0 : index
    %c0_122 = arith.constant 0 : index
    %226 = vector.load %arg2[%c4_120, %c0_121, %c0_122] : memref<16x8x32xf32, #tpu.memory_space<vmem>>, vector<1x8x32xf32>
    %227 = vector.shape_cast %226 : vector<1x8x32xf32> to vector<8x32xf32>
    %cst_123 = arith.constant dense<0.000000e+00> : vector<16x32xf32>
    %228 = tpu.matmul %225, %227, %cst_123 {dimension_numbers = #tpu.dot_dimension_numbers<[1], [0], [0], [1], [0, 0, 1, 1], [], []>} : vector<16x8xf32>, vector<8x32xf32>, vector<16x32xf32> -> vector<16x32xf32>
    %c13_124 = arith.constant 13 : index
    %c0_125 = arith.constant 0 : index
    %c0_126 = arith.constant 0 : index
    %229 = vector.load %arg1[%c13_124, %c0_125, %c0_126] : memref<48x32x8xf32, #tpu.memory_space<vmem>>, vector<1x32x8xf32>
    %230 = vector.shape_cast %229 : vector<1x32x8xf32> to vector<32x8xf32>
    %c17 = arith.constant 17 : index
    %c0_127 = arith.constant 0 : index
    %c0_128 = arith.constant 0 : index
    %231 = vector.load %arg1[%c17, %c0_127, %c0_128] : memref<48x32x8xf32, #tpu.memory_space<vmem>>, vector<1x32x8xf32>
    %232 = vector.shape_cast %231 : vector<1x32x8xf32> to vector<32x8xf32>
    %c21 = arith.constant 21 : index
    %c0_129 = arith.constant 0 : index
    %c0_130 = arith.constant 0 : index
    %233 = vector.load %arg1[%c21, %c0_129, %c0_130] : memref<48x32x8xf32, #tpu.memory_space<vmem>>, vector<1x32x8xf32>
    %234 = vector.shape_cast %233 : vector<1x32x8xf32> to vector<32x8xf32>
    %c17_131 = arith.constant 17 : index
    %c0_132 = arith.constant 0 : index
    %235 = vector.load %arg5[%c17_131, %c0_132] : memref<32x128xf32, #tpu.memory_space<vmem>>, vector<1x8xf32>
    %cst_133 = arith.constant dense<0.000000e+00> : vector<16x8xf32>
    %236 = tpu.matmul %193, %230, %cst_133 {dimension_numbers = #tpu.dot_dimension_numbers<[1], [0], [0], [1], [0, 0, 1, 1], [], []>} : vector<16x32xf32>, vector<32x8xf32>, vector<16x8xf32> -> vector<16x8xf32>
    %237 = vector.broadcast %235 : vector<1x8xf32> to vector<16x8xf32>
    %238 = arith.addf %236, %237 : vector<16x8xf32>
    %cst_134 = arith.constant dense<0.000000e+00> : vector<16x8xf32>
    %239 = tpu.matmul %12, %232, %cst_134 {dimension_numbers = #tpu.dot_dimension_numbers<[1], [0], [0], [1], [0, 0, 1, 1], [], []>} : vector<16x32xf32>, vector<32x8xf32>, vector<16x8xf32> -> vector<16x8xf32>
    %cst_135 = arith.constant dense<0.000000e+00> : vector<16x8xf32>
    %240 = tpu.matmul %12, %234, %cst_135 {dimension_numbers = #tpu.dot_dimension_numbers<[1], [0], [0], [1], [0, 0, 1, 1], [], []>} : vector<16x32xf32>, vector<32x8xf32>, vector<16x8xf32> -> vector<16x8xf32>
    %241 = vector.shape_cast %238 : vector<16x8xf32> to vector<2x8x8xf32>
    %242 = vector.shape_cast %239 : vector<16x8xf32> to vector<2x8x8xf32>
    "tpu.trace_start"() <{level = 10 : i32, message = "bqd,bkd->bqk"}> : () -> ()
    %cst_136 = arith.constant dense<0.000000e+00> : vector<2x8x8xf32>
    %243 = tpu.matmul %241, %242, %cst_136 {dimension_numbers = #tpu.dot_dimension_numbers<[2], [2], [1], [1], [0, 0, 0, 1, 1, 1], [0], [0]>} : vector<2x8x8xf32>, vector<2x8x8xf32>, vector<2x8x8xf32> -> vector<2x8x8xf32>
    "tpu.trace_stop"() : () -> ()
    %244 = arith.addf %243, %1 : vector<2x8x8xf32>
    %cst_137 = arith.constant dense<0xFF800000> : vector<2x8xf32>
    %245 = vector.multi_reduction <maximumf>, %244, %cst_137 [2] : vector<2x8x8xf32> to vector<2x8xf32>
    %246 = vector.shape_cast %245 : vector<2x8xf32> to vector<2x8x1xf32>
    %247 = vector.broadcast %246 : vector<2x8x1xf32> to vector<2x8x8xf32>
    %248 = arith.subf %244, %247 : vector<2x8x8xf32>
    %249 = math.exp %248 : vector<2x8x8xf32>
    %cst_138 = arith.constant dense<0.000000e+00> : vector<2x8xf32>
    %250 = vector.multi_reduction <add>, %249, %cst_138 [2] : vector<2x8x8xf32> to vector<2x8xf32>
    %251 = vector.shape_cast %250 : vector<2x8xf32> to vector<2x8x1xf32>
    %252 = tpu.reciprocal %251 {approx = true} : vector<2x8x1xf32> -> vector<2x8x1xf32>
    %253 = vector.broadcast %252 : vector<2x8x1xf32> to vector<2x8x8xf32>
    %254 = arith.mulf %249, %253 : vector<2x8x8xf32>
    %c1_139 = arith.constant 1 : index
    %c0_140 = arith.constant 0 : index
    %c0_141 = arith.constant 0 : index
    %c0_142 = arith.constant 0 : index
    %255 = vector.load %arg7[%c1_139, %c0_140, %c0_141, %c0_142] : memref<8x2x8x8xf32, #tpu.memory_space<vmem>>, vector<1x2x8x8xf32>
    %256 = vector.shape_cast %255 : vector<1x2x8x8xf32> to vector<2x8x8xf32>
    %257 = vector.shape_cast %254 : vector<2x8x8xf32> to vector<1x2x8x8xf32>
    tpu.vector_store %arg7[%c1_139, %c0_140, %c0_141, %c0_142], %257 {strides = array<i32>} : memref<8x2x8x8xf32, #tpu.memory_space<vmem>>, vector<1x2x8x8xf32>,
    %258 = vector.shape_cast %240 : vector<16x8xf32> to vector<2x8x8xf32>
    "tpu.trace_start"() <{level = 10 : i32, message = "bqk,bkd->bqd"}> : () -> ()
    %cst_143 = arith.constant dense<0.000000e+00> : vector<2x8x8xf32>
    %259 = tpu.matmul %254, %258, %cst_143 {dimension_numbers = #tpu.dot_dimension_numbers<[2], [1], [1], [2], [0, 0, 0, 1, 1, 2], [0], [0]>} : vector<2x8x8xf32>, vector<2x8x8xf32>, vector<2x8x8xf32> -> vector<2x8x8xf32>
    "tpu.trace_stop"() : () -> ()
    %260 = vector.shape_cast %259 : vector<2x8x8xf32> to vector<16x8xf32>
    %c5_144 = arith.constant 5 : index
    %c0_145 = arith.constant 0 : index
    %c0_146 = arith.constant 0 : index
    %261 = vector.load %arg2[%c5_144, %c0_145, %c0_146] : memref<16x8x32xf32, #tpu.memory_space<vmem>>, vector<1x8x32xf32>
    %262 = vector.shape_cast %261 : vector<1x8x32xf32> to vector<8x32xf32>
    %cst_147 = arith.constant dense<0.000000e+00> : vector<16x32xf32>
    %263 = tpu.matmul %260, %262, %cst_147 {dimension_numbers = #tpu.dot_dimension_numbers<[1], [0], [0], [1], [0, 0, 1, 1], [], []>} : vector<16x8xf32>, vector<8x32xf32>, vector<16x32xf32> -> vector<16x32xf32>
    %264 = arith.addf %228, %263 : vector<16x32xf32>
    %c14_148 = arith.constant 14 : index
    %c0_149 = arith.constant 0 : index
    %c0_150 = arith.constant 0 : index
    %265 = vector.load %arg1[%c14_148, %c0_149, %c0_150] : memref<48x32x8xf32, #tpu.memory_space<vmem>>, vector<1x32x8xf32>
    %266 = vector.shape_cast %265 : vector<1x32x8xf32> to vector<32x8xf32>
    %c18 = arith.constant 18 : index
    %c0_151 = arith.constant 0 : index
    %c0_152 = arith.constant 0 : index
    %267 = vector.load %arg1[%c18, %c0_151, %c0_152] : memref<48x32x8xf32, #tpu.memory_space<vmem>>, vector<1x32x8xf32>
    %268 = vector.shape_cast %267 : vector<1x32x8xf32> to vector<32x8xf32>
    %c22 = arith.constant 22 : index
    %c0_153 = arith.constant 0 : index
    %c0_154 = arith.constant 0 : index
    %269 = vector.load %arg1[%c22, %c0_153, %c0_154] : memref<48x32x8xf32, #tpu.memory_space<vmem>>, vector<1x32x8xf32>
    %270 = vector.shape_cast %269 : vector<1x32x8xf32> to vector<32x8xf32>
    %c18_155 = arith.constant 18 : index
    %c0_156 = arith.constant 0 : index
    %271 = vector.load %arg5[%c18_155, %c0_156] : memref<32x128xf32, #tpu.memory_space<vmem>>, vector<1x8xf32>
    %cst_157 = arith.constant dense<0.000000e+00> : vector<16x8xf32>
    %272 = tpu.matmul %193, %266, %cst_157 {dimension_numbers = #tpu.dot_dimension_numbers<[1], [0], [0], [1], [0, 0, 1, 1], [], []>} : vector<16x32xf32>, vector<32x8xf32>, vector<16x8xf32> -> vector<16x8xf32>
    %273 = vector.broadcast %271 : vector<1x8xf32> to vector<16x8xf32>
    %274 = arith.addf %272, %273 : vector<16x8xf32>
    %cst_158 = arith.constant dense<0.000000e+00> : vector<16x8xf32>
    %275 = tpu.matmul %12, %268, %cst_158 {dimension_numbers = #tpu.dot_dimension_numbers<[1], [0], [0], [1], [0, 0, 1, 1], [], []>} : vector<16x32xf32>, vector<32x8xf32>, vector<16x8xf32> -> vector<16x8xf32>
    %cst_159 = arith.constant dense<0.000000e+00> : vector<16x8xf32>
    %276 = tpu.matmul %12, %270, %cst_159 {dimension_numbers = #tpu.dot_dimension_numbers<[1], [0], [0], [1], [0, 0, 1, 1], [], []>} : vector<16x32xf32>, vector<32x8xf32>, vector<16x8xf32> -> vector<16x8xf32>
    %277 = vector.shape_cast %274 : vector<16x8xf32> to vector<2x8x8xf32>
    %278 = vector.shape_cast %275 : vector<16x8xf32> to vector<2x8x8xf32>
    "tpu.trace_start"() <{level = 10 : i32, message = "bqd,bkd->bqk"}> : () -> ()
    %cst_160 = arith.constant dense<0.000000e+00> : vector<2x8x8xf32>
    %279 = tpu.matmul %277, %278, %cst_160 {dimension_numbers = #tpu.dot_dimension_numbers<[2], [2], [1], [1], [0, 0, 0, 1, 1, 1], [0], [0]>} : vector<2x8x8xf32>, vector<2x8x8xf32>, vector<2x8x8xf32> -> vector<2x8x8xf32>
    "tpu.trace_stop"() : () -> ()
    %280 = arith.addf %279, %1 : vector<2x8x8xf32>
    %cst_161 = arith.constant dense<0xFF800000> : vector<2x8xf32>
    %281 = vector.multi_reduction <maximumf>, %280, %cst_161 [2] : vector<2x8x8xf32> to vector<2x8xf32>
    %282 = vector.shape_cast %281 : vector<2x8xf32> to vector<2x8x1xf32>
    %283 = vector.broadcast %282 : vector<2x8x1xf32> to vector<2x8x8xf32>
    %284 = arith.subf %280, %283 : vector<2x8x8xf32>
    %285 = math.exp %284 : vector<2x8x8xf32>
    %cst_162 = arith.constant dense<0.000000e+00> : vector<2x8xf32>
    %286 = vector.multi_reduction <add>, %285, %cst_162 [2] : vector<2x8x8xf32> to vector<2x8xf32>
    %287 = vector.shape_cast %286 : vector<2x8xf32> to vector<2x8x1xf32>
    %288 = tpu.reciprocal %287 {approx = true} : vector<2x8x1xf32> -> vector<2x8x1xf32>
    %289 = vector.broadcast %288 : vector<2x8x1xf32> to vector<2x8x8xf32>
    %290 = arith.mulf %285, %289 : vector<2x8x8xf32>
    %c2_163 = arith.constant 2 : index
    %c0_164 = arith.constant 0 : index
    %c0_165 = arith.constant 0 : index
    %c0_166 = arith.constant 0 : index
    %291 = vector.load %arg7[%c2_163, %c0_164, %c0_165, %c0_166] : memref<8x2x8x8xf32, #tpu.memory_space<vmem>>, vector<1x2x8x8xf32>
    %292 = vector.shape_cast %291 : vector<1x2x8x8xf32> to vector<2x8x8xf32>
    %293 = vector.shape_cast %290 : vector<2x8x8xf32> to vector<1x2x8x8xf32>
    tpu.vector_store %arg7[%c2_163, %c0_164, %c0_165, %c0_166], %293 {strides = array<i32>} : memref<8x2x8x8xf32, #tpu.memory_space<vmem>>, vector<1x2x8x8xf32>,
    %294 = vector.shape_cast %276 : vector<16x8xf32> to vector<2x8x8xf32>
    "tpu.trace_start"() <{level = 10 : i32, message = "bqk,bkd->bqd"}> : () -> ()
    %cst_167 = arith.constant dense<0.000000e+00> : vector<2x8x8xf32>
    %295 = tpu.matmul %290, %294, %cst_167 {dimension_numbers = #tpu.dot_dimension_numbers<[2], [1], [1], [2], [0, 0, 0, 1, 1, 2], [0], [0]>} : vector<2x8x8xf32>, vector<2x8x8xf32>, vector<2x8x8xf32> -> vector<2x8x8xf32>
    "tpu.trace_stop"() : () -> ()
    %296 = vector.shape_cast %295 : vector<2x8x8xf32> to vector<16x8xf32>
    %c6_168 = arith.constant 6 : index
    %c0_169 = arith.constant 0 : index
    %c0_170 = arith.constant 0 : index
    %297 = vector.load %arg2[%c6_168, %c0_169, %c0_170] : memref<16x8x32xf32, #tpu.memory_space<vmem>>, vector<1x8x32xf32>
    %298 = vector.shape_cast %297 : vector<1x8x32xf32> to vector<8x32xf32>
    %cst_171 = arith.constant dense<0.000000e+00> : vector<16x32xf32>
    %299 = tpu.matmul %296, %298, %cst_171 {dimension_numbers = #tpu.dot_dimension_numbers<[1], [0], [0], [1], [0, 0, 1, 1], [], []>} : vector<16x8xf32>, vector<8x32xf32>, vector<16x32xf32> -> vector<16x32xf32>
    %300 = arith.addf %264, %299 : vector<16x32xf32>
    %c15_172 = arith.constant 15 : index
    %c0_173 = arith.constant 0 : index
    %c0_174 = arith.constant 0 : index
    %301 = vector.load %arg1[%c15_172, %c0_173, %c0_174] : memref<48x32x8xf32, #tpu.memory_space<vmem>>, vector<1x32x8xf32>
    %302 = vector.shape_cast %301 : vector<1x32x8xf32> to vector<32x8xf32>
    %c19 = arith.constant 19 : index
    %c0_175 = arith.constant 0 : index
    %c0_176 = arith.constant 0 : index
    %303 = vector.load %arg1[%c19, %c0_175, %c0_176] : memref<48x32x8xf32, #tpu.memory_space<vmem>>, vector<1x32x8xf32>
    %304 = vector.shape_cast %303 : vector<1x32x8xf32> to vector<32x8xf32>
    %c23 = arith.constant 23 : index
    %c0_177 = arith.constant 0 : index
    %c0_178 = arith.constant 0 : index
    %305 = vector.load %arg1[%c23, %c0_177, %c0_178] : memref<48x32x8xf32, #tpu.memory_space<vmem>>, vector<1x32x8xf32>
    %306 = vector.shape_cast %305 : vector<1x32x8xf32> to vector<32x8xf32>
    %c19_179 = arith.constant 19 : index
    %c0_180 = arith.constant 0 : index
    %307 = vector.load %arg5[%c19_179, %c0_180] : memref<32x128xf32, #tpu.memory_space<vmem>>, vector<1x8xf32>
    %cst_181 = arith.constant dense<0.000000e+00> : vector<16x8xf32>
    %308 = tpu.matmul %193, %302, %cst_181 {dimension_numbers = #tpu.dot_dimension_numbers<[1], [0], [0], [1], [0, 0, 1, 1], [], []>} : vector<16x32xf32>, vector<32x8xf32>, vector<16x8xf32> -> vector<16x8xf32>
    %309 = vector.broadcast %307 : vector<1x8xf32> to vector<16x8xf32>
    %310 = arith.addf %308, %309 : vector<16x8xf32>
    %cst_182 = arith.constant dense<0.000000e+00> : vector<16x8xf32>
    %311 = tpu.matmul %12, %304, %cst_182 {dimension_numbers = #tpu.dot_dimension_numbers<[1], [0], [0], [1], [0, 0, 1, 1], [], []>} : vector<16x32xf32>, vector<32x8xf32>, vector<16x8xf32> -> vector<16x8xf32>
    %cst_183 = arith.constant dense<0.000000e+00> : vector<16x8xf32>
    %312 = tpu.matmul %12, %306, %cst_183 {dimension_numbers = #tpu.dot_dimension_numbers<[1], [0], [0], [1], [0, 0, 1, 1], [], []>} : vector<16x32xf32>, vector<32x8xf32>, vector<16x8xf32> -> vector<16x8xf32>
    %313 = vector.shape_cast %310 : vector<16x8xf32> to vector<2x8x8xf32>
    %314 = vector.shape_cast %311 : vector<16x8xf32> to vector<2x8x8xf32>
    "tpu.trace_start"() <{level = 10 : i32, message = "bqd,bkd->bqk"}> : () -> ()
    %cst_184 = arith.constant dense<0.000000e+00> : vector<2x8x8xf32>
    %315 = tpu.matmul %313, %314, %cst_184 {dimension_numbers = #tpu.dot_dimension_numbers<[2], [2], [1], [1], [0, 0, 0, 1, 1, 1], [0], [0]>} : vector<2x8x8xf32>, vector<2x8x8xf32>, vector<2x8x8xf32> -> vector<2x8x8xf32>
    "tpu.trace_stop"() : () -> ()
    %316 = arith.addf %315, %1 : vector<2x8x8xf32>
    %cst_185 = arith.constant dense<0xFF800000> : vector<2x8xf32>
    %317 = vector.multi_reduction <maximumf>, %316, %cst_185 [2] : vector<2x8x8xf32> to vector<2x8xf32>
    %318 = vector.shape_cast %317 : vector<2x8xf32> to vector<2x8x1xf32>
    %319 = vector.broadcast %318 : vector<2x8x1xf32> to vector<2x8x8xf32>
    %320 = arith.subf %316, %319 : vector<2x8x8xf32>
    %321 = math.exp %320 : vector<2x8x8xf32>
    %cst_186 = arith.constant dense<0.000000e+00> : vector<2x8xf32>
    %322 = vector.multi_reduction <add>, %321, %cst_186 [2] : vector<2x8x8xf32> to vector<2x8xf32>
    %323 = vector.shape_cast %322 : vector<2x8xf32> to vector<2x8x1xf32>
    %324 = tpu.reciprocal %323 {approx = true} : vector<2x8x1xf32> -> vector<2x8x1xf32>
    %325 = vector.broadcast %324 : vector<2x8x1xf32> to vector<2x8x8xf32>
    %326 = arith.mulf %321, %325 : vector<2x8x8xf32>
    %c3_187 = arith.constant 3 : index
    %c0_188 = arith.constant 0 : index
    %c0_189 = arith.constant 0 : index
    %c0_190 = arith.constant 0 : index
    %327 = vector.load %arg7[%c3_187, %c0_188, %c0_189, %c0_190] : memref<8x2x8x8xf32, #tpu.memory_space<vmem>>, vector<1x2x8x8xf32>
    %328 = vector.shape_cast %327 : vector<1x2x8x8xf32> to vector<2x8x8xf32>
    %329 = vector.shape_cast %326 : vector<2x8x8xf32> to vector<1x2x8x8xf32>
    tpu.vector_store %arg7[%c3_187, %c0_188, %c0_189, %c0_190], %329 {strides = array<i32>} : memref<8x2x8x8xf32, #tpu.memory_space<vmem>>, vector<1x2x8x8xf32>,
    %330 = vector.shape_cast %312 : vector<16x8xf32> to vector<2x8x8xf32>
    "tpu.trace_start"() <{level = 10 : i32, message = "bqk,bkd->bqd"}> : () -> ()
    %cst_191 = arith.constant dense<0.000000e+00> : vector<2x8x8xf32>
    %331 = tpu.matmul %326, %330, %cst_191 {dimension_numbers = #tpu.dot_dimension_numbers<[2], [1], [1], [2], [0, 0, 0, 1, 1, 2], [0], [0]>} : vector<2x8x8xf32>, vector<2x8x8xf32>, vector<2x8x8xf32> -> vector<2x8x8xf32>
    "tpu.trace_stop"() : () -> ()
    %332 = vector.shape_cast %331 : vector<2x8x8xf32> to vector<16x8xf32>
    %c7_192 = arith.constant 7 : index
    %c0_193 = arith.constant 0 : index
    %c0_194 = arith.constant 0 : index
    %333 = vector.load %arg2[%c7_192, %c0_193, %c0_194] : memref<16x8x32xf32, #tpu.memory_space<vmem>>, vector<1x8x32xf32>
    %334 = vector.shape_cast %333 : vector<1x8x32xf32> to vector<8x32xf32>
    %cst_195 = arith.constant dense<0.000000e+00> : vector<16x32xf32>
    %335 = tpu.matmul %332, %334, %cst_195 {dimension_numbers = #tpu.dot_dimension_numbers<[1], [0], [0], [1], [0, 0, 1, 1], [], []>} : vector<16x8xf32>, vector<8x32xf32>, vector<16x32xf32> -> vector<16x32xf32>
    %336 = arith.addf %300, %335 : vector<16x32xf32>
    %337 = arith.addf %170, %336 : vector<16x32xf32>
    %c3_196 = arith.constant 3 : index
    %c0_197 = arith.constant 0 : index
    %338 = vector.load %arg5[%c3_196, %c0_197] : memref<32x128xf32, #tpu.memory_space<vmem>>, vector<1x32xf32>
    %339 = vector.broadcast %338 : vector<1x32xf32> to vector<16x32xf32>
    %340 = arith.addf %337, %339 : vector<16x32xf32>
    %cst_198 = arith.constant dense<0.000000e+00> : vector<16xf32>
    %341 = vector.multi_reduction <add>, %340, %cst_198 [1] : vector<16x32xf32> to vector<16xf32>
    %342 = vector.shape_cast %341 : vector<16xf32> to vector<16x1xf32>
    %cst_199 = arith.constant 3.200000e+01 : f32
    %343 = vector.broadcast %cst_199 : f32 to vector<16x1xf32>
    %344 = arith.divf %342, %343 : vector<16x1xf32>
    %345 = arith.mulf %340, %340 : vector<16x32xf32>
    %cst_200 = arith.constant dense<0.000000e+00> : vector<16xf32>
    %346 = vector.multi_reduction <add>, %345, %cst_200 [1] : vector<16x32xf32> to vector<16xf32>
    %347 = vector.shape_cast %346 : vector<16xf32> to vector<16x1xf32>
    %cst_201 = arith.constant 3.200000e+01 : f32
    %348 = vector.broadcast %cst_201 : f32 to vector<16x1xf32>
    %349 = arith.divf %347, %348 : vector<16x1xf32>
    %350 = arith.mulf %344, %344 : vector<16x1xf32>
    %351 = arith.subf %349, %350 : vector<16x1xf32>
    %cst_202 = arith.constant 9.99999974E-6 : f32
    %352 = vector.broadcast %cst_202 : f32 to vector<16x1xf32>
    %353 = arith.addf %351, %352 : vector<16x1xf32>
    %354 = math.rsqrt %353 : vector<16x1xf32>
    %c96 = arith.constant 96 : index
    %c0_203 = arith.constant 0 : index
    %355 = vector.load %arg0[%c96, %c0_203] : memref<288x32xf32, #tpu.memory_space<vmem>>, vector<16x32xf32>
    %c208 = arith.constant 208 : index
    %c0_204 = arith.constant 0 : index
    %356 = vector.load %arg0[%c208, %c0_204] : memref<288x32xf32, #tpu.memory_space<vmem>>, vector<16x32xf32>
    %357 = vector.broadcast %354 : vector<16x1xf32> to vector<16x32xf32>
    %358 = arith.mulf %355, %357 : vector<16x32xf32>
    %359 = arith.mulf %340, %358 : vector<16x32xf32>
    %360 = vector.broadcast %344 : vector<16x1xf32> to vector<16x32xf32>
    %361 = arith.mulf %360, %358 : vector<16x32xf32>
    %362 = arith.subf %356, %361 : vector<16x32xf32>
    %363 = arith.addf %359, %362 : vector<16x32xf32>
    %c0_205 = arith.constant 0 : index
    %c0_206 = arith.constant 0 : index
    %c0_207 = arith.constant 0 : index
    %364 = vector.load %arg3[%c0_205, %c0_206, %c0_207] : memref<2x192x128xf32, #tpu.memory_space<vmem>>, vector<1x32x128xf32>
    %365 = vector.shape_cast %364 : vector<1x32x128xf32> to vector<32x128xf32>
    %cst_208 = arith.constant dense<0.000000e+00> : vector<16x128xf32>
    %366 = tpu.matmul %363, %365, %cst_208 {dimension_numbers = #tpu.dot_dimension_numbers<[1], [0], [0], [1], [0, 0, 1, 1], [], []>} : vector<16x32xf32>, vector<32x128xf32>, vector<16x128xf32> -> vector<16x128xf32>
    %c4_209 = arith.constant 4 : index
    %c0_210 = arith.constant 0 : index
    %367 = vector.load %arg5[%c4_209, %c0_210] : memref<32x128xf32, #tpu.memory_space<vmem>>, vector<1x128xf32>
    %368 = vector.broadcast %367 : vector<1x128xf32> to vector<16x128xf32>
    %369 = arith.addf %366, %368 : vector<16x128xf32>
    %c0_211 = arith.constant 0 : index
    %c32_212 = arith.constant 32 : index
    %c0_213 = arith.constant 0 : index
    %370 = vector.load %arg3[%c0_211, %c32_212, %c0_213] : memref<2x192x128xf32, #tpu.memory_space<vmem>>, vector<1x32x128xf32>
    %371 = vector.shape_cast %370 : vector<1x32x128xf32> to vector<32x128xf32>
    %cst_214 = arith.constant dense<0.000000e+00> : vector<16x128xf32>
    %372 = tpu.matmul %363, %371, %cst_214 {dimension_numbers = #tpu.dot_dimension_numbers<[1], [0], [0], [1], [0, 0, 1, 1], [], []>} : vector<16x32xf32>, vector<32x128xf32>, vector<16x128xf32> -> vector<16x128xf32>
    %c5_215 = arith.constant 5 : index
    %c0_216 = arith.constant 0 : index
    %373 = vector.load %arg5[%c5_215, %c0_216] : memref<32x128xf32, #tpu.memory_space<vmem>>, vector<1x128xf32>
    %374 = vector.broadcast %373 : vector<1x128xf32> to vector<16x128xf32>
    %375 = arith.addf %372, %374 : vector<16x128xf32>
    %376 = arith.negf %369 : vector<16x128xf32>
    %377 = math.exp %376 : vector<16x128xf32>
    %cst_217 = arith.constant 1.000000e+00 : f32
    %378 = vector.broadcast %cst_217 : f32 to vector<16x128xf32>
    %379 = arith.addf %378, %377 : vector<16x128xf32>
    %380 = arith.divf %378, %379 : vector<16x128xf32>
    %381 = arith.mulf %369, %380 : vector<16x128xf32>
    %382 = arith.mulf %381, %375 : vector<16x128xf32>
    %c0_218 = arith.constant 0 : index
    %c64_219 = arith.constant 64 : index
    %c0_220 = arith.constant 0 : index
    %383 = vector.load %arg3[%c0_218, %c64_219, %c0_220] : memref<2x192x128xf32, #tpu.memory_space<vmem>>, vector<1x128x32xf32>
    %384 = vector.shape_cast %383 : vector<1x128x32xf32> to vector<128x32xf32>
    %cst_221 = arith.constant dense<0.000000e+00> : vector<16x32xf32>
    %385 = tpu.matmul %382, %384, %cst_221 {dimension_numbers = #tpu.dot_dimension_numbers<[1], [0], [0], [1], [0, 0, 1, 1], [], []>} : vector<16x128xf32>, vector<128x32xf32>, vector<16x32xf32> -> vector<16x32xf32>
    %c6_222 = arith.constant 6 : index
    %c0_223 = arith.constant 0 : index
    %386 = vector.load %arg5[%c6_222, %c0_223] : memref<32x128xf32, #tpu.memory_space<vmem>>, vector<1x32xf32>
    %387 = vector.broadcast %386 : vector<1x32xf32> to vector<16x32xf32>
    %388 = arith.addf %385, %387 : vector<16x32xf32>
    %389 = arith.addf %340, %388 : vector<16x32xf32>
    %cst_224 = arith.constant dense<0.000000e+00> : vector<16xf32>
    %390 = vector.multi_reduction <add>, %389, %cst_224 [1] : vector<16x32xf32> to vector<16xf32>
    %391 = vector.shape_cast %390 : vector<16xf32> to vector<16x1xf32>
    %cst_225 = arith.constant 3.200000e+01 : f32
    %392 = vector.broadcast %cst_225 : f32 to vector<16x1xf32>
    %393 = arith.divf %391, %392 : vector<16x1xf32>
    %394 = arith.mulf %389, %389 : vector<16x32xf32>
    %cst_226 = arith.constant dense<0.000000e+00> : vector<16xf32>
    %395 = vector.multi_reduction <add>, %394, %cst_226 [1] : vector<16x32xf32> to vector<16xf32>
    %396 = vector.shape_cast %395 : vector<16xf32> to vector<16x1xf32>
    %cst_227 = arith.constant 3.200000e+01 : f32
    %397 = vector.broadcast %cst_227 : f32 to vector<16x1xf32>
    %398 = arith.divf %396, %397 : vector<16x1xf32>
    %399 = arith.mulf %393, %393 : vector<16x1xf32>
    %400 = arith.subf %398, %399 : vector<16x1xf32>
    %cst_228 = arith.constant 9.99999974E-6 : f32
    %401 = vector.broadcast %cst_228 : f32 to vector<16x1xf32>
    %402 = arith.addf %400, %401 : vector<16x1xf32>
    %403 = math.rsqrt %402 : vector<16x1xf32>
    %c112 = arith.constant 112 : index
    %c0_229 = arith.constant 0 : index
    %404 = vector.load %arg0[%c112, %c0_229] : memref<288x32xf32, #tpu.memory_space<vmem>>, vector<16x32xf32>
    %c224 = arith.constant 224 : index
    %c0_230 = arith.constant 0 : index
    %405 = vector.load %arg0[%c224, %c0_230] : memref<288x32xf32, #tpu.memory_space<vmem>>, vector<16x32xf32>
    %406 = vector.broadcast %403 : vector<16x1xf32> to vector<16x32xf32>
    %407 = arith.mulf %404, %406 : vector<16x32xf32>
    %408 = arith.mulf %389, %407 : vector<16x32xf32>
    %409 = vector.broadcast %393 : vector<16x1xf32> to vector<16x32xf32>
    %410 = arith.mulf %409, %407 : vector<16x32xf32>
    %411 = arith.subf %405, %410 : vector<16x32xf32>
    %412 = arith.addf %408, %411 : vector<16x32xf32>
    %c24_231 = arith.constant 24 : index
    %c0_232 = arith.constant 0 : index
    %c0_233 = arith.constant 0 : index
    %413 = vector.load %arg1[%c24_231, %c0_232, %c0_233] : memref<48x32x8xf32, #tpu.memory_space<vmem>>, vector<1x32x8xf32>
    %414 = vector.shape_cast %413 : vector<1x32x8xf32> to vector<32x8xf32>
    %c28 = arith.constant 28 : index
    %c0_234 = arith.constant 0 : index
    %c0_235 = arith.constant 0 : index
    %415 = vector.load %arg1[%c28, %c0_234, %c0_235] : memref<48x32x8xf32, #tpu.memory_space<vmem>>, vector<1x32x8xf32>
    %416 = vector.shape_cast %415 : vector<1x32x8xf32> to vector<32x8xf32>
    %c32_236 = arith.constant 32 : index
    %c0_237 = arith.constant 0 : index
    %c0_238 = arith.constant 0 : index
    %417 = vector.load %arg1[%c32_236, %c0_237, %c0_238] : memref<48x32x8xf32, #tpu.memory_space<vmem>>, vector<1x32x8xf32>
    %418 = vector.shape_cast %417 : vector<1x32x8xf32> to vector<32x8xf32>
    %c20_239 = arith.constant 20 : index
    %c0_240 = arith.constant 0 : index
    %419 = vector.load %arg5[%c20_239, %c0_240] : memref<32x128xf32, #tpu.memory_space<vmem>>, vector<1x8xf32>
    %cst_241 = arith.constant dense<0.000000e+00> : vector<16x8xf32>
    %420 = tpu.matmul %412, %414, %cst_241 {dimension_numbers = #tpu.dot_dimension_numbers<[1], [0], [0], [1], [0, 0, 1, 1], [], []>} : vector<16x32xf32>, vector<32x8xf32>, vector<16x8xf32> -> vector<16x8xf32>
    %421 = vector.broadcast %419 : vector<1x8xf32> to vector<16x8xf32>
    %422 = arith.addf %420, %421 : vector<16x8xf32>
    %cst_242 = arith.constant dense<0.000000e+00> : vector<16x8xf32>
    %423 = tpu.matmul %412, %416, %cst_242 {dimension_numbers = #tpu.dot_dimension_numbers<[1], [0], [0], [1], [0, 0, 1, 1], [], []>} : vector<16x32xf32>, vector<32x8xf32>, vector<16x8xf32> -> vector<16x8xf32>
    %cst_243 = arith.constant dense<0.000000e+00> : vector<16x8xf32>
    %424 = tpu.matmul %412, %418, %cst_243 {dimension_numbers = #tpu.dot_dimension_numbers<[1], [0], [0], [1], [0, 0, 1, 1], [], []>} : vector<16x32xf32>, vector<32x8xf32>, vector<16x8xf32> -> vector<16x8xf32>
    %425 = vector.shape_cast %422 : vector<16x8xf32> to vector<2x8x8xf32>
    %426 = vector.shape_cast %423 : vector<16x8xf32> to vector<2x8x8xf32>
    "tpu.trace_start"() <{level = 10 : i32, message = "bqd,bkd->bqk"}> : () -> ()
    %cst_244 = arith.constant dense<0.000000e+00> : vector<2x8x8xf32>
    %427 = tpu.matmul %425, %426, %cst_244 {dimension_numbers = #tpu.dot_dimension_numbers<[2], [2], [1], [1], [0, 0, 0, 1, 1, 1], [0], [0]>} : vector<2x8x8xf32>, vector<2x8x8xf32>, vector<2x8x8xf32> -> vector<2x8x8xf32>
    "tpu.trace_stop"() : () -> ()
    %428 = arith.addf %427, %1 : vector<2x8x8xf32>
    %cst_245 = arith.constant dense<0xFF800000> : vector<2x8xf32>
    %429 = vector.multi_reduction <maximumf>, %428, %cst_245 [2] : vector<2x8x8xf32> to vector<2x8xf32>
    %430 = vector.shape_cast %429 : vector<2x8xf32> to vector<2x8x1xf32>
    %431 = vector.broadcast %430 : vector<2x8x1xf32> to vector<2x8x8xf32>
    %432 = arith.subf %428, %431 : vector<2x8x8xf32>
    %433 = math.exp %432 : vector<2x8x8xf32>
    %cst_246 = arith.constant dense<0.000000e+00> : vector<2x8xf32>
    %434 = vector.multi_reduction <add>, %433, %cst_246 [2] : vector<2x8x8xf32> to vector<2x8xf32>
    %435 = vector.shape_cast %434 : vector<2x8xf32> to vector<2x8x1xf32>
    %436 = tpu.reciprocal %435 {approx = true} : vector<2x8x1xf32> -> vector<2x8x1xf32>
    %437 = vector.broadcast %436 : vector<2x8x1xf32> to vector<2x8x8xf32>
    %438 = arith.mulf %433, %437 : vector<2x8x8xf32>
    %439 = vector.shape_cast %424 : vector<16x8xf32> to vector<2x8x8xf32>
    "tpu.trace_start"() <{level = 10 : i32, message = "bqk,bkd->bqd"}> : () -> ()
    %cst_247 = arith.constant dense<0.000000e+00> : vector<2x8x8xf32>
    %440 = tpu.matmul %438, %439, %cst_247 {dimension_numbers = #tpu.dot_dimension_numbers<[2], [1], [1], [2], [0, 0, 0, 1, 1, 2], [0], [0]>} : vector<2x8x8xf32>, vector<2x8x8xf32>, vector<2x8x8xf32> -> vector<2x8x8xf32>
    "tpu.trace_stop"() : () -> ()
    %441 = vector.shape_cast %440 : vector<2x8x8xf32> to vector<16x8xf32>
    %c8_248 = arith.constant 8 : index
    %c0_249 = arith.constant 0 : index
    %c0_250 = arith.constant 0 : index
    %442 = vector.load %arg2[%c8_248, %c0_249, %c0_250] : memref<16x8x32xf32, #tpu.memory_space<vmem>>, vector<1x8x32xf32>
    %443 = vector.shape_cast %442 : vector<1x8x32xf32> to vector<8x32xf32>
    %cst_251 = arith.constant dense<0.000000e+00> : vector<16x32xf32>
    %444 = tpu.matmul %441, %443, %cst_251 {dimension_numbers = #tpu.dot_dimension_numbers<[1], [0], [0], [1], [0, 0, 1, 1], [], []>} : vector<16x8xf32>, vector<8x32xf32>, vector<16x32xf32> -> vector<16x32xf32>
    %c25 = arith.constant 25 : index
    %c0_252 = arith.constant 0 : index
    %c0_253 = arith.constant 0 : index
    %445 = vector.load %arg1[%c25, %c0_252, %c0_253] : memref<48x32x8xf32, #tpu.memory_space<vmem>>, vector<1x32x8xf32>
    %446 = vector.shape_cast %445 : vector<1x32x8xf32> to vector<32x8xf32>
    %c29 = arith.constant 29 : index
    %c0_254 = arith.constant 0 : index
    %c0_255 = arith.constant 0 : index
    %447 = vector.load %arg1[%c29, %c0_254, %c0_255] : memref<48x32x8xf32, #tpu.memory_space<vmem>>, vector<1x32x8xf32>
    %448 = vector.shape_cast %447 : vector<1x32x8xf32> to vector<32x8xf32>
    %c33 = arith.constant 33 : index
    %c0_256 = arith.constant 0 : index
    %c0_257 = arith.constant 0 : index
    %449 = vector.load %arg1[%c33, %c0_256, %c0_257] : memref<48x32x8xf32, #tpu.memory_space<vmem>>, vector<1x32x8xf32>
    %450 = vector.shape_cast %449 : vector<1x32x8xf32> to vector<32x8xf32>
    %c21_258 = arith.constant 21 : index
    %c0_259 = arith.constant 0 : index
    %451 = vector.load %arg5[%c21_258, %c0_259] : memref<32x128xf32, #tpu.memory_space<vmem>>, vector<1x8xf32>
    %cst_260 = arith.constant dense<0.000000e+00> : vector<16x8xf32>
    %452 = tpu.matmul %412, %446, %cst_260 {dimension_numbers = #tpu.dot_dimension_numbers<[1], [0], [0], [1], [0, 0, 1, 1], [], []>} : vector<16x32xf32>, vector<32x8xf32>, vector<16x8xf32> -> vector<16x8xf32>
    %453 = vector.broadcast %451 : vector<1x8xf32> to vector<16x8xf32>
    %454 = arith.addf %452, %453 : vector<16x8xf32>
    %cst_261 = arith.constant dense<0.000000e+00> : vector<16x8xf32>
    %455 = tpu.matmul %412, %448, %cst_261 {dimension_numbers = #tpu.dot_dimension_numbers<[1], [0], [0], [1], [0, 0, 1, 1], [], []>} : vector<16x32xf32>, vector<32x8xf32>, vector<16x8xf32> -> vector<16x8xf32>
    %cst_262 = arith.constant dense<0.000000e+00> : vector<16x8xf32>
    %456 = tpu.matmul %412, %450, %cst_262 {dimension_numbers = #tpu.dot_dimension_numbers<[1], [0], [0], [1], [0, 0, 1, 1], [], []>} : vector<16x32xf32>, vector<32x8xf32>, vector<16x8xf32> -> vector<16x8xf32>
    %457 = vector.shape_cast %454 : vector<16x8xf32> to vector<2x8x8xf32>
    %458 = vector.shape_cast %455 : vector<16x8xf32> to vector<2x8x8xf32>
    "tpu.trace_start"() <{level = 10 : i32, message = "bqd,bkd->bqk"}> : () -> ()
    %cst_263 = arith.constant dense<0.000000e+00> : vector<2x8x8xf32>
    %459 = tpu.matmul %457, %458, %cst_263 {dimension_numbers = #tpu.dot_dimension_numbers<[2], [2], [1], [1], [0, 0, 0, 1, 1, 1], [0], [0]>} : vector<2x8x8xf32>, vector<2x8x8xf32>, vector<2x8x8xf32> -> vector<2x8x8xf32>
    "tpu.trace_stop"() : () -> ()
    %460 = arith.addf %459, %1 : vector<2x8x8xf32>
    %cst_264 = arith.constant dense<0xFF800000> : vector<2x8xf32>
    %461 = vector.multi_reduction <maximumf>, %460, %cst_264 [2] : vector<2x8x8xf32> to vector<2x8xf32>
    %462 = vector.shape_cast %461 : vector<2x8xf32> to vector<2x8x1xf32>
    %463 = vector.broadcast %462 : vector<2x8x1xf32> to vector<2x8x8xf32>
    %464 = arith.subf %460, %463 : vector<2x8x8xf32>
    %465 = math.exp %464 : vector<2x8x8xf32>
    %cst_265 = arith.constant dense<0.000000e+00> : vector<2x8xf32>
    %466 = vector.multi_reduction <add>, %465, %cst_265 [2] : vector<2x8x8xf32> to vector<2x8xf32>
    %467 = vector.shape_cast %466 : vector<2x8xf32> to vector<2x8x1xf32>
    %468 = tpu.reciprocal %467 {approx = true} : vector<2x8x1xf32> -> vector<2x8x1xf32>
    %469 = vector.broadcast %468 : vector<2x8x1xf32> to vector<2x8x8xf32>
    %470 = arith.mulf %465, %469 : vector<2x8x8xf32>
    %471 = vector.shape_cast %456 : vector<16x8xf32> to vector<2x8x8xf32>
    "tpu.trace_start"() <{level = 10 : i32, message = "bqk,bkd->bqd"}> : () -> ()
    %cst_266 = arith.constant dense<0.000000e+00> : vector<2x8x8xf32>
    %472 = tpu.matmul %470, %471, %cst_266 {dimension_numbers = #tpu.dot_dimension_numbers<[2], [1], [1], [2], [0, 0, 0, 1, 1, 2], [0], [0]>} : vector<2x8x8xf32>, vector<2x8x8xf32>, vector<2x8x8xf32> -> vector<2x8x8xf32>
    "tpu.trace_stop"() : () -> ()
    %473 = vector.shape_cast %472 : vector<2x8x8xf32> to vector<16x8xf32>
    %c9_267 = arith.constant 9 : index
    %c0_268 = arith.constant 0 : index
    %c0_269 = arith.constant 0 : index
    %474 = vector.load %arg2[%c9_267, %c0_268, %c0_269] : memref<16x8x32xf32, #tpu.memory_space<vmem>>, vector<1x8x32xf32>
    %475 = vector.shape_cast %474 : vector<1x8x32xf32> to vector<8x32xf32>
    %cst_270 = arith.constant dense<0.000000e+00> : vector<16x32xf32>
    %476 = tpu.matmul %473, %475, %cst_270 {dimension_numbers = #tpu.dot_dimension_numbers<[1], [0], [0], [1], [0, 0, 1, 1], [], []>} : vector<16x8xf32>, vector<8x32xf32>, vector<16x32xf32> -> vector<16x32xf32>
    %477 = arith.addf %444, %476 : vector<16x32xf32>
    %c26 = arith.constant 26 : index
    %c0_271 = arith.constant 0 : index
    %c0_272 = arith.constant 0 : index
    %478 = vector.load %arg1[%c26, %c0_271, %c0_272] : memref<48x32x8xf32, #tpu.memory_space<vmem>>, vector<1x32x8xf32>
    %479 = vector.shape_cast %478 : vector<1x32x8xf32> to vector<32x8xf32>
    %c30 = arith.constant 30 : index
    %c0_273 = arith.constant 0 : index
    %c0_274 = arith.constant 0 : index
    %480 = vector.load %arg1[%c30, %c0_273, %c0_274] : memref<48x32x8xf32, #tpu.memory_space<vmem>>, vector<1x32x8xf32>
    %481 = vector.shape_cast %480 : vector<1x32x8xf32> to vector<32x8xf32>
    %c34 = arith.constant 34 : index
    %c0_275 = arith.constant 0 : index
    %c0_276 = arith.constant 0 : index
    %482 = vector.load %arg1[%c34, %c0_275, %c0_276] : memref<48x32x8xf32, #tpu.memory_space<vmem>>, vector<1x32x8xf32>
    %483 = vector.shape_cast %482 : vector<1x32x8xf32> to vector<32x8xf32>
    %c22_277 = arith.constant 22 : index
    %c0_278 = arith.constant 0 : index
    %484 = vector.load %arg5[%c22_277, %c0_278] : memref<32x128xf32, #tpu.memory_space<vmem>>, vector<1x8xf32>
    %cst_279 = arith.constant dense<0.000000e+00> : vector<16x8xf32>
    %485 = tpu.matmul %412, %479, %cst_279 {dimension_numbers = #tpu.dot_dimension_numbers<[1], [0], [0], [1], [0, 0, 1, 1], [], []>} : vector<16x32xf32>, vector<32x8xf32>, vector<16x8xf32> -> vector<16x8xf32>
    %486 = vector.broadcast %484 : vector<1x8xf32> to vector<16x8xf32>
    %487 = arith.addf %485, %486 : vector<16x8xf32>
    %cst_280 = arith.constant dense<0.000000e+00> : vector<16x8xf32>
    %488 = tpu.matmul %412, %481, %cst_280 {dimension_numbers = #tpu.dot_dimension_numbers<[1], [0], [0], [1], [0, 0, 1, 1], [], []>} : vector<16x32xf32>, vector<32x8xf32>, vector<16x8xf32> -> vector<16x8xf32>
    %cst_281 = arith.constant dense<0.000000e+00> : vector<16x8xf32>
    %489 = tpu.matmul %412, %483, %cst_281 {dimension_numbers = #tpu.dot_dimension_numbers<[1], [0], [0], [1], [0, 0, 1, 1], [], []>} : vector<16x32xf32>, vector<32x8xf32>, vector<16x8xf32> -> vector<16x8xf32>
    %490 = vector.shape_cast %487 : vector<16x8xf32> to vector<2x8x8xf32>
    %491 = vector.shape_cast %488 : vector<16x8xf32> to vector<2x8x8xf32>
    "tpu.trace_start"() <{level = 10 : i32, message = "bqd,bkd->bqk"}> : () -> ()
    %cst_282 = arith.constant dense<0.000000e+00> : vector<2x8x8xf32>
    %492 = tpu.matmul %490, %491, %cst_282 {dimension_numbers = #tpu.dot_dimension_numbers<[2], [2], [1], [1], [0, 0, 0, 1, 1, 1], [0], [0]>} : vector<2x8x8xf32>, vector<2x8x8xf32>, vector<2x8x8xf32> -> vector<2x8x8xf32>
    "tpu.trace_stop"() : () -> ()
    %493 = arith.addf %492, %1 : vector<2x8x8xf32>
    %cst_283 = arith.constant dense<0xFF800000> : vector<2x8xf32>
    %494 = vector.multi_reduction <maximumf>, %493, %cst_283 [2] : vector<2x8x8xf32> to vector<2x8xf32>
    %495 = vector.shape_cast %494 : vector<2x8xf32> to vector<2x8x1xf32>
    %496 = vector.broadcast %495 : vector<2x8x1xf32> to vector<2x8x8xf32>
    %497 = arith.subf %493, %496 : vector<2x8x8xf32>
    %498 = math.exp %497 : vector<2x8x8xf32>
    %cst_284 = arith.constant dense<0.000000e+00> : vector<2x8xf32>
    %499 = vector.multi_reduction <add>, %498, %cst_284 [2] : vector<2x8x8xf32> to vector<2x8xf32>
    %500 = vector.shape_cast %499 : vector<2x8xf32> to vector<2x8x1xf32>
    %501 = tpu.reciprocal %500 {approx = true} : vector<2x8x1xf32> -> vector<2x8x1xf32>
    %502 = vector.broadcast %501 : vector<2x8x1xf32> to vector<2x8x8xf32>
    %503 = arith.mulf %498, %502 : vector<2x8x8xf32>
    %504 = vector.shape_cast %489 : vector<16x8xf32> to vector<2x8x8xf32>
    "tpu.trace_start"() <{level = 10 : i32, message = "bqk,bkd->bqd"}> : () -> ()
    %cst_285 = arith.constant dense<0.000000e+00> : vector<2x8x8xf32>
    %505 = tpu.matmul %503, %504, %cst_285 {dimension_numbers = #tpu.dot_dimension_numbers<[2], [1], [1], [2], [0, 0, 0, 1, 1, 2], [0], [0]>} : vector<2x8x8xf32>, vector<2x8x8xf32>, vector<2x8x8xf32> -> vector<2x8x8xf32>
    "tpu.trace_stop"() : () -> ()
    %506 = vector.shape_cast %505 : vector<2x8x8xf32> to vector<16x8xf32>
    %c10_286 = arith.constant 10 : index
    %c0_287 = arith.constant 0 : index
    %c0_288 = arith.constant 0 : index
    %507 = vector.load %arg2[%c10_286, %c0_287, %c0_288] : memref<16x8x32xf32, #tpu.memory_space<vmem>>, vector<1x8x32xf32>
    %508 = vector.shape_cast %507 : vector<1x8x32xf32> to vector<8x32xf32>
    %cst_289 = arith.constant dense<0.000000e+00> : vector<16x32xf32>
    %509 = tpu.matmul %506, %508, %cst_289 {dimension_numbers = #tpu.dot_dimension_numbers<[1], [0], [0], [1], [0, 0, 1, 1], [], []>} : vector<16x8xf32>, vector<8x32xf32>, vector<16x32xf32> -> vector<16x32xf32>
    %510 = arith.addf %477, %509 : vector<16x32xf32>
    %c27 = arith.constant 27 : index
    %c0_290 = arith.constant 0 : index
    %c0_291 = arith.constant 0 : index
    %511 = vector.load %arg1[%c27, %c0_290, %c0_291] : memref<48x32x8xf32, #tpu.memory_space<vmem>>, vector<1x32x8xf32>
    %512 = vector.shape_cast %511 : vector<1x32x8xf32> to vector<32x8xf32>
    %c31 = arith.constant 31 : index
    %c0_292 = arith.constant 0 : index
    %c0_293 = arith.constant 0 : index
    %513 = vector.load %arg1[%c31, %c0_292, %c0_293] : memref<48x32x8xf32, #tpu.memory_space<vmem>>, vector<1x32x8xf32>
    %514 = vector.shape_cast %513 : vector<1x32x8xf32> to vector<32x8xf32>
    %c35 = arith.constant 35 : index
    %c0_294 = arith.constant 0 : index
    %c0_295 = arith.constant 0 : index
    %515 = vector.load %arg1[%c35, %c0_294, %c0_295] : memref<48x32x8xf32, #tpu.memory_space<vmem>>, vector<1x32x8xf32>
    %516 = vector.shape_cast %515 : vector<1x32x8xf32> to vector<32x8xf32>
    %c23_296 = arith.constant 23 : index
    %c0_297 = arith.constant 0 : index
    %517 = vector.load %arg5[%c23_296, %c0_297] : memref<32x128xf32, #tpu.memory_space<vmem>>, vector<1x8xf32>
    %cst_298 = arith.constant dense<0.000000e+00> : vector<16x8xf32>
    %518 = tpu.matmul %412, %512, %cst_298 {dimension_numbers = #tpu.dot_dimension_numbers<[1], [0], [0], [1], [0, 0, 1, 1], [], []>} : vector<16x32xf32>, vector<32x8xf32>, vector<16x8xf32> -> vector<16x8xf32>
    %519 = vector.broadcast %517 : vector<1x8xf32> to vector<16x8xf32>
    %520 = arith.addf %518, %519 : vector<16x8xf32>
    %cst_299 = arith.constant dense<0.000000e+00> : vector<16x8xf32>
    %521 = tpu.matmul %412, %514, %cst_299 {dimension_numbers = #tpu.dot_dimension_numbers<[1], [0], [0], [1], [0, 0, 1, 1], [], []>} : vector<16x32xf32>, vector<32x8xf32>, vector<16x8xf32> -> vector<16x8xf32>
    %cst_300 = arith.constant dense<0.000000e+00> : vector<16x8xf32>
    %522 = tpu.matmul %412, %516, %cst_300 {dimension_numbers = #tpu.dot_dimension_numbers<[1], [0], [0], [1], [0, 0, 1, 1], [], []>} : vector<16x32xf32>, vector<32x8xf32>, vector<16x8xf32> -> vector<16x8xf32>
    %523 = vector.shape_cast %520 : vector<16x8xf32> to vector<2x8x8xf32>
    %524 = vector.shape_cast %521 : vector<16x8xf32> to vector<2x8x8xf32>
    "tpu.trace_start"() <{level = 10 : i32, message = "bqd,bkd->bqk"}> : () -> ()
    %cst_301 = arith.constant dense<0.000000e+00> : vector<2x8x8xf32>
    %525 = tpu.matmul %523, %524, %cst_301 {dimension_numbers = #tpu.dot_dimension_numbers<[2], [2], [1], [1], [0, 0, 0, 1, 1, 1], [0], [0]>} : vector<2x8x8xf32>, vector<2x8x8xf32>, vector<2x8x8xf32> -> vector<2x8x8xf32>
    "tpu.trace_stop"() : () -> ()
    %526 = arith.addf %525, %1 : vector<2x8x8xf32>
    %cst_302 = arith.constant dense<0xFF800000> : vector<2x8xf32>
    %527 = vector.multi_reduction <maximumf>, %526, %cst_302 [2] : vector<2x8x8xf32> to vector<2x8xf32>
    %528 = vector.shape_cast %527 : vector<2x8xf32> to vector<2x8x1xf32>
    %529 = vector.broadcast %528 : vector<2x8x1xf32> to vector<2x8x8xf32>
    %530 = arith.subf %526, %529 : vector<2x8x8xf32>
    %531 = math.exp %530 : vector<2x8x8xf32>
    %cst_303 = arith.constant dense<0.000000e+00> : vector<2x8xf32>
    %532 = vector.multi_reduction <add>, %531, %cst_303 [2] : vector<2x8x8xf32> to vector<2x8xf32>
    %533 = vector.shape_cast %532 : vector<2x8xf32> to vector<2x8x1xf32>
    %534 = tpu.reciprocal %533 {approx = true} : vector<2x8x1xf32> -> vector<2x8x1xf32>
    %535 = vector.broadcast %534 : vector<2x8x1xf32> to vector<2x8x8xf32>
    %536 = arith.mulf %531, %535 : vector<2x8x8xf32>
    %537 = vector.shape_cast %522 : vector<16x8xf32> to vector<2x8x8xf32>
    "tpu.trace_start"() <{level = 10 : i32, message = "bqk,bkd->bqd"}> : () -> ()
    %cst_304 = arith.constant dense<0.000000e+00> : vector<2x8x8xf32>
    %538 = tpu.matmul %536, %537, %cst_304 {dimension_numbers = #tpu.dot_dimension_numbers<[2], [1], [1], [2], [0, 0, 0, 1, 1, 2], [0], [0]>} : vector<2x8x8xf32>, vector<2x8x8xf32>, vector<2x8x8xf32> -> vector<2x8x8xf32>
    "tpu.trace_stop"() : () -> ()
    %539 = vector.shape_cast %538 : vector<2x8x8xf32> to vector<16x8xf32>
    %c11_305 = arith.constant 11 : index
    %c0_306 = arith.constant 0 : index
    %c0_307 = arith.constant 0 : index
    %540 = vector.load %arg2[%c11_305, %c0_306, %c0_307] : memref<16x8x32xf32, #tpu.memory_space<vmem>>, vector<1x8x32xf32>
    %541 = vector.shape_cast %540 : vector<1x8x32xf32> to vector<8x32xf32>
    %cst_308 = arith.constant dense<0.000000e+00> : vector<16x32xf32>
    %542 = tpu.matmul %539, %541, %cst_308 {dimension_numbers = #tpu.dot_dimension_numbers<[1], [0], [0], [1], [0, 0, 1, 1], [], []>} : vector<16x8xf32>, vector<8x32xf32>, vector<16x32xf32> -> vector<16x32xf32>
    %543 = arith.addf %510, %542 : vector<16x32xf32>
    %544 = arith.addf %389, %543 : vector<16x32xf32>
    %c7_309 = arith.constant 7 : index
    %c0_310 = arith.constant 0 : index
    %545 = vector.load %arg5[%c7_309, %c0_310] : memref<32x128xf32, #tpu.memory_space<vmem>>, vector<1x32xf32>
    %546 = vector.broadcast %545 : vector<1x32xf32> to vector<16x32xf32>
    %547 = arith.addf %544, %546 : vector<16x32xf32>
    %cst_311 = arith.constant dense<0.000000e+00> : vector<16xf32>
    %548 = vector.multi_reduction <add>, %547, %cst_311 [1] : vector<16x32xf32> to vector<16xf32>
    %549 = vector.shape_cast %548 : vector<16xf32> to vector<16x1xf32>
    %cst_312 = arith.constant 3.200000e+01 : f32
    %550 = vector.broadcast %cst_312 : f32 to vector<16x1xf32>
    %551 = arith.divf %549, %550 : vector<16x1xf32>
    %552 = arith.mulf %547, %547 : vector<16x32xf32>
    %cst_313 = arith.constant dense<0.000000e+00> : vector<16xf32>
    %553 = vector.multi_reduction <add>, %552, %cst_313 [1] : vector<16x32xf32> to vector<16xf32>
    %554 = vector.shape_cast %553 : vector<16xf32> to vector<16x1xf32>
    %cst_314 = arith.constant 3.200000e+01 : f32
    %555 = vector.broadcast %cst_314 : f32 to vector<16x1xf32>
    %556 = arith.divf %554, %555 : vector<16x1xf32>
    %557 = arith.mulf %551, %551 : vector<16x1xf32>
    %558 = arith.subf %556, %557 : vector<16x1xf32>
    %cst_315 = arith.constant 9.99999974E-6 : f32
    %559 = vector.broadcast %cst_315 : f32 to vector<16x1xf32>
    %560 = arith.addf %558, %559 : vector<16x1xf32>
    %561 = math.rsqrt %560 : vector<16x1xf32>
    %c128 = arith.constant 128 : index
    %c0_316 = arith.constant 0 : index
    %562 = vector.load %arg0[%c128, %c0_316] : memref<288x32xf32, #tpu.memory_space<vmem>>, vector<16x32xf32>
    %c240 = arith.constant 240 : index
    %c0_317 = arith.constant 0 : index
    %563 = vector.load %arg0[%c240, %c0_317] : memref<288x32xf32, #tpu.memory_space<vmem>>, vector<16x32xf32>
    %564 = vector.broadcast %561 : vector<16x1xf32> to vector<16x32xf32>
    %565 = arith.mulf %562, %564 : vector<16x32xf32>
    %566 = arith.mulf %547, %565 : vector<16x32xf32>
    %567 = vector.broadcast %551 : vector<16x1xf32> to vector<16x32xf32>
    %568 = arith.mulf %567, %565 : vector<16x32xf32>
    %569 = arith.subf %563, %568 : vector<16x32xf32>
    %570 = arith.addf %566, %569 : vector<16x32xf32>
    %c36 = arith.constant 36 : index
    %c0_318 = arith.constant 0 : index
    %c0_319 = arith.constant 0 : index
    %571 = vector.load %arg1[%c36, %c0_318, %c0_319] : memref<48x32x8xf32, #tpu.memory_space<vmem>>, vector<1x32x8xf32>
    %572 = vector.shape_cast %571 : vector<1x32x8xf32> to vector<32x8xf32>
    %c40 = arith.constant 40 : index
    %c0_320 = arith.constant 0 : index
    %c0_321 = arith.constant 0 : index
    %573 = vector.load %arg1[%c40, %c0_320, %c0_321] : memref<48x32x8xf32, #tpu.memory_space<vmem>>, vector<1x32x8xf32>
    %574 = vector.shape_cast %573 : vector<1x32x8xf32> to vector<32x8xf32>
    %c44 = arith.constant 44 : index
    %c0_322 = arith.constant 0 : index
    %c0_323 = arith.constant 0 : index
    %575 = vector.load %arg1[%c44, %c0_322, %c0_323] : memref<48x32x8xf32, #tpu.memory_space<vmem>>, vector<1x32x8xf32>
    %576 = vector.shape_cast %575 : vector<1x32x8xf32> to vector<32x8xf32>
    %c24_324 = arith.constant 24 : index
    %c0_325 = arith.constant 0 : index
    %577 = vector.load %arg5[%c24_324, %c0_325] : memref<32x128xf32, #tpu.memory_space<vmem>>, vector<1x8xf32>
    %cst_326 = arith.constant dense<0.000000e+00> : vector<16x8xf32>
    %578 = tpu.matmul %570, %572, %cst_326 {dimension_numbers = #tpu.dot_dimension_numbers<[1], [0], [0], [1], [0, 0, 1, 1], [], []>} : vector<16x32xf32>, vector<32x8xf32>, vector<16x8xf32> -> vector<16x8xf32>
    %579 = vector.broadcast %577 : vector<1x8xf32> to vector<16x8xf32>
    %580 = arith.addf %578, %579 : vector<16x8xf32>
    %cst_327 = arith.constant dense<0.000000e+00> : vector<16x8xf32>
    %581 = tpu.matmul %12, %574, %cst_327 {dimension_numbers = #tpu.dot_dimension_numbers<[1], [0], [0], [1], [0, 0, 1, 1], [], []>} : vector<16x32xf32>, vector<32x8xf32>, vector<16x8xf32> -> vector<16x8xf32>
    %cst_328 = arith.constant dense<0.000000e+00> : vector<16x8xf32>
    %582 = tpu.matmul %12, %576, %cst_328 {dimension_numbers = #tpu.dot_dimension_numbers<[1], [0], [0], [1], [0, 0, 1, 1], [], []>} : vector<16x32xf32>, vector<32x8xf32>, vector<16x8xf32> -> vector<16x8xf32>
    %583 = vector.shape_cast %580 : vector<16x8xf32> to vector<2x8x8xf32>
    %584 = vector.shape_cast %581 : vector<16x8xf32> to vector<2x8x8xf32>
    "tpu.trace_start"() <{level = 10 : i32, message = "bqd,bkd->bqk"}> : () -> ()
    %cst_329 = arith.constant dense<0.000000e+00> : vector<2x8x8xf32>
    %585 = tpu.matmul %583, %584, %cst_329 {dimension_numbers = #tpu.dot_dimension_numbers<[2], [2], [1], [1], [0, 0, 0, 1, 1, 1], [0], [0]>} : vector<2x8x8xf32>, vector<2x8x8xf32>, vector<2x8x8xf32> -> vector<2x8x8xf32>
    "tpu.trace_stop"() : () -> ()
    %586 = arith.addf %585, %1 : vector<2x8x8xf32>
    %cst_330 = arith.constant dense<0xFF800000> : vector<2x8xf32>
    %587 = vector.multi_reduction <maximumf>, %586, %cst_330 [2] : vector<2x8x8xf32> to vector<2x8xf32>
    %588 = vector.shape_cast %587 : vector<2x8xf32> to vector<2x8x1xf32>
    %589 = vector.broadcast %588 : vector<2x8x1xf32> to vector<2x8x8xf32>
    %590 = arith.subf %586, %589 : vector<2x8x8xf32>
    %591 = math.exp %590 : vector<2x8x8xf32>
    %cst_331 = arith.constant dense<0.000000e+00> : vector<2x8xf32>
    %592 = vector.multi_reduction <add>, %591, %cst_331 [2] : vector<2x8x8xf32> to vector<2x8xf32>
    %593 = vector.shape_cast %592 : vector<2x8xf32> to vector<2x8x1xf32>
    %594 = tpu.reciprocal %593 {approx = true} : vector<2x8x1xf32> -> vector<2x8x1xf32>
    %595 = vector.broadcast %594 : vector<2x8x1xf32> to vector<2x8x8xf32>
    %596 = arith.mulf %591, %595 : vector<2x8x8xf32>
    %c4_332 = arith.constant 4 : index
    %c0_333 = arith.constant 0 : index
    %c0_334 = arith.constant 0 : index
    %c0_335 = arith.constant 0 : index
    %597 = vector.load %arg7[%c4_332, %c0_333, %c0_334, %c0_335] : memref<8x2x8x8xf32, #tpu.memory_space<vmem>>, vector<1x2x8x8xf32>
    %598 = vector.shape_cast %597 : vector<1x2x8x8xf32> to vector<2x8x8xf32>
    %599 = vector.shape_cast %596 : vector<2x8x8xf32> to vector<1x2x8x8xf32>
    tpu.vector_store %arg7[%c4_332, %c0_333, %c0_334, %c0_335], %599 {strides = array<i32>} : memref<8x2x8x8xf32, #tpu.memory_space<vmem>>, vector<1x2x8x8xf32>,
    %600 = vector.shape_cast %582 : vector<16x8xf32> to vector<2x8x8xf32>
    "tpu.trace_start"() <{level = 10 : i32, message = "bqk,bkd->bqd"}> : () -> ()
    %cst_336 = arith.constant dense<0.000000e+00> : vector<2x8x8xf32>
    %601 = tpu.matmul %596, %600, %cst_336 {dimension_numbers = #tpu.dot_dimension_numbers<[2], [1], [1], [2], [0, 0, 0, 1, 1, 2], [0], [0]>} : vector<2x8x8xf32>, vector<2x8x8xf32>, vector<2x8x8xf32> -> vector<2x8x8xf32>
    "tpu.trace_stop"() : () -> ()
    %602 = vector.shape_cast %601 : vector<2x8x8xf32> to vector<16x8xf32>
    %c12_337 = arith.constant 12 : index
    %c0_338 = arith.constant 0 : index
    %c0_339 = arith.constant 0 : index
    %603 = vector.load %arg2[%c12_337, %c0_338, %c0_339] : memref<16x8x32xf32, #tpu.memory_space<vmem>>, vector<1x8x32xf32>
    %604 = vector.shape_cast %603 : vector<1x8x32xf32> to vector<8x32xf32>
    %cst_340 = arith.constant dense<0.000000e+00> : vector<16x32xf32>
    %605 = tpu.matmul %602, %604, %cst_340 {dimension_numbers = #tpu.dot_dimension_numbers<[1], [0], [0], [1], [0, 0, 1, 1], [], []>} : vector<16x8xf32>, vector<8x32xf32>, vector<16x32xf32> -> vector<16x32xf32>
    %c37 = arith.constant 37 : index
    %c0_341 = arith.constant 0 : index
    %c0_342 = arith.constant 0 : index
    %606 = vector.load %arg1[%c37, %c0_341, %c0_342] : memref<48x32x8xf32, #tpu.memory_space<vmem>>, vector<1x32x8xf32>
    %607 = vector.shape_cast %606 : vector<1x32x8xf32> to vector<32x8xf32>
    %c41 = arith.constant 41 : index
    %c0_343 = arith.constant 0 : index
    %c0_344 = arith.constant 0 : index
    %608 = vector.load %arg1[%c41, %c0_343, %c0_344] : memref<48x32x8xf32, #tpu.memory_space<vmem>>, vector<1x32x8xf32>
    %609 = vector.shape_cast %608 : vector<1x32x8xf32> to vector<32x8xf32>
    %c45 = arith.constant 45 : index
    %c0_345 = arith.constant 0 : index
    %c0_346 = arith.constant 0 : index
    %610 = vector.load %arg1[%c45, %c0_345, %c0_346] : memref<48x32x8xf32, #tpu.memory_space<vmem>>, vector<1x32x8xf32>
    %611 = vector.shape_cast %610 : vector<1x32x8xf32> to vector<32x8xf32>
    %c25_347 = arith.constant 25 : index
    %c0_348 = arith.constant 0 : index
    %612 = vector.load %arg5[%c25_347, %c0_348] : memref<32x128xf32, #tpu.memory_space<vmem>>, vector<1x8xf32>
    %cst_349 = arith.constant dense<0.000000e+00> : vector<16x8xf32>
    %613 = tpu.matmul %570, %607, %cst_349 {dimension_numbers = #tpu.dot_dimension_numbers<[1], [0], [0], [1], [0, 0, 1, 1], [], []>} : vector<16x32xf32>, vector<32x8xf32>, vector<16x8xf32> -> vector<16x8xf32>
    %614 = vector.broadcast %612 : vector<1x8xf32> to vector<16x8xf32>
    %615 = arith.addf %613, %614 : vector<16x8xf32>
    %cst_350 = arith.constant dense<0.000000e+00> : vector<16x8xf32>
    %616 = tpu.matmul %12, %609, %cst_350 {dimension_numbers = #tpu.dot_dimension_numbers<[1], [0], [0], [1], [0, 0, 1, 1], [], []>} : vector<16x32xf32>, vector<32x8xf32>, vector<16x8xf32> -> vector<16x8xf32>
    %cst_351 = arith.constant dense<0.000000e+00> : vector<16x8xf32>
    %617 = tpu.matmul %12, %611, %cst_351 {dimension_numbers = #tpu.dot_dimension_numbers<[1], [0], [0], [1], [0, 0, 1, 1], [], []>} : vector<16x32xf32>, vector<32x8xf32>, vector<16x8xf32> -> vector<16x8xf32>
    %618 = vector.shape_cast %615 : vector<16x8xf32> to vector<2x8x8xf32>
    %619 = vector.shape_cast %616 : vector<16x8xf32> to vector<2x8x8xf32>
    "tpu.trace_start"() <{level = 10 : i32, message = "bqd,bkd->bqk"}> : () -> ()
    %cst_352 = arith.constant dense<0.000000e+00> : vector<2x8x8xf32>
    %620 = tpu.matmul %618, %619, %cst_352 {dimension_numbers = #tpu.dot_dimension_numbers<[2], [2], [1], [1], [0, 0, 0, 1, 1, 1], [0], [0]>} : vector<2x8x8xf32>, vector<2x8x8xf32>, vector<2x8x8xf32> -> vector<2x8x8xf32>
    "tpu.trace_stop"() : () -> ()
    %621 = arith.addf %620, %1 : vector<2x8x8xf32>
    %cst_353 = arith.constant dense<0xFF800000> : vector<2x8xf32>
    %622 = vector.multi_reduction <maximumf>, %621, %cst_353 [2] : vector<2x8x8xf32> to vector<2x8xf32>
    %623 = vector.shape_cast %622 : vector<2x8xf32> to vector<2x8x1xf32>
    %624 = vector.broadcast %623 : vector<2x8x1xf32> to vector<2x8x8xf32>
    %625 = arith.subf %621, %624 : vector<2x8x8xf32>
    %626 = math.exp %625 : vector<2x8x8xf32>
    %cst_354 = arith.constant dense<0.000000e+00> : vector<2x8xf32>
    %627 = vector.multi_reduction <add>, %626, %cst_354 [2] : vector<2x8x8xf32> to vector<2x8xf32>
    %628 = vector.shape_cast %627 : vector<2x8xf32> to vector<2x8x1xf32>
    %629 = tpu.reciprocal %628 {approx = true} : vector<2x8x1xf32> -> vector<2x8x1xf32>
    %630 = vector.broadcast %629 : vector<2x8x1xf32> to vector<2x8x8xf32>
    %631 = arith.mulf %626, %630 : vector<2x8x8xf32>
    %c5_355 = arith.constant 5 : index
    %c0_356 = arith.constant 0 : index
    %c0_357 = arith.constant 0 : index
    %c0_358 = arith.constant 0 : index
    %632 = vector.load %arg7[%c5_355, %c0_356, %c0_357, %c0_358] : memref<8x2x8x8xf32, #tpu.memory_space<vmem>>, vector<1x2x8x8xf32>
    %633 = vector.shape_cast %632 : vector<1x2x8x8xf32> to vector<2x8x8xf32>
    %634 = vector.shape_cast %631 : vector<2x8x8xf32> to vector<1x2x8x8xf32>
    tpu.vector_store %arg7[%c5_355, %c0_356, %c0_357, %c0_358], %634 {strides = array<i32>} : memref<8x2x8x8xf32, #tpu.memory_space<vmem>>, vector<1x2x8x8xf32>,
    %635 = vector.shape_cast %617 : vector<16x8xf32> to vector<2x8x8xf32>
    "tpu.trace_start"() <{level = 10 : i32, message = "bqk,bkd->bqd"}> : () -> ()
    %cst_359 = arith.constant dense<0.000000e+00> : vector<2x8x8xf32>
    %636 = tpu.matmul %631, %635, %cst_359 {dimension_numbers = #tpu.dot_dimension_numbers<[2], [1], [1], [2], [0, 0, 0, 1, 1, 2], [0], [0]>} : vector<2x8x8xf32>, vector<2x8x8xf32>, vector<2x8x8xf32> -> vector<2x8x8xf32>
    "tpu.trace_stop"() : () -> ()
    %637 = vector.shape_cast %636 : vector<2x8x8xf32> to vector<16x8xf32>
    %c13_360 = arith.constant 13 : index
    %c0_361 = arith.constant 0 : index
    %c0_362 = arith.constant 0 : index
    %638 = vector.load %arg2[%c13_360, %c0_361, %c0_362] : memref<16x8x32xf32, #tpu.memory_space<vmem>>, vector<1x8x32xf32>
    %639 = vector.shape_cast %638 : vector<1x8x32xf32> to vector<8x32xf32>
    %cst_363 = arith.constant dense<0.000000e+00> : vector<16x32xf32>
    %640 = tpu.matmul %637, %639, %cst_363 {dimension_numbers = #tpu.dot_dimension_numbers<[1], [0], [0], [1], [0, 0, 1, 1], [], []>} : vector<16x8xf32>, vector<8x32xf32>, vector<16x32xf32> -> vector<16x32xf32>
    %641 = arith.addf %605, %640 : vector<16x32xf32>
    %c38 = arith.constant 38 : index
    %c0_364 = arith.constant 0 : index
    %c0_365 = arith.constant 0 : index
    %642 = vector.load %arg1[%c38, %c0_364, %c0_365] : memref<48x32x8xf32, #tpu.memory_space<vmem>>, vector<1x32x8xf32>
    %643 = vector.shape_cast %642 : vector<1x32x8xf32> to vector<32x8xf32>
    %c42 = arith.constant 42 : index
    %c0_366 = arith.constant 0 : index
    %c0_367 = arith.constant 0 : index
    %644 = vector.load %arg1[%c42, %c0_366, %c0_367] : memref<48x32x8xf32, #tpu.memory_space<vmem>>, vector<1x32x8xf32>
    %645 = vector.shape_cast %644 : vector<1x32x8xf32> to vector<32x8xf32>
    %c46 = arith.constant 46 : index
    %c0_368 = arith.constant 0 : index
    %c0_369 = arith.constant 0 : index
    %646 = vector.load %arg1[%c46, %c0_368, %c0_369] : memref<48x32x8xf32, #tpu.memory_space<vmem>>, vector<1x32x8xf32>
    %647 = vector.shape_cast %646 : vector<1x32x8xf32> to vector<32x8xf32>
    %c26_370 = arith.constant 26 : index
    %c0_371 = arith.constant 0 : index
    %648 = vector.load %arg5[%c26_370, %c0_371] : memref<32x128xf32, #tpu.memory_space<vmem>>, vector<1x8xf32>
    %cst_372 = arith.constant dense<0.000000e+00> : vector<16x8xf32>
    %649 = tpu.matmul %570, %643, %cst_372 {dimension_numbers = #tpu.dot_dimension_numbers<[1], [0], [0], [1], [0, 0, 1, 1], [], []>} : vector<16x32xf32>, vector<32x8xf32>, vector<16x8xf32> -> vector<16x8xf32>
    %650 = vector.broadcast %648 : vector<1x8xf32> to vector<16x8xf32>
    %651 = arith.addf %649, %650 : vector<16x8xf32>
    %cst_373 = arith.constant dense<0.000000e+00> : vector<16x8xf32>
    %652 = tpu.matmul %12, %645, %cst_373 {dimension_numbers = #tpu.dot_dimension_numbers<[1], [0], [0], [1], [0, 0, 1, 1], [], []>} : vector<16x32xf32>, vector<32x8xf32>, vector<16x8xf32> -> vector<16x8xf32>
    %cst_374 = arith.constant dense<0.000000e+00> : vector<16x8xf32>
    %653 = tpu.matmul %12, %647, %cst_374 {dimension_numbers = #tpu.dot_dimension_numbers<[1], [0], [0], [1], [0, 0, 1, 1], [], []>} : vector<16x32xf32>, vector<32x8xf32>, vector<16x8xf32> -> vector<16x8xf32>
    %654 = vector.shape_cast %651 : vector<16x8xf32> to vector<2x8x8xf32>
    %655 = vector.shape_cast %652 : vector<16x8xf32> to vector<2x8x8xf32>
    "tpu.trace_start"() <{level = 10 : i32, message = "bqd,bkd->bqk"}> : () -> ()
    %cst_375 = arith.constant dense<0.000000e+00> : vector<2x8x8xf32>
    %656 = tpu.matmul %654, %655, %cst_375 {dimension_numbers = #tpu.dot_dimension_numbers<[2], [2], [1], [1], [0, 0, 0, 1, 1, 1], [0], [0]>} : vector<2x8x8xf32>, vector<2x8x8xf32>, vector<2x8x8xf32> -> vector<2x8x8xf32>
    "tpu.trace_stop"() : () -> ()
    %657 = arith.addf %656, %1 : vector<2x8x8xf32>
    %cst_376 = arith.constant dense<0xFF800000> : vector<2x8xf32>
    %658 = vector.multi_reduction <maximumf>, %657, %cst_376 [2] : vector<2x8x8xf32> to vector<2x8xf32>
    %659 = vector.shape_cast %658 : vector<2x8xf32> to vector<2x8x1xf32>
    %660 = vector.broadcast %659 : vector<2x8x1xf32> to vector<2x8x8xf32>
    %661 = arith.subf %657, %660 : vector<2x8x8xf32>
    %662 = math.exp %661 : vector<2x8x8xf32>
    %cst_377 = arith.constant dense<0.000000e+00> : vector<2x8xf32>
    %663 = vector.multi_reduction <add>, %662, %cst_377 [2] : vector<2x8x8xf32> to vector<2x8xf32>
    %664 = vector.shape_cast %663 : vector<2x8xf32> to vector<2x8x1xf32>
    %665 = tpu.reciprocal %664 {approx = true} : vector<2x8x1xf32> -> vector<2x8x1xf32>
    %666 = vector.broadcast %665 : vector<2x8x1xf32> to vector<2x8x8xf32>
    %667 = arith.mulf %662, %666 : vector<2x8x8xf32>
    %c6_378 = arith.constant 6 : index
    %c0_379 = arith.constant 0 : index
    %c0_380 = arith.constant 0 : index
    %c0_381 = arith.constant 0 : index
    %668 = vector.load %arg7[%c6_378, %c0_379, %c0_380, %c0_381] : memref<8x2x8x8xf32, #tpu.memory_space<vmem>>, vector<1x2x8x8xf32>
    %669 = vector.shape_cast %668 : vector<1x2x8x8xf32> to vector<2x8x8xf32>
    %670 = vector.shape_cast %667 : vector<2x8x8xf32> to vector<1x2x8x8xf32>
    tpu.vector_store %arg7[%c6_378, %c0_379, %c0_380, %c0_381], %670 {strides = array<i32>} : memref<8x2x8x8xf32, #tpu.memory_space<vmem>>, vector<1x2x8x8xf32>,
    %671 = vector.shape_cast %653 : vector<16x8xf32> to vector<2x8x8xf32>
    "tpu.trace_start"() <{level = 10 : i32, message = "bqk,bkd->bqd"}> : () -> ()
    %cst_382 = arith.constant dense<0.000000e+00> : vector<2x8x8xf32>
    %672 = tpu.matmul %667, %671, %cst_382 {dimension_numbers = #tpu.dot_dimension_numbers<[2], [1], [1], [2], [0, 0, 0, 1, 1, 2], [0], [0]>} : vector<2x8x8xf32>, vector<2x8x8xf32>, vector<2x8x8xf32> -> vector<2x8x8xf32>
    "tpu.trace_stop"() : () -> ()
    %673 = vector.shape_cast %672 : vector<2x8x8xf32> to vector<16x8xf32>
    %c14_383 = arith.constant 14 : index
    %c0_384 = arith.constant 0 : index
    %c0_385 = arith.constant 0 : index
    %674 = vector.load %arg2[%c14_383, %c0_384, %c0_385] : memref<16x8x32xf32, #tpu.memory_space<vmem>>, vector<1x8x32xf32>
    %675 = vector.shape_cast %674 : vector<1x8x32xf32> to vector<8x32xf32>
    %cst_386 = arith.constant dense<0.000000e+00> : vector<16x32xf32>
    %676 = tpu.matmul %673, %675, %cst_386 {dimension_numbers = #tpu.dot_dimension_numbers<[1], [0], [0], [1], [0, 0, 1, 1], [], []>} : vector<16x8xf32>, vector<8x32xf32>, vector<16x32xf32> -> vector<16x32xf32>
    %677 = arith.addf %641, %676 : vector<16x32xf32>
    %c39 = arith.constant 39 : index
    %c0_387 = arith.constant 0 : index
    %c0_388 = arith.constant 0 : index
    %678 = vector.load %arg1[%c39, %c0_387, %c0_388] : memref<48x32x8xf32, #tpu.memory_space<vmem>>, vector<1x32x8xf32>
    %679 = vector.shape_cast %678 : vector<1x32x8xf32> to vector<32x8xf32>
    %c43 = arith.constant 43 : index
    %c0_389 = arith.constant 0 : index
    %c0_390 = arith.constant 0 : index
    %680 = vector.load %arg1[%c43, %c0_389, %c0_390] : memref<48x32x8xf32, #tpu.memory_space<vmem>>, vector<1x32x8xf32>
    %681 = vector.shape_cast %680 : vector<1x32x8xf32> to vector<32x8xf32>
    %c47 = arith.constant 47 : index
    %c0_391 = arith.constant 0 : index
    %c0_392 = arith.constant 0 : index
    %682 = vector.load %arg1[%c47, %c0_391, %c0_392] : memref<48x32x8xf32, #tpu.memory_space<vmem>>, vector<1x32x8xf32>
    %683 = vector.shape_cast %682 : vector<1x32x8xf32> to vector<32x8xf32>
    %c27_393 = arith.constant 27 : index
    %c0_394 = arith.constant 0 : index
    %684 = vector.load %arg5[%c27_393, %c0_394] : memref<32x128xf32, #tpu.memory_space<vmem>>, vector<1x8xf32>
    %cst_395 = arith.constant dense<0.000000e+00> : vector<16x8xf32>
    %685 = tpu.matmul %570, %679, %cst_395 {dimension_numbers = #tpu.dot_dimension_numbers<[1], [0], [0], [1], [0, 0, 1, 1], [], []>} : vector<16x32xf32>, vector<32x8xf32>, vector<16x8xf32> -> vector<16x8xf32>
    %686 = vector.broadcast %684 : vector<1x8xf32> to vector<16x8xf32>
    %687 = arith.addf %685, %686 : vector<16x8xf32>
    %cst_396 = arith.constant dense<0.000000e+00> : vector<16x8xf32>
    %688 = tpu.matmul %12, %681, %cst_396 {dimension_numbers = #tpu.dot_dimension_numbers<[1], [0], [0], [1], [0, 0, 1, 1], [], []>} : vector<16x32xf32>, vector<32x8xf32>, vector<16x8xf32> -> vector<16x8xf32>
    %cst_397 = arith.constant dense<0.000000e+00> : vector<16x8xf32>
    %689 = tpu.matmul %12, %683, %cst_397 {dimension_numbers = #tpu.dot_dimension_numbers<[1], [0], [0], [1], [0, 0, 1, 1], [], []>} : vector<16x32xf32>, vector<32x8xf32>, vector<16x8xf32> -> vector<16x8xf32>
    %690 = vector.shape_cast %687 : vector<16x8xf32> to vector<2x8x8xf32>
    %691 = vector.shape_cast %688 : vector<16x8xf32> to vector<2x8x8xf32>
    "tpu.trace_start"() <{level = 10 : i32, message = "bqd,bkd->bqk"}> : () -> ()
    %cst_398 = arith.constant dense<0.000000e+00> : vector<2x8x8xf32>
    %692 = tpu.matmul %690, %691, %cst_398 {dimension_numbers = #tpu.dot_dimension_numbers<[2], [2], [1], [1], [0, 0, 0, 1, 1, 1], [0], [0]>} : vector<2x8x8xf32>, vector<2x8x8xf32>, vector<2x8x8xf32> -> vector<2x8x8xf32>
    "tpu.trace_stop"() : () -> ()
    %693 = arith.addf %692, %1 : vector<2x8x8xf32>
    %cst_399 = arith.constant dense<0xFF800000> : vector<2x8xf32>
    %694 = vector.multi_reduction <maximumf>, %693, %cst_399 [2] : vector<2x8x8xf32> to vector<2x8xf32>
    %695 = vector.shape_cast %694 : vector<2x8xf32> to vector<2x8x1xf32>
    %696 = vector.broadcast %695 : vector<2x8x1xf32> to vector<2x8x8xf32>
    %697 = arith.subf %693, %696 : vector<2x8x8xf32>
    %698 = math.exp %697 : vector<2x8x8xf32>
    %cst_400 = arith.constant dense<0.000000e+00> : vector<2x8xf32>
    %699 = vector.multi_reduction <add>, %698, %cst_400 [2] : vector<2x8x8xf32> to vector<2x8xf32>
    %700 = vector.shape_cast %699 : vector<2x8xf32> to vector<2x8x1xf32>
    %701 = tpu.reciprocal %700 {approx = true} : vector<2x8x1xf32> -> vector<2x8x1xf32>
    %702 = vector.broadcast %701 : vector<2x8x1xf32> to vector<2x8x8xf32>
    %703 = arith.mulf %698, %702 : vector<2x8x8xf32>
    %c7_401 = arith.constant 7 : index
    %c0_402 = arith.constant 0 : index
    %c0_403 = arith.constant 0 : index
    %c0_404 = arith.constant 0 : index
    %704 = vector.load %arg7[%c7_401, %c0_402, %c0_403, %c0_404] : memref<8x2x8x8xf32, #tpu.memory_space<vmem>>, vector<1x2x8x8xf32>
    %705 = vector.shape_cast %704 : vector<1x2x8x8xf32> to vector<2x8x8xf32>
    %706 = vector.shape_cast %703 : vector<2x8x8xf32> to vector<1x2x8x8xf32>
    tpu.vector_store %arg7[%c7_401, %c0_402, %c0_403, %c0_404], %706 {strides = array<i32>} : memref<8x2x8x8xf32, #tpu.memory_space<vmem>>, vector<1x2x8x8xf32>,
    %707 = vector.shape_cast %689 : vector<16x8xf32> to vector<2x8x8xf32>
    "tpu.trace_start"() <{level = 10 : i32, message = "bqk,bkd->bqd"}> : () -> ()
    %cst_405 = arith.constant dense<0.000000e+00> : vector<2x8x8xf32>
    %708 = tpu.matmul %703, %707, %cst_405 {dimension_numbers = #tpu.dot_dimension_numbers<[2], [1], [1], [2], [0, 0, 0, 1, 1, 2], [0], [0]>} : vector<2x8x8xf32>, vector<2x8x8xf32>, vector<2x8x8xf32> -> vector<2x8x8xf32>
    "tpu.trace_stop"() : () -> ()
    %709 = vector.shape_cast %708 : vector<2x8x8xf32> to vector<16x8xf32>
    %c15_406 = arith.constant 15 : index
    %c0_407 = arith.constant 0 : index
    %c0_408 = arith.constant 0 : index
    %710 = vector.load %arg2[%c15_406, %c0_407, %c0_408] : memref<16x8x32xf32, #tpu.memory_space<vmem>>, vector<1x8x32xf32>
    %711 = vector.shape_cast %710 : vector<1x8x32xf32> to vector<8x32xf32>
    %cst_409 = arith.constant dense<0.000000e+00> : vector<16x32xf32>
    %712 = tpu.matmul %709, %711, %cst_409 {dimension_numbers = #tpu.dot_dimension_numbers<[1], [0], [0], [1], [0, 0, 1, 1], [], []>} : vector<16x8xf32>, vector<8x32xf32>, vector<16x32xf32> -> vector<16x32xf32>
    %713 = arith.addf %677, %712 : vector<16x32xf32>
    %714 = arith.addf %547, %713 : vector<16x32xf32>
    %c8_410 = arith.constant 8 : index
    %c0_411 = arith.constant 0 : index
    %715 = vector.load %arg5[%c8_410, %c0_411] : memref<32x128xf32, #tpu.memory_space<vmem>>, vector<1x32xf32>
    %716 = vector.broadcast %715 : vector<1x32xf32> to vector<16x32xf32>
    %717 = arith.addf %714, %716 : vector<16x32xf32>
    %cst_412 = arith.constant dense<0.000000e+00> : vector<16xf32>
    %718 = vector.multi_reduction <add>, %717, %cst_412 [1] : vector<16x32xf32> to vector<16xf32>
    %719 = vector.shape_cast %718 : vector<16xf32> to vector<16x1xf32>
    %cst_413 = arith.constant 3.200000e+01 : f32
    %720 = vector.broadcast %cst_413 : f32 to vector<16x1xf32>
    %721 = arith.divf %719, %720 : vector<16x1xf32>
    %722 = arith.mulf %717, %717 : vector<16x32xf32>
    %cst_414 = arith.constant dense<0.000000e+00> : vector<16xf32>
    %723 = vector.multi_reduction <add>, %722, %cst_414 [1] : vector<16x32xf32> to vector<16xf32>
    %724 = vector.shape_cast %723 : vector<16xf32> to vector<16x1xf32>
    %cst_415 = arith.constant 3.200000e+01 : f32
    %725 = vector.broadcast %cst_415 : f32 to vector<16x1xf32>
    %726 = arith.divf %724, %725 : vector<16x1xf32>
    %727 = arith.mulf %721, %721 : vector<16x1xf32>
    %728 = arith.subf %726, %727 : vector<16x1xf32>
    %cst_416 = arith.constant 9.99999974E-6 : f32
    %729 = vector.broadcast %cst_416 : f32 to vector<16x1xf32>
    %730 = arith.addf %728, %729 : vector<16x1xf32>
    %731 = math.rsqrt %730 : vector<16x1xf32>
    %c144 = arith.constant 144 : index
    %c0_417 = arith.constant 0 : index
    %732 = vector.load %arg0[%c144, %c0_417] : memref<288x32xf32, #tpu.memory_space<vmem>>, vector<16x32xf32>
    %c256 = arith.constant 256 : index
    %c0_418 = arith.constant 0 : index
    %733 = vector.load %arg0[%c256, %c0_418] : memref<288x32xf32, #tpu.memory_space<vmem>>, vector<16x32xf32>
    %734 = vector.broadcast %731 : vector<16x1xf32> to vector<16x32xf32>
    %735 = arith.mulf %732, %734 : vector<16x32xf32>
    %736 = arith.mulf %717, %735 : vector<16x32xf32>
    %737 = vector.broadcast %721 : vector<16x1xf32> to vector<16x32xf32>
    %738 = arith.mulf %737, %735 : vector<16x32xf32>
    %739 = arith.subf %733, %738 : vector<16x32xf32>
    %740 = arith.addf %736, %739 : vector<16x32xf32>
    %c1_419 = arith.constant 1 : index
    %c0_420 = arith.constant 0 : index
    %c0_421 = arith.constant 0 : index
    %741 = vector.load %arg3[%c1_419, %c0_420, %c0_421] : memref<2x192x128xf32, #tpu.memory_space<vmem>>, vector<1x32x128xf32>
    %742 = vector.shape_cast %741 : vector<1x32x128xf32> to vector<32x128xf32>
    %cst_422 = arith.constant dense<0.000000e+00> : vector<16x128xf32>
    %743 = tpu.matmul %740, %742, %cst_422 {dimension_numbers = #tpu.dot_dimension_numbers<[1], [0], [0], [1], [0, 0, 1, 1], [], []>} : vector<16x32xf32>, vector<32x128xf32>, vector<16x128xf32> -> vector<16x128xf32>
    %c9_423 = arith.constant 9 : index
    %c0_424 = arith.constant 0 : index
    %744 = vector.load %arg5[%c9_423, %c0_424] : memref<32x128xf32, #tpu.memory_space<vmem>>, vector<1x128xf32>
    %745 = vector.broadcast %744 : vector<1x128xf32> to vector<16x128xf32>
    %746 = arith.addf %743, %745 : vector<16x128xf32>
    %c1_425 = arith.constant 1 : index
    %c32_426 = arith.constant 32 : index
    %c0_427 = arith.constant 0 : index
    %747 = vector.load %arg3[%c1_425, %c32_426, %c0_427] : memref<2x192x128xf32, #tpu.memory_space<vmem>>, vector<1x32x128xf32>
    %748 = vector.shape_cast %747 : vector<1x32x128xf32> to vector<32x128xf32>
    %cst_428 = arith.constant dense<0.000000e+00> : vector<16x128xf32>
    %749 = tpu.matmul %740, %748, %cst_428 {dimension_numbers = #tpu.dot_dimension_numbers<[1], [0], [0], [1], [0, 0, 1, 1], [], []>} : vector<16x32xf32>, vector<32x128xf32>, vector<16x128xf32> -> vector<16x128xf32>
    %c10_429 = arith.constant 10 : index
    %c0_430 = arith.constant 0 : index
    %750 = vector.load %arg5[%c10_429, %c0_430] : memref<32x128xf32, #tpu.memory_space<vmem>>, vector<1x128xf32>
    %751 = vector.broadcast %750 : vector<1x128xf32> to vector<16x128xf32>
    %752 = arith.addf %749, %751 : vector<16x128xf32>
    %753 = arith.negf %746 : vector<16x128xf32>
    %754 = math.exp %753 : vector<16x128xf32>
    %cst_431 = arith.constant 1.000000e+00 : f32
    %755 = vector.broadcast %cst_431 : f32 to vector<16x128xf32>
    %756 = arith.addf %755, %754 : vector<16x128xf32>
    %757 = arith.divf %755, %756 : vector<16x128xf32>
    %758 = arith.mulf %746, %757 : vector<16x128xf32>
    %759 = arith.mulf %758, %752 : vector<16x128xf32>
    %c1_432 = arith.constant 1 : index
    %c64_433 = arith.constant 64 : index
    %c0_434 = arith.constant 0 : index
    %760 = vector.load %arg3[%c1_432, %c64_433, %c0_434] : memref<2x192x128xf32, #tpu.memory_space<vmem>>, vector<1x128x32xf32>
    %761 = vector.shape_cast %760 : vector<1x128x32xf32> to vector<128x32xf32>
    %cst_435 = arith.constant dense<0.000000e+00> : vector<16x32xf32>
    %762 = tpu.matmul %759, %761, %cst_435 {dimension_numbers = #tpu.dot_dimension_numbers<[1], [0], [0], [1], [0, 0, 1, 1], [], []>} : vector<16x128xf32>, vector<128x32xf32>, vector<16x32xf32> -> vector<16x32xf32>
    %c11_436 = arith.constant 11 : index
    %c0_437 = arith.constant 0 : index
    %763 = vector.load %arg5[%c11_436, %c0_437] : memref<32x128xf32, #tpu.memory_space<vmem>>, vector<1x32xf32>
    %764 = vector.broadcast %763 : vector<1x32xf32> to vector<16x32xf32>
    %765 = arith.addf %762, %764 : vector<16x32xf32>
    %766 = arith.addf %717, %765 : vector<16x32xf32>
    %cst_438 = arith.constant dense<0.000000e+00> : vector<16xf32>
    %767 = vector.multi_reduction <add>, %766, %cst_438 [1] : vector<16x32xf32> to vector<16xf32>
    %768 = vector.shape_cast %767 : vector<16xf32> to vector<16x1xf32>
    %cst_439 = arith.constant 3.200000e+01 : f32
    %769 = vector.broadcast %cst_439 : f32 to vector<16x1xf32>
    %770 = arith.divf %768, %769 : vector<16x1xf32>
    %771 = arith.mulf %766, %766 : vector<16x32xf32>
    %cst_440 = arith.constant dense<0.000000e+00> : vector<16xf32>
    %772 = vector.multi_reduction <add>, %771, %cst_440 [1] : vector<16x32xf32> to vector<16xf32>
    %773 = vector.shape_cast %772 : vector<16xf32> to vector<16x1xf32>
    %cst_441 = arith.constant 3.200000e+01 : f32
    %774 = vector.broadcast %cst_441 : f32 to vector<16x1xf32>
    %775 = arith.divf %773, %774 : vector<16x1xf32>
    %776 = arith.mulf %770, %770 : vector<16x1xf32>
    %777 = arith.subf %775, %776 : vector<16x1xf32>
    %cst_442 = arith.constant 9.99999974E-6 : f32
    %778 = vector.broadcast %cst_442 : f32 to vector<16x1xf32>
    %779 = arith.addf %777, %778 : vector<16x1xf32>
    %780 = math.rsqrt %779 : vector<16x1xf32>
    %c160 = arith.constant 160 : index
    %c0_443 = arith.constant 0 : index
    %781 = vector.load %arg0[%c160, %c0_443] : memref<288x32xf32, #tpu.memory_space<vmem>>, vector<16x32xf32>
    %c272 = arith.constant 272 : index
    %c0_444 = arith.constant 0 : index
    %782 = vector.load %arg0[%c272, %c0_444] : memref<288x32xf32, #tpu.memory_space<vmem>>, vector<16x32xf32>
    %783 = vector.broadcast %780 : vector<16x1xf32> to vector<16x32xf32>
    %784 = arith.mulf %781, %783 : vector<16x32xf32>
    %785 = arith.mulf %766, %784 : vector<16x32xf32>
    %786 = vector.broadcast %770 : vector<16x1xf32> to vector<16x32xf32>
    %787 = arith.mulf %786, %784 : vector<16x32xf32>
    %788 = arith.subf %782, %787 : vector<16x32xf32>
    %789 = arith.addf %785, %788 : vector<16x32xf32>
    %c40_445 = arith.constant 40 : index
    %c0_446 = arith.constant 0 : index
    %790 = vector.load %arg4[%c40_445, %c0_446] : memref<72x128xf32, #tpu.memory_space<vmem>>, vector<32x128xf32>
    %cst_447 = arith.constant dense<0.000000e+00> : vector<16x128xf32>
    %791 = tpu.matmul %789, %790, %cst_447 {dimension_numbers = #tpu.dot_dimension_numbers<[1], [0], [0], [1], [0, 0, 1, 1], [], []>} : vector<16x32xf32>, vector<32x128xf32>, vector<16x128xf32> -> vector<16x128xf32>
    %c0_448 = arith.constant 0 : index
    %c0_449 = arith.constant 0 : index
    %792 = vector.load %arg5[%c0_448, %c0_449] : memref<32x128xf32, #tpu.memory_space<vmem>>, vector<1x128xf32>
    %793 = vector.broadcast %792 : vector<1x128xf32> to vector<16x128xf32>
    %794 = arith.addf %791, %793 : vector<16x128xf32>
    %c0_450 = arith.constant 0 : index
    %c0_451 = arith.constant 0 : index
    %795 = vector.load %arg6[%c0_450, %c0_451] : memref<16x128xf32, #tpu.memory_space<vmem>>, vector<16x128xf32>
    tpu.vector_store %arg6[%c0_450, %c0_451], %794 {strides = array<i32>} : memref<16x128xf32, #tpu.memory_space<vmem>>, vector<16x128xf32>,
    return
  }
}

</mosaic_0001>

<bundles_post_ra>
// kernel: denoiser_forward.1
= control target key start
LH: loop header
LB: loop body
LE: loop exit
PB: predicated region body
PF: predicated region fallthrough
CT: control target
= control target key end

     0   :  { %vm36_vm0 = vcmask 195584   ;;  %vm207_vm1 = vcmask 261120   ;;  %vm125_vm2 = vcmask 130048   ;;  %vm14458_vm3 = vmmov 0   ;;  %s16376_s4 = inlined_call_operand.vmem [shape: f32[72,128], index: 4, kind: input, shape index: {}]   ;;  %s16377_s0 = inlined_call_operand.vmem [shape: f32[288,32], index: 0, kind: input, shape index: {}]   ;;  %s16378_s1 = inlined_call_operand.vmem [shape: f32[48,32,8], index: 1, kind: input, shape index: {}]   ;;  %s16379_s5 = inlined_call_operand.vmem [shape: f32[32,128], index: 5, kind: input, shape index: {}]   ;;  %s16380_s2 = inlined_call_operand.vmem [shape: f32[16,8,32], index: 2, kind: input, shape index: {}]   ;;  %s16381_s7 = inlined_call_operand.vmem [shape: f32[8,2,8,8], index: 7, kind: output, shape index: {1}]   ;;  %s16382_s3 = inlined_call_operand.vmem [shape: f32[2,192,128], index: 3, kind: input, shape index: {}]   ;;  %s16383_s6 = inlined_call_operand.vmem [shape: f32[16,128], index: 6, kind: output, shape index: {0}]  }
   0x1   :  { %v33_v0 = vld [vmem:[%s16376_s4] sm:$0xff]  ;;  %v34_v1 = vld [vmem:[%s16376_s4 + $0x8] sm:$0xff]  ;;  %v35_v4 = vld [vmem:[%s16376_s4 + $0x10] sm:$0xff]  ;;  %vm499_vm4 = vcmask 64512  }
   0x2   :  { %v13757_v2 = vpack.c.bf16 %v34_v1, %v33_v0  ;;  %v27_v3 = vld [vmem:[%s16377_s0] sm:$0xff]  ;;  %v28_v5 = vld [vmem:[%s16377_s0 + $0x8] sm:$0xff]  ;;  %v118_v18 = vld [vmem:[%s16376_s4 + $0x18] sm:$0xff] }
   0x3   :  { %12694 = vmatprep.mubr.msk.f32.mxu0 %vm36_vm0, %v27_v3  ;;  %v32_v6 = vld [vmem:[%s16377_s0 + $0x28] sm:$0xff]  ;;  %v31_v7 = vld [vmem:[%s16377_s0 + $0x20] sm:$0xff]  ;;  %v29_v23 = vld [vmem:[%s16377_s0 + $0x10] sm:$0xff] }
   0x4   :  { %13758 = vmatprep.subr.bf16.mxu0 %v13757_v2  ;;  %v119_v19 = vld [vmem:[%s16376_s4 + $0x20] sm:$0xff]  ;;  %v250_v22 = vld [vmem:[%s16378_s1 + $0x8] sm:$0xff]  ;;  %12701 = vmatprep.mubr.msk.f32.mxu1 %vm125_vm2, %v29_v23  ;;  %v30_v25 = vld [vmem:[%s16377_s0 + $0x18] sm:$0xff] }
   0x5   :  { %13760 = vmatpush3.bf16.msra.mxu0 %v13757_v2  ;;  %v13761_v20 = vpack.c.bf16 %v119_v19, %v118_v18  ;;  %v249_v21 = vld [vmem:[%s16378_s1] sm:$0xff]  ;;  %v251_v26 = vld [vmem:[%s16378_s1 + $0x10] sm:$0xff]  ;;  %v252_v27 = vld [vmem:[%s16378_s1 + $0x18] sm:$0xff] }
   0x6   :  { %12692 = vmatprep.subr.mxu0 %v35_v4  ;;  %v13765_v24 = vpack.c.bf16 %v250_v22, %v249_v21  ;;  %v13769_v28 = vpack.c.bf16 %v252_v27, %v251_v26  ;;  %v11643_v29 = vld [vmem:[%s16378_s1 + $0x80] sm:$0xff]  ;;  %v11644_v30 = vld [vmem:[%s16378_s1 + $0x88] sm:$0xff]  ;;  %v237_v49 = vld [vmem:[%s16377_s0 + $0xb0] sm:$0xff] }
   0x7   :  { %13762 = vmatprep.subr.bf16.mxu1 %v13761_v20  ;;  %v13773_v31 = vpack.c.bf16 %v11644_v30, %v11643_v29  ;;  %v235_v46 = vld [vmem:[%s16377_s0 + $0x40] sm:$0xff]  ;;  %v236_v50 = vld [vmem:[%s16377_s0 + $0x48] sm:$0xff]  ;;  %v238_v56 = vld [vmem:[%s16377_s0 + $0xb8] sm:$0xff] }
   0x8   :  { %13764 = vmatpush3.bf16.msra.mxu1 %v13761_v20  ;;  %v11645_v59 = vld [vmem:[%s16378_s1 + $0x90] sm:$0xff]  ;;  %v11646_v60 = vld [vmem:[%s16378_s1 + $0x98] sm:$0xff]  ;;  %v11647_v1 = vld [vmem:[%s16378_s1 + $0x100] sm:$0xff] }
   0x9   :  { %12693 = vmatpush3.msra.mxu0 %v35_v4  ;;  %13766 = vmatprep.subr.bf16.mxu1 %v13765_v24  ;;  %v13777_v0 = vpack.c.bf16 %v11646_v60, %v11645_v59  ;;  %v11648_v2 = vld [vmem:[%s16378_s1 + $0x108] sm:$0xff]  ;;  %v11649_v4 = vld [vmem:[%s16378_s1 + $0x110] sm:$0xff] }
   0xa   :  { %12695 = vmatmul.mubr.msk.f32.vlgmr.msra.gmra.mrb[0].mxu0 %vm36_vm0, %v28_v5  ;;  %v13781_v3 = vpack.c.bf16 %v11648_v2, %v11647_v1  ;;  %v11650_v5 = vld [vmem:[%s16378_s1 + $0x118] sm:$0xff]  ;;  %v14638_v21 = vld [vmem:[%s16377_s0 + $0x30] sm:$0xff] }
   0xb   :  { %12702 = vmatmul.mubr.msk.f32.vlgmr.msra.gmra.mrb[0].mxu1 %vm125_vm2, %v30_v25  ;;  %v14644_v25 = vld [vmem:[%s16377_s0 + $0x38] sm:$0xff] }
   0xc   :  { %13768 = vmatpush3.bf16.msra.mxu1 %v13765_v24  ;;  %v11675_v1 = vld [vmem:[%s16378_s1 + $0x138] sm:$0xff] }
   0xd   :  { %13770 = vmatprep.subr.bf16.mxu1 %v13769_v28 }
  0x10   :  { %13772 = vmatpush3.bf16.msra.mxu1 %v13769_v28 }
  0x11   :  { %13774 = vmatprep.subr.bf16.mxu1 %v13773_v31 }
  0xdd   :  { %v12696_v8 = vpop.f32.mrb[0].mxu0 }
  0xde   :  { %v109_v9 = vpop.f32.mrb[1].mxu0  ;;  %v14520_v10 = vadd.f32 %v12696_v8, %v32_v6  ;;  %v13785_v6 = vpack.c.bf16 %v11650_v5, %v11649_v4 }
  0xdf   :  { %v14522_v11 = vadd.f32 %v109_v9, %v31_v7  ;;  %v14612_v7 = vpop.f32.mrb[0].mxu1  ;;  %v14457_v9 = vmov 0.0  }
  0xe0   :  { %v218_v15 = vmul.f32 %v14520_v10, %v14520_v10  ;;  %v211_v16 = vsel %vm207_vm1, %v14520_v10, 0.0  ;;  %v14614_v8 = vpop.f32.mrb[1].mxu1  ;;  %12737 = vmatprep.subr.mxu0 %v14457_v9  ;;  %12739 = vmatprep.mubr.msk.f32.mxu0 %vm14458_vm3, %v14457_v9 }
  0xe1   :  { %v208_v12 = vsel %vm207_vm1, %v14522_v11, 0.0  ;;  %v217_v13 = vmul.f32 %v14522_v11, %v14522_v11 }
  0xe2   :  { %209 = vadd.xlane.f32.xlu0 %v208_v12  ;;  %v222_v17 = vsel %vm207_vm1, %v218_v15, 0.0 }
  0xe3   :  { %v219_v14 = vsel %vm207_vm1, %v217_v13, 0.0 }
  0xe4   :  { %220 = vadd.xlane.f32.xlu1 %v219_v14  ;;  %v11651_v14 = vld [vmem:[%s16379_s5 + $0xc] ss:$0 sm:$0xff] }
  0xe6   :  { %212 = vadd.xlane.f32.xlu0 %v211_v16 }
  0xe8   :  { %223 = vadd.xlane.f32.xlu1 %v222_v17 }
 0x16f   :  { %v210_v32 = vpop.xlane.xlu0 %209 }
 0x170   :  { %v215_v33 = vmul.f32 0.03125, %v210_v32 }
 0x171   :  { %v221_v34 = vpop.xlane.xlu1 %220 }
 0x172   :  { %v227_v35 = vmul.f32 %v215_v33, %v215_v33  ;;  %v225_v36 = vmul.f32 0.03125, %v221_v34 }
 0x173   :  { %v213_v37 = vpop.xlane.xlu0 %212 }
 0x174   :  { %v229_v38 = vsub.f32 %v225_v36, %v227_v35  ;;  %v216_v39 = vmul.f32 0.03125, %v213_v37 }
 0x175   :  { %v224_v40 = vpop.xlane.xlu1 %223 }
 0x176   :  { %v231_v41 = vadd.f32 1e-05, %v229_v38  ;;  %v228_v42 = vmul.f32 %v216_v39, %v216_v39  ;;  %v226_v43 = vmul.f32 0.03125, %v224_v40 }
 0x178   :  { %14279 = vrsqrt.f32 %v231_v41  ;;  %v230_v44 = vsub.f32 %v226_v43, %v228_v42  ;;  %v11664_v41 = vld [vmem:[%s16378_s1 + $0x20] sm:$0xff]  ;;  %v11665_v42 = vld [vmem:[%s16378_s1 + $0x28] sm:$0xff] }
 0x179   :  { %v13789_v43 = vpack.c.bf16 %v11665_v42, %v11664_v41  ;;  %v11694_v41 = vld [vmem:[%s16378_s1 + $0x40] sm:$0xff]  ;;  %v11695_v42 = vld [vmem:[%s16378_s1 + $0x48] sm:$0xff] }
 0x17a   :  { %v232_v45 = vadd.f32 1e-05, %v230_v44  ;;  %v11668_v44 = vld [vmem:[%s16378_s1 + $0xa0] sm:$0xff] }
 0x17c   :  { %14281 = vrsqrt.f32 %v232_v45  ;;  %v11669_v45 = vld [vmem:[%s16378_s1 + $0xa8] sm:$0xff] }
 0x182   :  { %v14280_v47 = vpop.eup %14279 }
 0x183   :  { %v239_v48 = vmul.f32 %v14280_v47, %v235_v46  ;;  %v13797_v46 = vpack.c.bf16 %v11669_v45, %v11668_v44 }
 0x185   :  { %v243_v51 = vmul.f32 %v239_v48, %v215_v33  ;;  %v241_v53 = vmul.f32 %v239_v48, %v14522_v11 }
 0x186   :  { %v14282_v52 = vpop.eup %14281 }
 0x187   :  { %v245_v54 = vsub.f32 %v237_v49, %v243_v51  ;;  %v240_v55 = vmul.f32 %v14282_v52, %v236_v50  ;;  %v11666_v49 = vld [vmem:[%s16378_s1 + $0x30] sm:$0xff]  ;;  %v11667_v50 = vld [vmem:[%s16378_s1 + $0x38] sm:$0xff] }
 0x189   :  { %v14577_v57 = vadd.f32 %v245_v54, %v241_v53  ;;  %v244_v58 = vmul.f32 %v240_v55, %v216_v39  ;;  %v242_v61 = vmul.f32 %v240_v55, %v14520_v10  ;;  %v13793_v53 = vpack.c.bf16 %v11667_v50, %v11666_v49  ;;  %v11670_v54 = vld [vmem:[%s16378_s1 + $0xb0] sm:$0xff]  ;;  %v11671_v55 = vld [vmem:[%s16378_s1 + $0xb8] sm:$0xff] }
 0x18a   :  { %v11697_v49 = vld [vmem:[%s16378_s1 + $0x58] sm:$0xff] }
 0x18b   :  { %v246_v62 = vsub.f32 %v238_v56, %v244_v58  ;;  %12712 = vmatprep.mubr.msk.f32.mxu1 %vm207_vm1, %v14577_v57  ;;  %v11672_v56 = vld [vmem:[%s16378_s1 + $0x120] sm:$0xff]  ;;  %v11673_v58 = vld [vmem:[%s16378_s1 + $0x128] sm:$0xff] }
 0x18d   :  { %v14588_v63 = vadd.f32 %v246_v62, %v242_v61  ;;  %v13801_v61 = vpack.c.bf16 %v11671_v55, %v11670_v54  ;;  %v13805_v62 = vpack.c.bf16 %v11673_v58, %v11672_v56  ;;  %v11703_v54 = vld [vmem:[%s16378_s1 + $0x148] sm:$0xff]  ;;  %v11704_v56 = vld [vmem:[%s16378_s1 + $0x150] sm:$0xff]  ;;  %v11705_v58 = vld [vmem:[%s16378_s1 + $0x158] sm:$0xff] }
 0x18f   :  { %12713 = vmatmul.mubr.msk.f32.vlgmr.msra.gmra.mrb[2].mxu1 %vm207_vm1, %v14588_v63 }
 0x190   :  { %13776 = vmatpush3.bf16.msra.mxu1 %v13773_v31  ;;  %12723 = vmatprep.mubr.msk.f32.mxu1 %vm207_vm1, %v14577_v57 }
 0x191   :  { %13778 = vmatprep.subr.bf16.mxu1 %v13777_v0 }
 0x194   :  { %13780 = vmatpush3.bf16.msra.mxu1 %v13777_v0  ;;  %v11674_v0 = vld [vmem:[%s16378_s1 + $0x130] sm:$0xff] }
 0x195   :  { %13782 = vmatprep.subr.bf16.mxu1 %v13781_v3  ;;  %v13809_v2 = vpack.c.bf16 %v11675_v1, %v11674_v0  ;;  %v11698_v0 = vld [vmem:[%s16378_s1 + $0xc0] sm:$0xff]  ;;  %v11699_v1 = vld [vmem:[%s16378_s1 + $0xc8] sm:$0xff] }
 0x197   :  { %12724 = vmatmul.mubr.msk.f32.vlgmr.msra.gmra.mrb[4].mxu1 %vm207_vm1, %v14588_v63 }
 0x198   :  { %13784 = vmatpush3.bf16.msra.mxu1 %v13781_v3  ;;  %12734 = vmatprep.mubr.msk.f32.mxu1 %vm207_vm1, %v14577_v57 }
 0x199   :  { %13786 = vmatprep.subr.bf16.mxu1 %v13785_v6 }
 0x19c   :  { %13788 = vmatpush3.bf16.msra.mxu1 %v13785_v6 }
 0x19d   :  { %12747 = vmatprep.subr.mxu1 %v14457_v9 }
 0x19f   :  { %12735 = vmatmul.mubr.msk.f32.vlgmr.msra.gmra.mrb[6].mxu1 %vm207_vm1, %v14588_v63 }
 0x1a0   :  { %12749 = vmatprep.mubr.msk.f32.mxu1 %vm14458_vm3, %v14457_v9 }
 0x262   :  { %v12714_v12 = vpop.f32.mrb[2].mxu1 }
 0x263   :  { %v340_v13 = vpop.f32.mrb[3].mxu1  ;;  %v346_v18 = vadd.f32 %v12714_v12, %v11651_v14 }
 0x264   :  { %v341_v17 = vadd.f32 %v11651_v14, %v340_v13  ;;  %v11676_v14 = vld [vmem:[%s16379_s5 + $0xd] ss:$0 sm:$0xff] }
 0x26a   :  { %v12725_v15 = vpop.f32.mrb[4].mxu1 }
 0x26b   :  { %v415_v16 = vpop.f32.mrb[5].mxu1 }
 0x26c   :  { %12738 = vmatpush3.xpose.msk.msra.mxu0 %vm499_vm4, %v415_v16 }
 0x26d   :  { %12742 = vmatprep.subr.mxu0 %v14457_v9 }
 0x26f   :  { %12740 = vmatmul.mubr.msk.f32.vlgmr.msra.gmra.mrb[2].mxu0 %vm499_vm4, %v341_v17 }
 0x270   :  { %12743 = vmatpush3.xpose.msk.msra.mxu0 %vm499_vm4, %v12725_v15  ;;  %12744 = vmatprep.mubr.msk.f32.mxu0 %vm14458_vm3, %v14457_v9 }
 0x271   :  { %12752 = vmatprep.subr.mxu0 %v14457_v9 }
 0x272   :  { %v12736_v19 = vpop.f32.mrb[6].mxu1 }
 0x273   :  { %v490_v20 = vpop.f32.mrb[7].mxu1  ;;  %12745 = vmatmul.mubr.msk.f32.vlgmr.msra.gmra.mrb[4].mxu0 %vm499_vm4, %v346_v18 }
 0x274   :  { %12748 = vmatpush3.msra.mxu1 %v490_v20  ;;  %12753 = vmatpush3.msra.mxu0 %v12736_v19 }
 0x275   :  { %12754 = vmatprep.mubr.msk.f32.mxu0 %vm14458_vm3, %v14457_v9  ;;  %13790 = vmatprep.subr.bf16.mxu1 %v13789_v43 }
 0x276   :  { %13798 = vmatprep.subr.bf16.mxu0 %v13797_v46 }
 0x342   :  { %v572_v22 = vpop.f32.mrb[2].mxu0 }
 0x343   :  { %v573_v23 = vadd.f32 %v572_v22, %v14638_v21  ;;  %v12741_v24 = vpop.f32.mrb[3].mxu0 }
 0x345   :  { %v652_v26 = vsel %vm499_vm4, %v573_v23, -inf }
 0x346   :  { %v648_v27 = vpop.f32.mrb[4].mxu0  ;;  %653 = vmax.xlane.f32.xlu1 %v652_v26 }
 0x347   :  { %v649_v28 = vadd.f32 %v648_v27, %v14644_v25  ;;  %v12746_v29 = vpop.f32.mrb[5].mxu0 }
 0x349   :  { %v655_v30 = vsel %vm499_vm4, %v649_v28, -inf }
 0x34a   :  { %656 = vmax.xlane.f32.xlu0 %v655_v30 }
 0x3d3   :  { %v654_v31 = vpop.xlane.xlu1 %653 }
 0x3d4   :  { %v658_v32 = vsub.f32 %v573_v23, %v654_v31 }
 0x3d6   :  { %v660_v33 = vmul.f32 1.442695, %v658_v32 }
 0x3d7   :  { %v657_v34 = vpop.xlane.xlu0 %656 }
 0x3d8   :  { %14283 = vpow2.f32 %v660_v33  ;;  %v659_v35 = vsub.f32 %v649_v28, %v657_v34 }
 0x3da   :  { %v662_v36 = vmul.f32 1.442695, %v659_v35 }
 0x3dc   :  { %14285 = vpow2.f32 %v662_v36 }
 0x3e2   :  { %v14284_v37 = vpop.eup %14283 }
 0x3e3   :  { %v664_v38 = vsel %vm499_vm4, %v14284_v37, 0.0 }
 0x3e4   :  { %665 = vadd.xlane.f32.xlu1 %v664_v38 }
 0x3e6   :  { %v14286_v39 = vpop.eup %14285 }
 0x3e7   :  { %v667_v40 = vsel %vm499_vm4, %v14286_v39, 0.0 }
 0x3e8   :  { %668 = vadd.xlane.f32.xlu0 %v667_v40 }
 0x471   :  { %v666_v47 = vpop.xlane.xlu1 %665 }
 0x472   :  { %14287 = vrcp.f32 %v666_v47 }
 0x475   :  { %v669_v48 = vpop.xlane.xlu0 %668 }
 0x476   :  { %14289 = vrcp.f32 %v669_v48  ;;  %v11696_v48 = vld [vmem:[%s16378_s1 + $0x50] sm:$0xff] }
 0x47c   :  { %v14288_v51 = vpop.eup %14287 }
 0x47d   :  { %v672_v52 = vmul.f32 %v14288_v51, %v14284_v37 }
 0x47f   :  { %12750 = vmatmul.mubr.msk.f32.vlgmr.msra.gmra.mrb[8].mxu1 %vm499_vm4, %v672_v52  ;;  %v13817_v52 = vpack.c.bf16 %v11697_v49, %v11696_v48  ;;  %v11724_v49 = vld [vmem:[%s16378_s1 + $0x70] sm:$0xff] }
 0x480   :  { %v14290_v59 = vpop.eup %14289  ;;  %13792 = vmatpush3.bf16.msra.mxu1 %v13789_v43  ;;  %12765 = vmatprep.mubr.msk.f32.mxu1 %vm207_vm1, %v14577_v57  ;;  %v13813_v43 = vpack.c.bf16 %v11695_v42, %v11694_v41 }
 0x481   :  { %v673_v60 = vmul.f32 %v14290_v59, %v14286_v39  ;;  %13794 = vmatprep.subr.bf16.mxu1 %v13793_v53  ;;  %v13833_v59 = vpack.c.bf16 %v11705_v58, %v11704_v56  ;;  %v11730_v56 = vld [vmem:[%s16378_s1 + $0x160] sm:$0xff]  ;;  %v11731_v58 = vld [vmem:[%s16378_s1 + $0x168] sm:$0xff] }
 0x483   :  { %12755 = vmatmul.mubr.msk.f32.vlgmr.msra.gmra.mrb[6].mxu0 %vm499_vm4, %v673_v60  ;;  %v11689_v60 = vld [vmem:[%s16380_s2 + $0x8] sm:$0xff] }
 0x484   :  { %13796 = vmatpush3.bf16.msra.mxu1 %v13793_v53  ;;  %13800 = vmatpush3.bf16.msra.mxu0 %v13797_v46  ;;  %v11702_v53 = vld [vmem:[%s16378_s1 + $0x140] sm:$0xff] }
 0x485   :  { %12776 = vmatprep.mubr.msk.f32.mxu0 %vm207_vm1, %v14577_v57  ;;  %13802 = vmatprep.subr.bf16.mxu0 %v13801_v61  ;;  %v13829_v55 = vpack.c.bf16 %v11703_v54, %v11702_v53 }
 0x486   :  { %13806 = vmatprep.subr.bf16.mxu1 %v13805_v62 }
 0x487   :  { %12766 = vmatmul.mubr.msk.f32.vlgmr.msra.gmra.mrb[10].mxu1 %vm207_vm1, %v14588_v63 }
 0x488   :  { %13804 = vmatpush3.bf16.msra.mxu0 %v13801_v61  ;;  %13808 = vmatpush3.bf16.msra.mxu1 %v13805_v62  ;;  %v820_v61 = vld [vmem:[%s16380_s2] sm:$0xff] }
 0x489   :  { %12787 = vmatprep.mubr.msk.f32.mxu1 %vm207_vm1, %v14577_v57  ;;  %13810 = vmatprep.subr.bf16.mxu1 %v13809_v2 }
 0x48a   :  { %12790 = vmatprep.subr.mxu0 %v14457_v9 }
 0x48b   :  { %12777 = vmatmul.mubr.msk.f32.vlgmr.msra.gmra.mrb[8].mxu0 %vm207_vm1, %v14588_v63 }
 0x48c   :  { %13812 = vmatpush3.bf16.msra.mxu1 %v13809_v2  ;;  %12792 = vmatprep.mubr.msk.f32.mxu0 %vm14458_vm3, %v14457_v9 }
 0x48d   :  { %12800 = vmatprep.subr.mxu1 %v14457_v9 }
 0x48f   :  { %12788 = vmatmul.mubr.msk.f32.vlgmr.msra.gmra.mrb[12].mxu1 %vm207_vm1, %v14588_v63 }
 0x490   :  { %12802 = vmatprep.mubr.msk.f32.mxu1 %vm14458_vm3, %v14457_v9 }
 0x552   :  { %v14707_v3 = vpop.f32.mrb[8].mxu1 }
 0x553   :  { %v12751_v4 = vpop.f32.mrb[9].mxu1 }
 0x554   :  { %v13821_v4 = vpack.c.bf16 %v11699_v1, %v11698_v0  ;;  %v11726_v0 = vld [vmem:[%s16378_s1 + $0xe0] sm:$0xff]  ;;  %v11727_v1 = vld [vmem:[%s16378_s1 + $0xe8] sm:$0xff] }
 0x556   :  { %v14709_v5 = vpop.f32.mrb[6].mxu0 }
 0x557   :  { %v12756_v6 = vpop.f32.mrb[7].mxu0 }
 0x55a   :  { %v12767_v12 = vpop.f32.mrb[10].mxu1 }
 0x55b   :  { %v907_v13 = vpop.f32.mrb[11].mxu1  ;;  %v913_v20 = vadd.f32 %v12767_v12, %v11676_v14 }
 0x55c   :  { %v908_v17 = vadd.f32 %v11676_v14, %v907_v13  ;;  %v11700_v13 = vld [vmem:[%s16378_s1 + $0xd0] sm:$0xff]  ;;  %v11701_v14 = vld [vmem:[%s16378_s1 + $0xd8] sm:$0xff] }
 0x55e   :  { %v12778_v15 = vpop.f32.mrb[8].mxu0 }
 0x55f   :  { %v982_v16 = vpop.f32.mrb[9].mxu0 }
 0x560   :  { %12791 = vmatpush3.xpose.msk.msra.mxu0 %vm499_vm4, %v982_v16 }
 0x561   :  { %12795 = vmatprep.subr.mxu0 %v14457_v9 }
 0x562   :  { %v12789_v18 = vpop.f32.mrb[12].mxu1 }
 0x563   :  { %v1057_v19 = vpop.f32.mrb[13].mxu1  ;;  %12793 = vmatmul.mubr.msk.f32.vlgmr.msra.gmra.mrb[10].mxu0 %vm499_vm4, %v908_v17 }
 0x564   :  { %12796 = vmatpush3.xpose.msk.msra.mxu0 %vm499_vm4, %v12778_v15  ;;  %12801 = vmatpush3.msra.mxu1 %v1057_v19  ;;  %v13825_v15 = vpack.c.bf16 %v11701_v14, %v11700_v13 }
 0x565   :  { %12797 = vmatprep.mubr.msk.f32.mxu0 %vm14458_vm3, %v14457_v9  ;;  %12805 = vmatprep.subr.mxu0 %v14457_v9 }
 0x566   :  { %12810 = vmatprep.subr.mxu1 %v11689_v60 }
 0x567   :  { %12798 = vmatmul.mubr.msk.f32.vlgmr.msra.gmra.mrb[12].mxu0 %vm499_vm4, %v913_v20 }
 0x568   :  { %12806 = vmatpush3.msra.mxu0 %v12789_v18  ;;  %12807 = vmatprep.mubr.msk.f32.mxu0 %vm14458_vm3, %v14457_v9 }
 0x569   :  { %13814 = vmatprep.subr.bf16.mxu0 %v13813_v43 }
 0x636   :  { %v1138_v22 = vpop.f32.mrb[10].mxu0 }
 0x637   :  { %v1139_v23 = vadd.f32 %v1138_v22, %v14638_v21  ;;  %v12794_v24 = vpop.f32.mrb[11].mxu0 }
 0x639   :  { %v1218_v26 = vsel %vm499_vm4, %v1139_v23, -inf }
 0x63a   :  { %1219 = vmax.xlane.f32.xlu0 %v1218_v26  ;;  %v1214_v27 = vpop.f32.mrb[12].mxu0 }
 0x63b   :  { %v1215_v28 = vadd.f32 %v1214_v27, %v14644_v25  ;;  %v12799_v29 = vpop.f32.mrb[13].mxu0 }
 0x63d   :  { %v1221_v30 = vsel %vm499_vm4, %v1215_v28, -inf }
 0x63e   :  { %1222 = vmax.xlane.f32.xlu1 %v1221_v30 }
 0x6c7   :  { %v1220_v31 = vpop.xlane.xlu0 %1219 }
 0x6c8   :  { %v1224_v32 = vsub.f32 %v1139_v23, %v1220_v31 }
 0x6ca   :  { %v1226_v33 = vmul.f32 1.442695, %v1224_v32 }
 0x6cb   :  { %v1223_v34 = vpop.xlane.xlu1 %1222 }
 0x6cc   :  { %14291 = vpow2.f32 %v1226_v33  ;;  %v1225_v35 = vsub.f32 %v1215_v28, %v1223_v34 }
 0x6ce   :  { %v1228_v36 = vmul.f32 1.442695, %v1225_v35 }
 0x6d0   :  { %14293 = vpow2.f32 %v1228_v36 }
 0x6d6   :  { %v14292_v37 = vpop.eup %14291 }
 0x6d7   :  { %v1230_v38 = vsel %vm499_vm4, %v14292_v37, 0.0 }
 0x6d8   :  { %1231 = vadd.xlane.f32.xlu0 %v1230_v38 }
 0x6da   :  { %v14294_v39 = vpop.eup %14293 }
 0x6db   :  { %v1233_v40 = vsel %vm499_vm4, %v14294_v39, 0.0 }
 0x6dc   :  { %1234 = vadd.xlane.f32.xlu1 %v1233_v40 }
 0x765   :  { %v1232_v44 = vpop.xlane.xlu0 %1231 }
 0x766   :  { %14295 = vrcp.f32 %v1232_v44  ;;  %v11723_v44 = vld [vmem:[%s16378_s1 + $0x68] sm:$0xff] }
 0x769   :  { %v1235_v45 = vpop.xlane.xlu1 %1234 }
 0x76a   :  { %14297 = vrcp.f32 %v1235_v45 }
 0x770   :  { %v14296_v46 = vpop.eup %14295 }
 0x771   :  { %v1238_v47 = vmul.f32 %v14296_v46, %v14292_v37  ;;  %v11719_v46 = vld [vmem:[%s16380_s2 + $0x10] sm:$0xff] }
 0x773   :  { %12803 = vmatmul.mubr.msk.f32.vlgmr.msra.gmra.mrb[14].mxu1 %vm499_vm4, %v1238_v47 }
 0x774   :  { %v14298_v50 = vpop.eup %14297  ;;  %12811 = vmatpush3.msra.mxu1 %v11689_v60  ;;  %v11732_v60 = vld [vmem:[%s16378_s1 + $0x170] sm:$0xff] }
 0x775   :  { %v1239_v51 = vmul.f32 %v14298_v50, %v14294_v39  ;;  %12815 = vmatprep.subr.mxu1 %v820_v61  ;;  %v11725_v50 = vld [vmem:[%s16378_s1 + $0x78] sm:$0xff] }
 0x776   :  { %v13841_v54 = vpack.c.bf16 %v11725_v50, %v11724_v49  ;;  %v11755_v49 = vld [vmem:[%s16378_s1 + $0x200] sm:$0xff]  ;;  %v11756_v50 = vld [vmem:[%s16378_s1 + $0x208] sm:$0xff] }
 0x777   :  { %12808 = vmatmul.mubr.msk.f32.vlgmr.msra.gmra.mrb[14].mxu0 %vm499_vm4, %v1239_v51 }
 0x778   :  { %13816 = vmatpush3.bf16.msra.mxu0 %v13813_v43  ;;  %12828 = vmatprep.mubr.msk.f32.mxu0 %vm207_vm1, %v14577_v57  ;;  %v11722_v43 = vld [vmem:[%s16378_s1 + $0x60] sm:$0xff] }
 0x779   :  { %13818 = vmatprep.subr.bf16.mxu0 %v13817_v52  ;;  %v13837_v45 = vpack.c.bf16 %v11723_v44, %v11722_v43 }
 0x77c   :  { %13820 = vmatpush3.bf16.msra.mxu0 %v13817_v52 }
 0x77d   :  { %13830 = vmatprep.subr.bf16.mxu0 %v13829_v55 }
 0x77f   :  { %12829 = vmatmul.mubr.msk.f32.vlgmr.msra.gmra.mrb[16].mxu0 %vm207_vm1, %v14588_v63 }
 0x780   :  { %13832 = vmatpush3.bf16.msra.mxu0 %v13829_v55  ;;  %12850 = vmatprep.mubr.msk.f32.mxu0 %vm207_vm1, %v14577_v57 }
 0x781   :  { %13834 = vmatprep.subr.bf16.mxu0 %v13833_v59 }
 0x784   :  { %13836 = vmatpush3.bf16.msra.mxu0 %v13833_v59  ;;  %v13853_v59 = vpack.c.bf16 %v11731_v58, %v11730_v56 }
 0x785   :  { %12858 = vmatprep.subr.mxu0 %v14457_v9 }
 0x787   :  { %12851 = vmatmul.mubr.msk.f32.vlgmr.msra.gmra.mrb[18].mxu0 %vm207_vm1, %v14588_v63 }
 0x788   :  { %12860 = vmatprep.mubr.msk.f32.mxu0 %vm14458_vm3, %v14457_v9 }
 0x846   :  { %v1309_v62 = vpop.f32.mrb[14].mxu1 }
 0x847   :  { %v12804_v2 = vpop.f32.mrb[15].mxu1  ;;  %12812 = vmatprep.mubr.msk.f32.mxu1 %vm499_vm4, %v1309_v62 }
 0x848   :  { %v13845_v2 = vpack.c.bf16 %v11727_v1, %v11726_v0  ;;  %v11750_v0 = vld [vmem:[%s16379_s5 + $0x2] ss:$0 sm:$0xff] }
 0x84a   :  { %v1382_v6 = vpop.f32.mrb[14].mxu0 }
 0x84b   :  { %v12809_v12 = vpop.f32.mrb[15].mxu0  ;;  %12813 = vmatmul.mubr.msk.f32.vlgmr.msra.gmra.mrb[16].mxu1 %vm499_vm4, %v1382_v6  ;;  %v11729_v6 = vld [vmem:[%s16378_s1 + $0xf8] sm:$0xff] }
 0x84c   :  { %12816 = vmatpush3.msra.mxu1 %v820_v61  ;;  %12817 = vmatprep.mubr.msk.f32.mxu1 %vm499_vm4, %v14707_v3  ;;  %v11733_v61 = vld [vmem:[%s16378_s1 + $0x178] sm:$0xff] }
 0x84d   :  { %13822 = vmatprep.subr.bf16.mxu1 %v13821_v4  ;;  %v13857_v62 = vpack.c.bf16 %v11733_v61, %v11732_v60 }
 0x852   :  { %v12830_v16 = vpop.f32.mrb[16].mxu0 }
 0x853   :  { %v1636_v17 = vpop.f32.mrb[17].mxu0  ;;  %12818 = vmatmul.mubr.msk.f32.vlgmr.msra.gmra.mrb[16].mxu1 %vm499_vm4, %v14709_v5  ;;  %v11706_v5 = vld [vmem:[%s16379_s5 + $0xe] ss:$0 sm:$0xff] }
 0x854   :  { %13824 = vmatpush3.bf16.msra.mxu1 %v13821_v4  ;;  %12839 = vmatprep.mubr.msk.f32.mxu1 %vm207_vm1, %v14577_v57  ;;  %v1642_v22 = vadd.f32 %v12830_v16, %v11706_v5  ;;  %v1637_v23 = vadd.f32 %v11706_v5, %v1636_v17  ;;  %v11728_v4 = vld [vmem:[%s16378_s1 + $0xf0] sm:$0xff] }
 0x855   :  { %13826 = vmatprep.subr.bf16.mxu1 %v13825_v15 }
 0x858   :  { %13828 = vmatpush3.bf16.msra.mxu1 %v13825_v15  ;;  %v13849_v15 = vpack.c.bf16 %v11729_v6, %v11728_v4 }
 0x859   :  { %12853 = vmatprep.subr.mxu1 %v14457_v9 }
 0x85a   :  { %v12852_v3 = vpop.f32.mrb[18].mxu0 }
 0x85b   :  { %12840 = vmatmul.mubr.msk.f32.vlgmr.msra.gmra.mrb[18].mxu1 %vm207_vm1, %v14588_v63  ;;  %v1786_v18 = vpop.f32.mrb[19].mxu0 }
 0x85c   :  { %12855 = vmatprep.mubr.msk.f32.mxu1 %vm14458_vm3, %v14457_v9 }
 0x92e   :  { %v12841_v19 = vpop.f32.mrb[18].mxu1 }
 0x92f   :  { %v1711_v20 = vpop.f32.mrb[19].mxu1  ;;  %12859 = vmatpush3.xpose.msk.msra.mxu0 %vm499_vm4, %v12841_v19  ;;  %v11734_v19 = vld [vmem:[%s16379_s5 + $0xf] ss:$0 sm:$0xff] }
 0x930   :  { %12854 = vmatpush3.xpose.msk.msra.mxu1 %vm499_vm4, %v1711_v20  ;;  %12868 = vmatprep.subr.mxu0 %v14457_v9 }
 0x931   :  { %12863 = vmatprep.subr.mxu1 %v14457_v9 }
 0x932   :  { %12861 = vmatmul.mubr.msk.f32.vlgmr.msra.gmra.mrb[20].mxu0 %vm499_vm4, %v1642_v22 }
 0x933   :  { %12856 = vmatmul.mubr.msk.f32.vlgmr.msra.gmra.mrb[20].mxu1 %vm499_vm4, %v1637_v23  ;;  %12869 = vmatpush3.msra.mxu0 %v12852_v3 }
 0x934   :  { %12864 = vmatpush3.msra.mxu1 %v1786_v18  ;;  %12870 = vmatprep.mubr.msk.f32.mxu0 %vm14458_vm3, %v14457_v9 }
 0x935   :  { %12865 = vmatprep.mubr.msk.f32.mxu1 %vm14458_vm3, %v14457_v9  ;;  %13838 = vmatprep.subr.bf16.mxu0 %v13837_v45 }
 0x936   :  { %12873 = vmatprep.subr.mxu1 %v11719_v46 }
 0xa05   :  { %v1943_v24 = vpop.f32.mrb[20].mxu0 }
 0xa06   :  { %v1944_v26 = vadd.f32 %v1943_v24, %v14644_v25  ;;  %v1867_v27 = vpop.f32.mrb[20].mxu1  ;;  %v12862_v28 = vpop.f32.mrb[21].mxu0 }
 0xa07   :  { %v1868_v29 = vadd.f32 %v1867_v27, %v14638_v21  ;;  %v12857_v30 = vpop.f32.mrb[21].mxu1 }
 0xa08   :  { %v1950_v31 = vsel %vm499_vm4, %v1944_v26, -inf }
 0xa09   :  { %1951 = vmax.xlane.f32.xlu1 %v1950_v31  ;;  %v1947_v32 = vsel %vm499_vm4, %v1868_v29, -inf }
 0xa0a   :  { %1948 = vmax.xlane.f32.xlu0 %v1947_v32 }
 0xa96   :  { %v1952_v33 = vpop.xlane.xlu1 %1951 }
 0xa97   :  { %v1954_v34 = vsub.f32 %v1944_v26, %v1952_v33  ;;  %v1949_v35 = vpop.xlane.xlu0 %1948 }
 0xa98   :  { %v1953_v36 = vsub.f32 %v1868_v29, %v1949_v35 }
 0xa99   :  { %v1957_v37 = vmul.f32 1.442695, %v1954_v34 }
 0xa9a   :  { %v1955_v38 = vmul.f32 1.442695, %v1953_v36 }
 0xa9b   :  { %14299 = vpow2.f32 %v1957_v37 }
 0xa9c   :  { %14301 = vpow2.f32 %v1955_v38 }
 0xaa5   :  { %v14300_v39 = vpop.eup %14299 }
 0xaa6   :  { %v14302_v40 = vpop.eup %14301  ;;  %v1962_v41 = vsel %vm499_vm4, %v14300_v39, 0.0 }
 0xaa7   :  { %1963 = vadd.xlane.f32.xlu1 %v1962_v41  ;;  %v1959_v42 = vsel %vm499_vm4, %v14302_v40, 0.0 }
 0xaa8   :  { %1960 = vadd.xlane.f32.xlu0 %v1959_v42 }
 0xb34   :  { %v1964_v47 = vpop.xlane.xlu1 %1963 }
 0xb35   :  { %14303 = vrcp.f32 %v1964_v47  ;;  %v1961_v48 = vpop.xlane.xlu0 %1960 }
 0xb36   :  { %14305 = vrcp.f32 %v1961_v48  ;;  %v11747_v48 = vld [vmem:[%s16380_s2 + $0x18] sm:$0xff] }
 0xb3f   :  { %v14304_v51 = vpop.eup %14303 }
 0xb40   :  { %v14306_v52 = vpop.eup %14305  ;;  %v1968_v53 = vmul.f32 %v14304_v51, %v14300_v39  ;;  %v13869_v51 = vpack.c.bf16 %v11756_v50, %v11755_v49 }
 0xb41   :  { %v1967_v55 = vmul.f32 %v14306_v52, %v14302_v40 }
 0xb42   :  { %12871 = vmatmul.mubr.msk.f32.vlgmr.msra.gmra.mrb[22].mxu0 %vm499_vm4, %v1968_v53  ;;  %v11757_v53 = vld [vmem:[%s16378_s1 + $0x210] sm:$0xff] }
 0xb43   :  { %13840 = vmatpush3.bf16.msra.mxu0 %v13837_v45  ;;  %12866 = vmatmul.mubr.msk.f32.vlgmr.msra.gmra.mrb[22].mxu1 %vm499_vm4, %v1967_v55  ;;  %v11640_v55 = vld [vmem:[%s16379_s5 + $0x1] ss:$0 sm:$0xff] }
 0xb44   :  { %12886 = vmatprep.mubr.msk.f32.mxu0 %vm207_vm1, %v14577_v57  ;;  %13842 = vmatprep.subr.bf16.mxu0 %v13841_v54 }
 0xb45   :  { %12874 = vmatpush3.msra.mxu1 %v11719_v46 }
 0xb46   :  { %13846 = vmatprep.subr.bf16.mxu1 %v13845_v2 }
 0xb47   :  { %13844 = vmatpush3.bf16.msra.mxu0 %v13841_v54  ;;  %v11758_v54 = vld [vmem:[%s16378_s1 + $0x218] sm:$0xff] }
 0xb48   :  { %13854 = vmatprep.subr.bf16.mxu0 %v13853_v59  ;;  %v13873_v58 = vpack.c.bf16 %v11758_v54, %v11757_v53  ;;  %v11762_v53 = vld [vmem:[%s16378_s1 + $0x298] sm:$0xff] }
 0xb4a   :  { %12887 = vmatmul.mubr.msk.f32.vlgmr.msra.gmra.mrb[24].mxu0 %vm207_vm1, %v14588_v63 }
 0xb4b   :  { %13856 = vmatpush3.bf16.msra.mxu0 %v13853_v59  ;;  %12908 = vmatprep.mubr.msk.f32.mxu0 %vm207_vm1, %v14577_v57  ;;  %v14919_v59 = vadd.f32 %v11640_v55, %v14614_v8 }
 0xb4c   :  { %13858 = vmatprep.subr.bf16.mxu0 %v13857_v62 }
 0xb4f   :  { %13860 = vmatpush3.bf16.msra.mxu0 %v13857_v62  ;;  %v14925_v62 = vadd.f32 %v14612_v7, %v11640_v55 }
 0xb50   :  { %12921 = vmatprep.subr.mxu0 %v14457_v9 }
 0xb52   :  { %12909 = vmatmul.mubr.msk.f32.vlgmr.msra.gmra.mrb[26].mxu0 %vm207_vm1, %v14588_v63 }
 0xb53   :  { %12923 = vmatprep.mubr.msk.f32.mxu0 %vm14458_vm3, %v14457_v9 }
 0xc15   :  { %v2111_v12 = vpop.f32.mrb[22].mxu0 }
 0xc16   :  { %v2038_v13 = vpop.f32.mrb[22].mxu1  ;;  %v12872_v14 = vpop.f32.mrb[23].mxu0 }
 0xc17   :  { %v12867_v16 = vpop.f32.mrb[23].mxu1  ;;  %12875 = vmatprep.mubr.msk.f32.mxu1 %vm499_vm4, %v2038_v13 }
 0xc18   :  { %12876 = vmatmul.mubr.msk.f32.vlgmr.msra.gmra.mrb[16].mxu1 %vm499_vm4, %v2111_v12 }
 0xc19   :  { %13848 = vmatpush3.bf16.msra.mxu1 %v13845_v2  ;;  %12897 = vmatprep.mubr.msk.f32.mxu1 %vm207_vm1, %v14577_v57 }
 0xc1a   :  { %13850 = vmatprep.subr.bf16.mxu1 %v13849_v15 }
 0xc1d   :  { %v12888_v17 = vpop.f32.mrb[24].mxu0  ;;  %13852 = vmatpush3.bf16.msra.mxu1 %v13849_v15 }
 0xc1e   :  { %v2286_v3 = vpop.f32.mrb[25].mxu0  ;;  %12911 = vmatprep.subr.mxu1 %v14457_v9 }
 0xc1f   :  { %v2287_v22 = vadd.f32 %v11734_v19, %v2286_v3  ;;  %v11751_v3 = vld [vmem:[%s16378_s1 + $0x180] sm:$0xff] }
 0xc20   :  { %12898 = vmatmul.mubr.msk.f32.vlgmr.msra.gmra.mrb[24].mxu1 %vm207_vm1, %v14588_v63  ;;  %v2292_v63 = vadd.f32 %v12888_v17, %v11734_v19  ;;  %v11753_v19 = vld [vmem:[%s16378_s1 + $0x190] sm:$0xff] }
 0xc21   :  { %12913 = vmatprep.mubr.msk.f32.mxu1 %vm14458_vm3, %v14457_v9 }
 0xc25   :  { %v12910_v18 = vpop.f32.mrb[26].mxu0 }
 0xc26   :  { %v2436_v5 = vpop.f32.mrb[27].mxu0 }
 0xc27   :  { %12922 = vmatpush3.msra.mxu0 %v2436_v5 }
 0xcf3   :  { %v12899_v57 = vpop.f32.mrb[24].mxu1 }
 0xcf4   :  { %v2361_v20 = vpop.f32.mrb[25].mxu1 }
 0xcf5   :  { %12912 = vmatpush3.xpose.msk.msra.mxu1 %vm499_vm4, %v2361_v20 }
 0xcf6   :  { %12916 = vmatprep.subr.mxu1 %v14457_v9 }
 0xcf8   :  { %12914 = vmatmul.mubr.msk.f32.vlgmr.msra.gmra.mrb[26].mxu1 %vm499_vm4, %v2287_v22  ;;  %v11759_v22 = vld [vmem:[%s16378_s1 + $0x280] sm:$0xff] }
 0xcf9   :  { %12917 = vmatpush3.xpose.msk.msra.mxu1 %vm499_vm4, %v12899_v57  ;;  %12918 = vmatprep.mubr.msk.f32.mxu1 %vm14458_vm3, %v14457_v9  ;;  %v11754_v57 = vld [vmem:[%s16378_s1 + $0x198] sm:$0xff] }
 0xcfa   :  { %12926 = vmatprep.subr.mxu1 %v14457_v9  ;;  %v13865_v20 = vpack.c.bf16 %v11754_v57, %v11753_v19 }
 0xcfc   :  { %12919 = vmatmul.mubr.msk.f32.vlgmr.msra.gmra.mrb[28].mxu1 %vm499_vm4, %v2292_v63  ;;  %v11760_v63 = vld [vmem:[%s16378_s1 + $0x288] sm:$0xff] }
 0xcfd   :  { %12927 = vmatpush3.msra.mxu1 %v12910_v18  ;;  %12928 = vmatprep.mubr.msk.f32.mxu1 %vm14458_vm3, %v14457_v9  ;;  %v11752_v18 = vld [vmem:[%s16378_s1 + $0x188] sm:$0xff] }
 0xcfe   :  { %12931 = vmatprep.subr.mxu1 %v11747_v48  ;;  %v13861_v5 = vpack.c.bf16 %v11752_v18, %v11751_v3 }
 0xd00   :  { %13862 = vmatprep.subr.bf16.mxu0 %v13861_v5 }
 0xdcb   :  { %v2517_v23 = vpop.f32.mrb[26].mxu1 }
 0xdcc   :  { %v2518_v24 = vadd.f32 %v2517_v23, %v14638_v21  ;;  %v12915_v26 = vpop.f32.mrb[27].mxu1  ;;  %v13877_v23 = vpack.c.bf16 %v11760_v63, %v11759_v22 }
 0xdce   :  { %v2597_v27 = vsel %vm499_vm4, %v2518_v24, -inf }
 0xdcf   :  { %2598 = vmax.xlane.f32.xlu0 %v2597_v27  ;;  %v2593_v28 = vpop.f32.mrb[28].mxu1 }
 0xdd0   :  { %v2594_v29 = vadd.f32 %v2593_v28, %v14644_v25  ;;  %v12920_v30 = vpop.f32.mrb[29].mxu1 }
 0xdd2   :  { %v2600_v31 = vsel %vm499_vm4, %v2594_v29, -inf }
 0xdd3   :  { %2601 = vmax.xlane.f32.xlu1 %v2600_v31 }
 0xe5c   :  { %v2599_v32 = vpop.xlane.xlu0 %2598 }
 0xe5d   :  { %v2603_v33 = vsub.f32 %v2518_v24, %v2599_v32 }
 0xe5f   :  { %v2605_v34 = vmul.f32 1.442695, %v2603_v33 }
 0xe60   :  { %v2602_v35 = vpop.xlane.xlu1 %2601 }
 0xe61   :  { %14307 = vpow2.f32 %v2605_v34  ;;  %v2604_v36 = vsub.f32 %v2594_v29, %v2602_v35 }
 0xe63   :  { %v2607_v37 = vmul.f32 1.442695, %v2604_v36 }
 0xe65   :  { %14309 = vpow2.f32 %v2607_v37 }
 0xe6b   :  { %v14308_v38 = vpop.eup %14307 }
 0xe6c   :  { %v2609_v39 = vsel %vm499_vm4, %v14308_v38, 0.0 }
 0xe6d   :  { %2610 = vadd.xlane.f32.xlu0 %v2609_v39  ;;  %v2886_v39 = vld [vmem:[%s16377_s0 + $0x58] sm:$0xff] }
 0xe6f   :  { %v14310_v40 = vpop.eup %14309 }
 0xe70   :  { %v2612_v41 = vsel %vm499_vm4, %v14310_v40, 0.0 }
 0xe71   :  { %2613 = vadd.xlane.f32.xlu1 %v2612_v41 }
 0xefa   :  { %v2611_v42 = vpop.xlane.xlu0 %2610 }
 0xefb   :  { %14311 = vrcp.f32 %v2611_v42 }
 0xefe   :  { %v2614_v43 = vpop.xlane.xlu1 %2613 }
 0xeff   :  { %14313 = vrcp.f32 %v2614_v43 }
 0xf05   :  { %v14312_v44 = vpop.eup %14311 }
 0xf06   :  { %v2617_v45 = vmul.f32 %v14312_v44, %v14308_v38 }
 0xf08   :  { %12924 = vmatmul.mubr.msk.f32.vlgmr.msra.gmra.mrb[28].mxu0 %vm499_vm4, %v2617_v45  ;;  %v2888_v45 = vld [vmem:[%s16377_s0 + $0xc8] sm:$0xff] }
 0xf09   :  { %v14314_v46 = vpop.eup %14313  ;;  %13864 = vmatpush3.bf16.msra.mxu0 %v13861_v5 }
 0xf0a   :  { %v2618_v47 = vmul.f32 %v14314_v46, %v14310_v40  ;;  %13866 = vmatprep.subr.bf16.mxu0 %v13865_v20  ;;  %v2885_v40 = vld [vmem:[%s16377_s0 + $0x50] sm:$0xff]  ;;  %v2887_v46 = vld [vmem:[%s16377_s0 + $0xc0] sm:$0xff] }
 0xf0c   :  { %12929 = vmatmul.mubr.msk.f32.vlgmr.msra.gmra.mrb[30].mxu1 %vm499_vm4, %v2618_v47 }
 0xf0d   :  { %12932 = vmatpush3.msra.mxu1 %v11747_v48  ;;  %13868 = vmatpush3.bf16.msra.mxu0 %v13865_v20 }
 0xf0e   :  { %13870 = vmatprep.subr.bf16.mxu1 %v13869_v51  ;;  %13878 = vmatprep.subr.bf16.mxu0 %v13877_v23 }
 0xfdb   :  { %v2688_v52 = vpop.f32.mrb[28].mxu0 }
 0xfdc   :  { %v12925_v56 = vpop.f32.mrb[29].mxu0  ;;  %12933 = vmatprep.mubr.msk.f32.mxu1 %vm499_vm4, %v2688_v52  ;;  %v11761_v52 = vld [vmem:[%s16378_s1 + $0x290] sm:$0xff] }
 0xfdf   :  { %v2761_v60 = vpop.f32.mrb[30].mxu1 }
 0xfe0   :  { %v12930_v61 = vpop.f32.mrb[31].mxu1  ;;  %12934 = vmatmul.mubr.msk.f32.vlgmr.msra.gmra.mrb[16].mxu1 %vm499_vm4, %v2761_v60  ;;  %v11763_v60 = vld [vmem:[%s16379_s5 + $0x10] ss:$0 sm:$0xff] }
 0xfe1   :  { %13872 = vmatpush3.bf16.msra.mxu1 %v13869_v51  ;;  %12955 = vmatprep.mubr.msk.f32.mxu1 %vm207_vm1, %v14919_v59 }
 0xfe2   :  { %13874 = vmatprep.subr.bf16.mxu1 %v13873_v58 }
 0xfe5   :  { %13876 = vmatpush3.bf16.msra.mxu1 %v13873_v58  ;;  %v13881_v58 = vpack.c.bf16 %v11762_v53, %v11761_v52  ;;  %v11789_v53 = vld [vmem:[%s16379_s5 + $0x11] ss:$0 sm:$0xff] }
 0xfe6   :  { %12969 = vmatprep.subr.mxu1 %v14457_v9 }
 0xfe8   :  { %12956 = vmatmul.mubr.msk.f32.vlgmr.msra.gmra.mrb[32].mxu1 %vm207_vm1, %v14925_v62 }
 0xfe9   :  { %12971 = vmatprep.mubr.msk.f32.mxu1 %vm14458_vm3, %v14457_v9 }
0x10b3   :  { %v12935_v8 = vpop.f32.mrb[16].mxu1 }
0x10b4   :  { %v2851_v1 = vadd.f32 %v12935_v8, %v14520_v10  ;;  %v2839_v2 = vpop.f32.mrb[17].mxu1 }
0x10b5   :  { %v2850_v4 = vadd.f32 %v2839_v2, %v14522_v11 }
0x10b6   :  { %v14937_v7 = vadd.f32 %v11750_v0, %v2851_v1 }
0x10b7   :  { %v14939_v6 = vadd.f32 %v11750_v0, %v2850_v4 }
0x10b8   :  { %v2862_v12 = vsel %vm207_vm1, %v14937_v7, 0.0  ;;  %v2868_v13 = vmul.f32 %v14937_v7, %v14937_v7 }
0x10b9   :  { %2863 = vadd.xlane.f32.xlu1 %v2862_v12  ;;  %v2859_v14 = vsel %vm207_vm1, %v14939_v6, 0.0  ;;  %v2867_v10 = vmul.f32 %v14939_v6, %v14939_v6 }
0x10ba   :  { %2860 = vadd.xlane.f32.xlu0 %v2859_v14  ;;  %v2872_v16 = vsel %vm207_vm1, %v2868_v13, 0.0 }
0x10bb   :  { %v14949_v15 = vpop.f32.mrb[32].mxu1  ;;  %v2869_v17 = vsel %vm207_vm1, %v2867_v10, 0.0 }
0x10bc   :  { %v3072_v11 = vpop.f32.mrb[33].mxu1 }
0x10bd   :  { %12970 = vmatpush3.xpose.msk.msra.mxu1 %vm499_vm4, %v3072_v11  ;;  %2873 = vadd.xlane.f32.xlu1 %v2872_v16 }
0x10be   :  { %2870 = vadd.xlane.f32.xlu0 %v2869_v17  ;;  %12979 = vmatprep.subr.mxu1 %v14457_v9 }
0x1146   :  { %v2864_v24 = vpop.xlane.xlu1 %2863 }
0x1147   :  { %v2866_v26 = vmul.f32 0.03125, %v2864_v24  ;;  %v2861_v27 = vpop.xlane.xlu0 %2860  ;;  %v11782_v24 = vld [vmem:[%s16378_s1 + $0x228] sm:$0xff] }
0x1148   :  { %v2865_v28 = vmul.f32 0.03125, %v2861_v27  ;;  %v11777_v27 = vld [vmem:[%s16378_s1 + $0x1a0] sm:$0xff] }
0x1149   :  { %v2878_v30 = vmul.f32 %v2866_v26, %v2866_v26 }
0x114a   :  { %v2874_v29 = vpop.xlane.xlu1 %2873  ;;  %v2877_v33 = vmul.f32 %v2865_v28, %v2865_v28 }
0x114b   :  { %v2876_v31 = vmul.f32 0.03125, %v2874_v29  ;;  %v2871_v32 = vpop.xlane.xlu0 %2870 }
0x114c   :  { %v2875_v34 = vmul.f32 0.03125, %v2871_v32  ;;  %v11783_v32 = vld [vmem:[%s16378_s1 + $0x230] sm:$0xff] }
0x114d   :  { %v2880_v35 = vsub.f32 %v2876_v31, %v2878_v30 }
0x114e   :  { %v2879_v36 = vsub.f32 %v2875_v34, %v2877_v33  ;;  %v11784_v33 = vld [vmem:[%s16378_s1 + $0x238] sm:$0xff] }
0x114f   :  { %v2882_v37 = vadd.f32 1e-05, %v2880_v35  ;;  %v11779_v35 = vld [vmem:[%s16378_s1 + $0x1b0] sm:$0xff] }
0x1150   :  { %v2881_v38 = vadd.f32 1e-05, %v2879_v36  ;;  %v11780_v36 = vld [vmem:[%s16378_s1 + $0x1b8] sm:$0xff] }
0x1151   :  { %14315 = vrsqrt.f32 %v2882_v37 }
0x1152   :  { %14317 = vrsqrt.f32 %v2881_v38 }
0x115b   :  { %v14316_v41 = vpop.eup %14315 }
0x115c   :  { %v14318_v42 = vpop.eup %14317  ;;  %v2890_v43 = vmul.f32 %v14316_v41, %v2886_v39  ;;  %v13889_v41 = vpack.c.bf16 %v11780_v36, %v11779_v35  ;;  %v11817_v36 = vld [vmem:[%s16378_s1 + $0x2c0] sm:$0xff] }
0x115d   :  { %v2889_v44 = vmul.f32 %v14318_v42, %v2885_v40  ;;  %v13897_v40 = vpack.c.bf16 %v11784_v33, %v11783_v32  ;;  %v11785_v42 = vld [vmem:[%s16378_s1 + $0x2a0] sm:$0xff]  ;;  %v11812_v32 = vld [vmem:[%s16378_s1 + $0x1d8] sm:$0xff] }
0x115e   :  { %v2894_v47 = vmul.f32 %v2890_v43, %v2866_v26  ;;  %v2892_v54 = vmul.f32 %v2890_v43, %v14937_v7  ;;  %v11786_v43 = vld [vmem:[%s16378_s1 + $0x2a8] sm:$0xff] }
0x115f   :  { %v2893_v48 = vmul.f32 %v2889_v44, %v2865_v28  ;;  %v2891_v50 = vmul.f32 %v2889_v44, %v14939_v6  ;;  %v11778_v28 = vld [vmem:[%s16378_s1 + $0x1a8] sm:$0xff]  ;;  %v13901_v44 = vpack.c.bf16 %v11786_v43, %v11785_v42  ;;  %v11776_v43 = vld [vmem:[%s16380_s2 + $0x20] sm:$0xff] }
0x1160   :  { %v2896_v49 = vsub.f32 %v2888_v45, %v2894_v47  ;;  %v13885_v29 = vpack.c.bf16 %v11778_v28, %v11777_v27  ;;  %v11787_v45 = vld [vmem:[%s16378_s1 + $0x2b0] sm:$0xff]  ;;  %v11804_v42 = vld [vmem:[%s16380_s2 + $0x28] sm:$0xff] }
0x1161   :  { %v2895_v51 = vsub.f32 %v2887_v46, %v2893_v48  ;;  %v11788_v46 = vld [vmem:[%s16378_s1 + $0x2b8] sm:$0xff] }
0x1162   :  { %v14995_v56 = vadd.f32 %v2896_v49, %v2892_v54  ;;  %v13905_v47 = vpack.c.bf16 %v11788_v46, %v11787_v45  ;;  %v11813_v45 = vld [vmem:[%s16378_s1 + $0x240] sm:$0xff]  ;;  %v11814_v46 = vld [vmem:[%s16378_s1 + $0x248] sm:$0xff] }
0x1163   :  { %v14993_v55 = vadd.f32 %v2895_v51, %v2891_v50 }
0x1165   :  { %12944 = vmatprep.mubr.msk.f32.mxu0 %vm207_vm1, %v14993_v55 }
0x1166   :  { %12945 = vmatmul.mubr.msk.f32.vlgmr.msra.gmra.mrb[30].mxu0 %vm207_vm1, %v14995_v56 }
0x1167   :  { %13880 = vmatpush3.bf16.msra.mxu0 %v13877_v23  ;;  %12966 = vmatprep.mubr.msk.f32.mxu0 %vm207_vm1, %v14919_v59  ;;  %v11781_v23 = vld [vmem:[%s16378_s1 + $0x220] sm:$0xff] }
0x1168   :  { %13882 = vmatprep.subr.bf16.mxu0 %v13881_v58  ;;  %v13893_v26 = vpack.c.bf16 %v11782_v24, %v11781_v23  ;;  %v11809_v23 = vld [vmem:[%s16378_s1 + $0x1c0] sm:$0xff]  ;;  %v11810_v24 = vld [vmem:[%s16378_s1 + $0x1c8] sm:$0xff] }
0x116b   :  { %13884 = vmatpush3.bf16.msra.mxu0 %v13881_v58 }
0x116c   :  { %12974 = vmatprep.subr.mxu0 %v14457_v9 }
0x116e   :  { %12967 = vmatmul.mubr.msk.f32.vlgmr.msra.gmra.mrb[32].mxu0 %vm207_vm1, %v14925_v62 }
0x116f   :  { %12976 = vmatprep.mubr.msk.f32.mxu0 %vm14458_vm3, %v14457_v9 }
0x1174   :  { %12975 = vmatpush3.xpose.msk.msra.mxu0 %vm499_vm4, %v14949_v15 }
0x1175   :  { %12984 = vmatprep.subr.mxu0 %v14457_v9 }
0x1239   :  { %v12946_v61 = vpop.f32.mrb[30].mxu0 }
0x123a   :  { %v2997_v8 = vadd.f32 %v12946_v61, %v11763_v60  ;;  %v2991_v0 = vpop.f32.mrb[31].mxu0 }
0x123b   :  { %v2992_v1 = vadd.f32 %v11763_v60, %v2991_v0 }
0x123c   :  { %12977 = vmatmul.mubr.msk.f32.vlgmr.msra.gmra.mrb[34].mxu0 %vm499_vm4, %v2997_v8 }
0x123d   :  { %12972 = vmatmul.mubr.msk.f32.vlgmr.msra.gmra.mrb[34].mxu1 %vm499_vm4, %v2992_v1  ;;  %12986 = vmatprep.mubr.msk.f32.mxu0 %vm14458_vm3, %v14457_v9 }
0x123e   :  { %12981 = vmatprep.mubr.msk.f32.mxu1 %vm14458_vm3, %v14457_v9 }
0x1241   :  { %v12968_v2 = vpop.f32.mrb[32].mxu0 }
0x1242   :  { %v3147_v4 = vpop.f32.mrb[33].mxu0  ;;  %12985 = vmatpush3.msra.mxu0 %v12968_v2 }
0x1243   :  { %12980 = vmatpush3.msra.mxu1 %v3147_v4  ;;  %13894 = vmatprep.subr.bf16.mxu0 %v13893_v26  ;;  %v15110_v4 = vld [vmem:[%s16377_s0 + $0x30] sm:$0xff] }
0x1244   :  { %13886 = vmatprep.subr.bf16.mxu1 %v13885_v29 }
0x130f   :  { %v3304_v12 = vpop.f32.mrb[34].mxu0 }
0x1310   :  { %v3305_v13 = vadd.f32 %v3304_v12, %v14644_v25  ;;  %v3228_v14 = vpop.f32.mrb[34].mxu1  ;;  %v12978_v10 = vpop.f32.mrb[35].mxu0 }
0x1311   :  { %v3229_v15 = vadd.f32 %v3228_v14, %v14638_v21  ;;  %v12973_v11 = vpop.f32.mrb[35].mxu1 }
0x1312   :  { %v3311_v16 = vsel %vm499_vm4, %v3305_v13, -inf }
0x1313   :  { %3312 = vmax.xlane.f32.xlu0 %v3311_v16  ;;  %v3308_v17 = vsel %vm499_vm4, %v3229_v15, -inf }
0x1314   :  { %3309 = vmax.xlane.f32.xlu1 %v3308_v17 }
0x13a0   :  { %v3313_v3 = vpop.xlane.xlu0 %3312 }
0x13a1   :  { %v3315_v18 = vsub.f32 %v3305_v13, %v3313_v3  ;;  %v3310_v5 = vpop.xlane.xlu1 %3309 }
0x13a2   :  { %v3314_v19 = vsub.f32 %v3229_v15, %v3310_v5  ;;  %v15117_v15 = vld [vmem:[%s16377_s0 + $0x38] sm:$0xff] }
0x13a3   :  { %v3318_v57 = vmul.f32 1.442695, %v3315_v18 }
0x13a4   :  { %v3316_v20 = vmul.f32 1.442695, %v3314_v19 }
0x13a5   :  { %14319 = vpow2.f32 %v3318_v57 }
0x13a6   :  { %14321 = vpow2.f32 %v3316_v20 }
0x13af   :  { %v14320_v25 = vpop.eup %14319 }
0x13b0   :  { %v14322_v22 = vpop.eup %14321  ;;  %v3323_v63 = vsel %vm499_vm4, %v14320_v25, 0.0 }
0x13b1   :  { %3324 = vadd.xlane.f32.xlu0 %v3323_v63  ;;  %v3320_v21 = vsel %vm499_vm4, %v14322_v22, 0.0 }
0x13b2   :  { %3321 = vadd.xlane.f32.xlu1 %v3320_v21 }
0x143e   :  { %v3325_v30 = vpop.xlane.xlu0 %3324 }
0x143f   :  { %14323 = vrcp.f32 %v3325_v30  ;;  %v3322_v31 = vpop.xlane.xlu1 %3321 }
0x1440   :  { %14325 = vrcp.f32 %v3322_v31  ;;  %v11811_v31 = vld [vmem:[%s16378_s1 + $0x1d0] sm:$0xff] }
0x1441   :  { %v13913_v35 = vpack.c.bf16 %v11812_v32, %v11811_v31  ;;  %v11841_v32 = vld [vmem:[%s16378_s1 + $0x1f0] sm:$0xff] }
0x1449   :  { %v14324_v34 = vpop.eup %14323 }
0x144a   :  { %v14326_v37 = vpop.eup %14325  ;;  %v3329_v38 = vmul.f32 %v14324_v34, %v14320_v25 }
0x144b   :  { %v3328_v39 = vmul.f32 %v14326_v37, %v14322_v22  ;;  %v11818_v37 = vld [vmem:[%s16378_s1 + $0x2c8] sm:$0xff] }
0x144c   :  { %3331 = vst.msk [vmem:[%s16381_s7 + $0x8] sm:$0xff] %vm499_vm4, %v3329_v38  ;;  %12987 = vmatmul.mubr.msk.f32.vlgmr.msra.gmra.mrb[36].mxu0 %vm499_vm4, %v3329_v38  ;;  %v13925_v38 = vpack.c.bf16 %v11818_v37, %v11817_v36 }
0x144d   :  { %3330 = vst.msk [vmem:[%s16381_s7] sm:$0xff] %vm499_vm4, %v3328_v39  ;;  %13896 = vmatpush3.bf16.msra.mxu0 %v13893_v26  ;;  %12982 = vmatmul.mubr.msk.f32.vlgmr.msra.gmra.mrb[36].mxu1 %vm499_vm4, %v3328_v39  ;;  %v13909_v26 = vpack.c.bf16 %v11810_v24, %v11809_v23  ;;  %v11819_v39 = vld [vmem:[%s16378_s1 + $0x2d0] sm:$0xff] }
0x144e   :  { %13888 = vmatpush3.bf16.msra.mxu1 %v13885_v29  ;;  %13008 = vmatprep.mubr.msk.f32.mxu0 %vm207_vm1, %v14919_v59 }
0x144f   :  { %12997 = vmatprep.mubr.msk.f32.mxu1 %vm207_vm1, %v14993_v55  ;;  %13898 = vmatprep.subr.bf16.mxu0 %v13897_v40 }
0x1450   :  { %13890 = vmatprep.subr.bf16.mxu1 %v13889_v41 }
0x1451   :  { %13900 = vmatpush3.bf16.msra.mxu0 %v13897_v40  ;;  %v11820_v40 = vld [vmem:[%s16378_s1 + $0x2d8] sm:$0xff] }
0x1452   :  { %13892 = vmatpush3.bf16.msra.mxu1 %v13889_v41  ;;  %13022 = vmatprep.subr.mxu0 %v14457_v9  ;;  %v13929_v41 = vpack.c.bf16 %v11820_v40, %v11819_v39  ;;  %v11847_v39 = vld [vmem:[%s16378_s1 + $0x2e0] sm:$0xff]  ;;  %v11848_v40 = vld [vmem:[%s16378_s1 + $0x2e8] sm:$0xff] }
0x1453   :  { %13902 = vmatprep.subr.bf16.mxu1 %v13901_v44 }
0x1454   :  { %13009 = vmatmul.mubr.msk.f32.vlgmr.msra.gmra.mrb[38].mxu0 %vm207_vm1, %v14925_v62 }
0x1455   :  { %12998 = vmatmul.mubr.msk.f32.vlgmr.msra.gmra.mrb[38].mxu1 %vm207_vm1, %v14995_v56  ;;  %13024 = vmatprep.mubr.msk.f32.mxu0 %vm14458_vm3, %v14457_v9 }
0x1456   :  { %13904 = vmatpush3.bf16.msra.mxu1 %v13901_v44  ;;  %13019 = vmatprep.mubr.msk.f32.mxu1 %vm207_vm1, %v14919_v59 }
0x1457   :  { %13906 = vmatprep.subr.bf16.mxu1 %v13905_v47 }
0x145a   :  { %13908 = vmatpush3.bf16.msra.mxu1 %v13905_v47 }
0x145b   :  { %13032 = vmatprep.subr.mxu1 %v14457_v9 }
0x145d   :  { %13020 = vmatmul.mubr.msk.f32.vlgmr.msra.gmra.mrb[40].mxu1 %vm207_vm1, %v14925_v62 }
0x145e   :  { %13034 = vmatprep.mubr.msk.f32.mxu1 %vm14458_vm3, %v14457_v9 }
0x151f   :  { %v15090_v48 = vpop.f32.mrb[36].mxu0 }
0x1520   :  { %v15092_v49 = vpop.f32.mrb[36].mxu1  ;;  %v12988_v50 = vpop.f32.mrb[37].mxu0 }
0x1521   :  { %v12983_v51 = vpop.f32.mrb[37].mxu1  ;;  %v13917_v50 = vpack.c.bf16 %v11814_v46, %v11813_v45  ;;  %v11845_v46 = vld [vmem:[%s16378_s1 + $0x270] sm:$0xff] }
0x1527   :  { %v13010_v52 = vpop.f32.mrb[38].mxu0 }
0x1528   :  { %v12999_v54 = vpop.f32.mrb[38].mxu1  ;;  %v3641_v58 = vpop.f32.mrb[39].mxu0 }
0x1529   :  { %v3566_v60 = vpop.f32.mrb[39].mxu1  ;;  %13023 = vmatpush3.xpose.msk.msra.mxu0 %vm499_vm4, %v3641_v58  ;;  %v3572_v8 = vadd.f32 %v12999_v54, %v11789_v53  ;;  %v11816_v54 = vld [vmem:[%s16378_s1 + $0x258] sm:$0xff] }
0x152a   :  { %v3567_v61 = vadd.f32 %v11789_v53, %v3566_v60  ;;  %13027 = vmatprep.subr.mxu0 %v14457_v9  ;;  %v11815_v53 = vld [vmem:[%s16378_s1 + $0x250] sm:$0xff] }
0x152b   :  { %v13921_v58 = vpack.c.bf16 %v11816_v54, %v11815_v53 }
0x152c   :  { %13025 = vmatmul.mubr.msk.f32.vlgmr.msra.gmra.mrb[40].mxu0 %vm499_vm4, %v3567_v61 }
0x152d   :  { %13028 = vmatpush3.xpose.msk.msra.mxu0 %vm499_vm4, %v13010_v52  ;;  %13029 = vmatprep.mubr.msk.f32.mxu0 %vm14458_vm3, %v14457_v9 }
0x152e   :  { %13037 = vmatprep.subr.mxu0 %v14457_v9 }
0x1530   :  { %v13021_v0 = vpop.f32.mrb[40].mxu1  ;;  %13030 = vmatmul.mubr.msk.f32.vlgmr.msra.gmra.mrb[42].mxu0 %vm499_vm4, %v3572_v8 }
0x1531   :  { %v3716_v1 = vpop.f32.mrb[41].mxu1  ;;  %13038 = vmatpush3.msra.mxu0 %v13021_v0  ;;  %13039 = vmatprep.mubr.msk.f32.mxu0 %vm14458_vm3, %v14457_v9 }
0x1532   :  { %13033 = vmatpush3.msra.mxu1 %v3716_v1  ;;  %13910 = vmatprep.subr.bf16.mxu0 %v13909_v26 }
0x1533   :  { %13042 = vmatprep.subr.mxu1 %v11804_v42 }
0x15ff   :  { %v3797_v2 = vpop.f32.mrb[40].mxu0 }
0x1600   :  { %v3798_v12 = vadd.f32 %v15110_v4, %v3797_v2  ;;  %v13026_v13 = vpop.f32.mrb[41].mxu0 }
0x1602   :  { %v3877_v14 = vsel %vm499_vm4, %v3798_v12, -inf }
0x1603   :  { %3878 = vmax.xlane.f32.xlu0 %v3877_v14  ;;  %v3873_v10 = vpop.f32.mrb[42].mxu0 }
0x1604   :  { %v3874_v11 = vadd.f32 %v15117_v15, %v3873_v10  ;;  %v13031_v16 = vpop.f32.mrb[43].mxu0 }
0x1606   :  { %v3880_v17 = vsel %vm499_vm4, %v3874_v11, -inf }
0x1607   :  { %3881 = vmax.xlane.f32.xlu1 %v3880_v17 }
0x1690   :  { %v3879_v3 = vpop.xlane.xlu0 %3878 }
0x1691   :  { %v3883_v18 = vsub.f32 %v3798_v12, %v3879_v3 }
0x1693   :  { %v3885_v5 = vmul.f32 1.442695, %v3883_v18 }
0x1694   :  { %v3882_v19 = vpop.xlane.xlu1 %3881 }
0x1695   :  { %14327 = vpow2.f32 %v3885_v5  ;;  %v3884_v57 = vsub.f32 %v3874_v11, %v3882_v19 }
0x1697   :  { %v3887_v20 = vmul.f32 1.442695, %v3884_v57 }
0x1699   :  { %14329 = vpow2.f32 %v3887_v20 }
0x169f   :  { %v14328_v25 = vpop.eup %14327 }
0x16a0   :  { %v3889_v22 = vsel %vm499_vm4, %v14328_v25, 0.0 }
0x16a1   :  { %3890 = vadd.xlane.f32.xlu0 %v3889_v22 }
0x16a3   :  { %v14330_v63 = vpop.eup %14329 }
0x16a4   :  { %v3892_v21 = vsel %vm499_vm4, %v14330_v63, 0.0 }
0x16a5   :  { %3893 = vadd.xlane.f32.xlu1 %v3892_v21 }
0x172e   :  { %v3891_v27 = vpop.xlane.xlu0 %3890 }
0x172f   :  { %14331 = vrcp.f32 %v3891_v27  ;;  %v11840_v27 = vld [vmem:[%s16378_s1 + $0x1e8] sm:$0xff] }
0x1732   :  { %v3894_v28 = vpop.xlane.xlu1 %3893 }
0x1733   :  { %14333 = vrcp.f32 %v3894_v28 }
0x1739   :  { %v14332_v29 = vpop.eup %14331 }
0x173a   :  { %v3897_v30 = vmul.f32 %v14332_v29, %v14328_v25  ;;  %v11836_v29 = vld [vmem:[%s16380_s2 + $0x30] sm:$0xff] }
0x173c   :  { %11800 = vst.msk [vmem:[%s16381_s7 + $0x10] sm:$0xff] %vm499_vm4, %v3897_v30  ;;  %13035 = vmatmul.mubr.msk.f32.vlgmr.msra.gmra.mrb[42].mxu1 %vm499_vm4, %v3897_v30 }
0x173d   :  { %v14334_v33 = vpop.eup %14333  ;;  %13043 = vmatpush3.msra.mxu1 %v11804_v42  ;;  %v11849_v42 = vld [vmem:[%s16378_s1 + $0x2f0] sm:$0xff] }
0x173e   :  { %v3898_v34 = vmul.f32 %v14334_v33, %v14330_v63  ;;  %13047 = vmatprep.subr.mxu1 %v11776_v43  ;;  %v11842_v33 = vld [vmem:[%s16378_s1 + $0x1f8] sm:$0xff] }
0x173f   :  { %v13937_v37 = vpack.c.bf16 %v11842_v33, %v11841_v32 }
0x1740   :  { %11801 = vst.msk [vmem:[%s16381_s7 + $0x18] sm:$0xff] %vm499_vm4, %v3898_v34  ;;  %13040 = vmatmul.mubr.msk.f32.vlgmr.msra.gmra.mrb[44].mxu0 %vm499_vm4, %v3898_v34 }
0x1741   :  { %13912 = vmatpush3.bf16.msra.mxu0 %v13909_v26  ;;  %13060 = vmatprep.mubr.msk.f32.mxu0 %vm207_vm1, %v14993_v55  ;;  %v11839_v26 = vld [vmem:[%s16378_s1 + $0x1e0] sm:$0xff] }
0x1742   :  { %13914 = vmatprep.subr.bf16.mxu0 %v13913_v35  ;;  %v13933_v28 = vpack.c.bf16 %v11840_v27, %v11839_v26 }
0x1745   :  { %13916 = vmatpush3.bf16.msra.mxu0 %v13913_v35 }
0x1746   :  { %13926 = vmatprep.subr.bf16.mxu0 %v13925_v38 }
0x1748   :  { %13061 = vmatmul.mubr.msk.f32.vlgmr.msra.gmra.mrb[46].mxu0 %vm207_vm1, %v14995_v56 }
0x1749   :  { %13928 = vmatpush3.bf16.msra.mxu0 %v13925_v38  ;;  %13082 = vmatprep.mubr.msk.f32.mxu0 %vm207_vm1, %v14919_v59 }
0x174a   :  { %13930 = vmatprep.subr.bf16.mxu0 %v13929_v41 }
0x174d   :  { %13932 = vmatpush3.bf16.msra.mxu0 %v13929_v41  ;;  %v13949_v41 = vpack.c.bf16 %v11848_v40, %v11847_v39 }
0x174e   :  { %13090 = vmatprep.subr.mxu0 %v14457_v9 }
0x1750   :  { %13083 = vmatmul.mubr.msk.f32.vlgmr.msra.gmra.mrb[48].mxu0 %vm207_vm1, %v14925_v62 }
0x1751   :  { %13092 = vmatprep.mubr.msk.f32.mxu0 %vm14458_vm3, %v14457_v9 }
0x180f   :  { %v3971_v44 = vpop.f32.mrb[42].mxu1 }
0x1810   :  { %v13036_v47 = vpop.f32.mrb[43].mxu1  ;;  %13044 = vmatprep.mubr.msk.f32.mxu1 %vm499_vm4, %v3971_v44 }
0x1811   :  { %v11846_v47 = vld [vmem:[%s16378_s1 + $0x278] sm:$0xff] }
0x1812   :  { %v13945_v53 = vpack.c.bf16 %v11846_v47, %v11845_v46  ;;  %v5568_v46 = vld [vmem:[%s16382_s3 + $0x8] sm:$0xff]  ;;  %v5657_v47 = vld [vmem:[%s16382_s3 + $0x20] sm:$0xff] }
0x1813   :  { %v4044_v51 = vpop.f32.mrb[44].mxu0 }
0x1814   :  { %v13041_v52 = vpop.f32.mrb[45].mxu0  ;;  %13045 = vmatmul.mubr.msk.f32.vlgmr.msra.gmra.mrb[44].mxu1 %vm499_vm4, %v4044_v51 }
0x1815   :  { %13048 = vmatpush3.msra.mxu1 %v11776_v43  ;;  %13049 = vmatprep.mubr.msk.f32.mxu1 %vm499_vm4, %v15092_v49  ;;  %v11850_v43 = vld [vmem:[%s16378_s1 + $0x2f8] sm:$0xff] }
0x1816   :  { %13918 = vmatprep.subr.bf16.mxu1 %v13917_v50  ;;  %v13953_v44 = vpack.c.bf16 %v11850_v43, %v11849_v42 }
0x181b   :  { %v13062_v60 = vpop.f32.mrb[46].mxu0 }
0x181c   :  { %v4298_v61 = vpop.f32.mrb[47].mxu0  ;;  %13050 = vmatmul.mubr.msk.f32.vlgmr.msra.gmra.mrb[44].mxu1 %vm499_vm4, %v15090_v48  ;;  %v11821_v48 = vld [vmem:[%s16379_s5 + $0x12] ss:$0 sm:$0xff] }
0x181d   :  { %13920 = vmatpush3.bf16.msra.mxu1 %v13917_v50  ;;  %13071 = vmatprep.mubr.msk.f32.mxu1 %vm207_vm1, %v14919_v59  ;;  %v4304_v2 = vadd.f32 %v13062_v60, %v11821_v48  ;;  %v4299_v12 = vadd.f32 %v11821_v48, %v4298_v61 }
0x181e   :  { %13922 = vmatprep.subr.bf16.mxu1 %v13921_v58 }
0x1821   :  { %13924 = vmatpush3.bf16.msra.mxu1 %v13921_v58 }
0x1822   :  { %13085 = vmatprep.subr.mxu1 %v14457_v9 }
0x1823   :  { %v13084_v49 = vpop.f32.mrb[48].mxu0 }
0x1824   :  { %13072 = vmatmul.mubr.msk.f32.vlgmr.msra.gmra.mrb[46].mxu1 %vm207_vm1, %v14925_v62  ;;  %v4448_v8 = vpop.f32.mrb[49].mxu0 }
0x1825   :  { %13087 = vmatprep.mubr.msk.f32.mxu1 %vm14458_vm3, %v14457_v9 }
0x18f7   :  { %v13073_v0 = vpop.f32.mrb[46].mxu1 }
0x18f8   :  { %v4373_v1 = vpop.f32.mrb[47].mxu1  ;;  %13091 = vmatpush3.xpose.msk.msra.mxu0 %vm499_vm4, %v13073_v0 }
0x18f9   :  { %13086 = vmatpush3.xpose.msk.msra.mxu1 %vm499_vm4, %v4373_v1  ;;  %13100 = vmatprep.subr.mxu0 %v14457_v9 }
0x18fa   :  { %13095 = vmatprep.subr.mxu1 %v14457_v9 }
0x18fb   :  { %13093 = vmatmul.mubr.msk.f32.vlgmr.msra.gmra.mrb[50].mxu0 %vm499_vm4, %v4304_v2 }
0x18fc   :  { %13088 = vmatmul.mubr.msk.f32.vlgmr.msra.gmra.mrb[48].mxu1 %vm499_vm4, %v4299_v12  ;;  %13101 = vmatpush3.msra.mxu0 %v13084_v49 }
0x18fd   :  { %13096 = vmatpush3.msra.mxu1 %v4448_v8  ;;  %13102 = vmatprep.mubr.msk.f32.mxu0 %vm14458_vm3, %v14457_v9  ;;  %v11851_v8 = vld [vmem:[%s16379_s5 + $0x13] ss:$0 sm:$0xff] }
0x18fe   :  { %13097 = vmatprep.mubr.msk.f32.mxu1 %vm14458_vm3, %v14457_v9  ;;  %13934 = vmatprep.subr.bf16.mxu0 %v13933_v28 }
0x18ff   :  { %13105 = vmatprep.subr.mxu1 %v11836_v29 }
0x19ce   :  { %v4605_v13 = vpop.f32.mrb[50].mxu0 }
0x19cf   :  { %v4606_v14 = vadd.f32 %v15117_v15, %v4605_v13  ;;  %v4529_v10 = vpop.f32.mrb[48].mxu1  ;;  %v13094_v11 = vpop.f32.mrb[51].mxu0 }
0x19d0   :  { %v4530_v16 = vadd.f32 %v15110_v4, %v4529_v10  ;;  %v13089_v17 = vpop.f32.mrb[49].mxu1 }
0x19d1   :  { %v4612_v3 = vsel %vm499_vm4, %v4606_v14, -inf }
0x19d2   :  { %4613 = vmax.xlane.f32.xlu1 %v4612_v3  ;;  %v4609_v18 = vsel %vm499_vm4, %v4530_v16, -inf }
0x19d3   :  { %4610 = vmax.xlane.f32.xlu0 %v4609_v18 }
0x1a5f   :  { %v4614_v5 = vpop.xlane.xlu1 %4613 }
0x1a60   :  { %v4616_v19 = vsub.f32 %v4606_v14, %v4614_v5  ;;  %v4611_v57 = vpop.xlane.xlu0 %4610 }
0x1a61   :  { %v4615_v20 = vsub.f32 %v4530_v16, %v4611_v57 }
0x1a62   :  { %v4619_v25 = vmul.f32 1.442695, %v4616_v19 }
0x1a63   :  { %v4617_v22 = vmul.f32 1.442695, %v4615_v20 }
0x1a64   :  { %14335 = vpow2.f32 %v4619_v25 }
0x1a65   :  { %14337 = vpow2.f32 %v4617_v22 }
0x1a6e   :  { %v14336_v63 = vpop.eup %14335 }
0x1a6f   :  { %v14338_v21 = vpop.eup %14337  ;;  %v4624_v23 = vsel %vm499_vm4, %v14336_v63, 0.0 }
0x1a70   :  { %4625 = vadd.xlane.f32.xlu1 %v4624_v23  ;;  %v4621_v24 = vsel %vm499_vm4, %v14338_v21, 0.0 }
0x1a71   :  { %4622 = vadd.xlane.f32.xlu0 %v4621_v24 }
0x1afd   :  { %v4626_v30 = vpop.xlane.xlu1 %4625 }
0x1afe   :  { %14339 = vrcp.f32 %v4626_v30  ;;  %v4623_v31 = vpop.xlane.xlu0 %4622 }
0x1aff   :  { %14341 = vrcp.f32 %v4623_v31  ;;  %v11866_v31 = vld [vmem:[%s16380_s2 + $0x38] sm:$0xff] }
0x1b08   :  { %v14340_v34 = vpop.eup %14339 }
0x1b09   :  { %v14342_v35 = vpop.eup %14341  ;;  %v4630_v36 = vmul.f32 %v14340_v34, %v14336_v63 }
0x1b0a   :  { %v4629_v38 = vmul.f32 %v14342_v35, %v14338_v21 }
0x1b0b   :  { %11833 = vst.msk [vmem:[%s16381_s7 + $0x28] sm:$0xff] %vm499_vm4, %v4630_v36  ;;  %13103 = vmatmul.mubr.msk.f32.vlgmr.msra.gmra.mrb[52].mxu0 %vm499_vm4, %v4630_v36 }
0x1b0c   :  { %11832 = vst.msk [vmem:[%s16381_s7 + $0x20] sm:$0xff] %vm499_vm4, %v4629_v38  ;;  %13936 = vmatpush3.bf16.msra.mxu0 %v13933_v28  ;;  %13098 = vmatmul.mubr.msk.f32.vlgmr.msra.gmra.mrb[50].mxu1 %vm499_vm4, %v4629_v38 }
0x1b0d   :  { %13118 = vmatprep.mubr.msk.f32.mxu0 %vm207_vm1, %v14993_v55  ;;  %13938 = vmatprep.subr.bf16.mxu0 %v13937_v37  ;;  %v11843_v55 = vld [vmem:[%s16378_s1 + $0x260] sm:$0xff] }
0x1b0e   :  { %13106 = vmatpush3.msra.mxu1 %v11836_v29 }
0x1b10   :  { %13940 = vmatpush3.bf16.msra.mxu0 %v13937_v37  ;;  %v11869_v37 = vld [vmem:[%s16379_s5 + $0x3] ss:$0 sm:$0xff] }
0x1b11   :  { %13950 = vmatprep.subr.bf16.mxu0 %v13949_v41 }
0x1b13   :  { %13119 = vmatmul.mubr.msk.f32.vlgmr.msra.gmra.mrb[54].mxu0 %vm207_vm1, %v14995_v56  ;;  %v11844_v56 = vld [vmem:[%s16378_s1 + $0x268] sm:$0xff] }
0x1b14   :  { %13952 = vmatpush3.bf16.msra.mxu0 %v13949_v41  ;;  %13140 = vmatprep.mubr.msk.f32.mxu0 %vm207_vm1, %v14919_v59  ;;  %v13941_v45 = vpack.c.bf16 %v11844_v56, %v11843_v55 }
0x1b15   :  { %13954 = vmatprep.subr.bf16.mxu0 %v13953_v44 }
0x1b16   :  { %13942 = vmatprep.subr.bf16.mxu1 %v13941_v45 }
0x1b18   :  { %13956 = vmatpush3.bf16.msra.mxu0 %v13953_v44 }
0x1b19   :  { %13153 = vmatprep.subr.mxu0 %v14457_v9 }
0x1b1b   :  { %13141 = vmatmul.mubr.msk.f32.vlgmr.msra.gmra.mrb[56].mxu0 %vm207_vm1, %v14925_v62 }
0x1b1c   :  { %13155 = vmatprep.mubr.msk.f32.mxu0 %vm14458_vm3, %v14457_v9 }
0x1bde   :  { %v4776_v50 = vpop.f32.mrb[52].mxu0 }
0x1bdf   :  { %v4703_v51 = vpop.f32.mrb[50].mxu1  ;;  %v13104_v52 = vpop.f32.mrb[53].mxu0 }
0x1be0   :  { %v13099_v54 = vpop.f32.mrb[51].mxu1  ;;  %13107 = vmatprep.mubr.msk.f32.mxu1 %vm499_vm4, %v4703_v51  ;;  %v5658_v51 = vld [vmem:[%s16382_s3 + $0x28] sm:$0xff]  ;;  %v5569_v52 = vld [vmem:[%s16382_s3 + $0x10] sm:$0xff] }
0x1be1   :  { %13108 = vmatmul.mubr.msk.f32.vlgmr.msra.gmra.mrb[44].mxu1 %vm499_vm4, %v4776_v50  ;;  %v13965_v54 = vpack.c.bf16 %v5658_v51, %v5657_v47  ;;  %v5770_v51 = vld [vmem:[%s16382_s3 + $0xa8] sm:$0xff] }
0x1be2   :  { %13944 = vmatpush3.bf16.msra.mxu1 %v13941_v45  ;;  %13129 = vmatprep.mubr.msk.f32.mxu1 %vm207_vm1, %v14919_v59  ;;  %v5567_v45 = vld [vmem:[%s16382_s3] sm:$0xff] }
0x1be3   :  { %13946 = vmatprep.subr.bf16.mxu1 %v13945_v53  ;;  %v13957_v50 = vpack.c.bf16 %v5568_v46, %v5567_v45  ;;  %v5767_v45 = vld [vmem:[%s16382_s3 + $0x90] sm:$0xff]  ;;  %v5768_v46 = vld [vmem:[%s16382_s3 + $0x98] sm:$0xff] }
0x1be4   :  { %v13993_v47 = vpack.c.bf16 %v5768_v46, %v5767_v45 }
0x1be6   :  { %v13120_v58 = vpop.f32.mrb[54].mxu0  ;;  %13948 = vmatpush3.bf16.msra.mxu1 %v13945_v53  ;;  %v5570_v53 = vld [vmem:[%s16382_s3 + $0x18] sm:$0xff] }
0x1be7   :  { %v4951_v60 = vpop.f32.mrb[55].mxu0  ;;  %13143 = vmatprep.subr.mxu1 %v14457_v9  ;;  %v4957_v2 = vadd.f32 %v13120_v58, %v11851_v8  ;;  %v13961_v58 = vpack.c.bf16 %v5570_v53, %v5569_v52  ;;  %v5771_v53 = vld [vmem:[%s16382_s3 + $0xb0] sm:$0xff] }
0x1be8   :  { %v4952_v1 = vadd.f32 %v11851_v8, %v4951_v60  ;;  %v5659_v60 = vld [vmem:[%s16382_s3 + $0x30] sm:$0xff] }
0x1be9   :  { %13130 = vmatmul.mubr.msk.f32.vlgmr.msra.gmra.mrb[52].mxu1 %vm207_vm1, %v14925_v62 }
0x1bea   :  { %13145 = vmatprep.mubr.msk.f32.mxu1 %vm14458_vm3, %v14457_v9 }
0x1bee   :  { %v13142_v61 = vpop.f32.mrb[56].mxu0 }
0x1bef   :  { %v5101_v49 = vpop.f32.mrb[57].mxu0 }
0x1bf0   :  { %13154 = vmatpush3.msra.mxu0 %v5101_v49 }
0x1bf1   :  { %13958 = vmatprep.subr.bf16.mxu0 %v13957_v50 }
0x1cbc   :  { %v13131_v48 = vpop.f32.mrb[52].mxu1 }
0x1cbd   :  { %v5026_v0 = vpop.f32.mrb[53].mxu1 }
0x1cbe   :  { %13144 = vmatpush3.xpose.msk.msra.mxu1 %vm499_vm4, %v5026_v0 }
0x1cbf   :  { %13148 = vmatprep.subr.mxu1 %v14457_v9 }
0x1cc1   :  { %13146 = vmatmul.mubr.msk.f32.vlgmr.msra.gmra.mrb[54].mxu1 %vm499_vm4, %v4952_v1 }
0x1cc2   :  { %13149 = vmatpush3.xpose.msk.msra.mxu1 %vm499_vm4, %v13131_v48  ;;  %13150 = vmatprep.mubr.msk.f32.mxu1 %vm14458_vm3, %v14457_v9 }
0x1cc3   :  { %13158 = vmatprep.subr.mxu1 %v14457_v9 }
0x1cc5   :  { %13151 = vmatmul.mubr.msk.f32.vlgmr.msra.gmra.mrb[56].mxu1 %vm499_vm4, %v4957_v2 }
0x1cc6   :  { %13159 = vmatpush3.msra.mxu1 %v13142_v61  ;;  %13160 = vmatprep.mubr.msk.f32.mxu1 %vm14458_vm3, %v14457_v9  ;;  %v5660_v61 = vld [vmem:[%s16382_s3 + $0x38] sm:$0xff] }
0x1cc7   :  { %13163 = vmatprep.subr.mxu1 %v11866_v31  ;;  %v13969_v49 = vpack.c.bf16 %v5660_v61, %v5659_v60  ;;  %v11870_v60 = vld [vmem:[%s16379_s5 + $0x4] ss:$0 sm:$0xff] }
0x1d94   :  { %v5182_v12 = vpop.f32.mrb[54].mxu1 }
0x1d95   :  { %v5183_v13 = vadd.f32 %v15110_v4, %v5182_v12  ;;  %v13147_v14 = vpop.f32.mrb[55].mxu1 }
0x1d97   :  { %v5262_v10 = vsel %vm499_vm4, %v5183_v13, -inf }
0x1d98   :  { %5263 = vmax.xlane.f32.xlu0 %v5262_v10  ;;  %v5258_v11 = vpop.f32.mrb[56].mxu1 }
0x1d99   :  { %v5259_v16 = vadd.f32 %v15117_v15, %v5258_v11  ;;  %v13152_v17 = vpop.f32.mrb[57].mxu1 }
0x1d9b   :  { %v5265_v3 = vsel %vm499_vm4, %v5259_v16, -inf }
0x1d9c   :  { %5266 = vmax.xlane.f32.xlu1 %v5265_v3 }
0x1e25   :  { %v5264_v18 = vpop.xlane.xlu0 %5263 }
0x1e26   :  { %v5268_v5 = vsub.f32 %v5183_v13, %v5264_v18 }
0x1e28   :  { %v5270_v19 = vmul.f32 1.442695, %v5268_v5  ;;  %v5554_v5 = vld [vmem:[%s16377_s0 + $0x68] sm:$0xff] }
0x1e29   :  { %v5267_v57 = vpop.xlane.xlu1 %5266 }
0x1e2a   :  { %14343 = vpow2.f32 %v5270_v19  ;;  %v5269_v20 = vsub.f32 %v5259_v16, %v5267_v57  ;;  %v5553_v19 = vld [vmem:[%s16377_s0 + $0x60] sm:$0xff] }
0x1e2c   :  { %v5272_v25 = vmul.f32 1.442695, %v5269_v20 }
0x1e2e   :  { %14345 = vpow2.f32 %v5272_v25 }
0x1e34   :  { %v14344_v22 = vpop.eup %14343 }
0x1e35   :  { %v5274_v63 = vsel %vm499_vm4, %v14344_v22, 0.0 }
0x1e36   :  { %5275 = vadd.xlane.f32.xlu0 %v5274_v63  ;;  %v5556_v63 = vld [vmem:[%s16377_s0 + $0xd8] sm:$0xff] }
0x1e38   :  { %v14346_v21 = vpop.eup %14345 }
0x1e39   :  { %v5277_v23 = vsel %vm499_vm4, %v14346_v21, 0.0 }
0x1e3a   :  { %5278 = vadd.xlane.f32.xlu1 %v5277_v23 }
0x1ec3   :  { %v5276_v24 = vpop.xlane.xlu0 %5275 }
0x1ec4   :  { %14347 = vrcp.f32 %v5276_v24 }
0x1ec7   :  { %v5279_v26 = vpop.xlane.xlu1 %5278 }
0x1ec8   :  { %14349 = vrcp.f32 %v5279_v26 }
0x1ece   :  { %v14348_v27 = vpop.eup %14347 }
0x1ecf   :  { %v5282_v28 = vmul.f32 %v14348_v27, %v14344_v22 }
0x1ed1   :  { %11862 = vst.msk [vmem:[%s16381_s7 + $0x30] sm:$0xff] %vm499_vm4, %v5282_v28  ;;  %13156 = vmatmul.mubr.msk.f32.vlgmr.msra.gmra.mrb[58].mxu0 %vm499_vm4, %v5282_v28 }
0x1ed2   :  { %v14350_v29 = vpop.eup %14349  ;;  %13960 = vmatpush3.bf16.msra.mxu0 %v13957_v50  ;;  %v5769_v50 = vld [vmem:[%s16382_s3 + $0xa0] sm:$0xff] }
0x1ed3   :  { %v5283_v30 = vmul.f32 %v14350_v29, %v14346_v21  ;;  %13962 = vmatprep.subr.bf16.mxu0 %v13961_v58  ;;  %v5555_v21 = vld [vmem:[%s16377_s0 + $0xd0] sm:$0xff]  ;;  %v13997_v52 = vpack.c.bf16 %v5770_v51, %v5769_v50 }
0x1ed5   :  { %11863 = vst.msk [vmem:[%s16381_s7 + $0x38] sm:$0xff] %vm499_vm4, %v5283_v30  ;;  %13161 = vmatmul.mubr.msk.f32.vlgmr.msra.gmra.mrb[58].mxu1 %vm499_vm4, %v5283_v30 }
0x1ed6   :  { %13164 = vmatpush3.msra.mxu1 %v11866_v31  ;;  %13964 = vmatpush3.bf16.msra.mxu0 %v13961_v58 }
0x1ed7   :  { %13966 = vmatprep.subr.bf16.mxu1 %v13965_v54 }
0x1fa4   :  { %v5356_v32 = vpop.f32.mrb[58].mxu0 }
0x1fa5   :  { %v13157_v33 = vpop.f32.mrb[59].mxu0  ;;  %13165 = vmatprep.mubr.msk.f32.mxu1 %vm499_vm4, %v5356_v32  ;;  %v5757_v32 = vld [vmem:[%s16382_s3 + $0x40] sm:$0xff] }
0x1fa6   :  { %v5758_v33 = vld [vmem:[%s16382_s3 + $0x48] sm:$0xff] }
0x1fa8   :  { %v5429_v34 = vpop.f32.mrb[58].mxu1 }
0x1fa9   :  { %v13162_v35 = vpop.f32.mrb[59].mxu1  ;;  %13166 = vmatmul.mubr.msk.f32.vlgmr.msra.gmra.mrb[44].mxu1 %vm499_vm4, %v5429_v34  ;;  %v13973_v34 = vpack.c.bf16 %v5758_v33, %v5757_v32  ;;  %v11879_v32 = vld [vmem:[%s16378_s1 + $0x300] sm:$0xff]  ;;  %v11880_v33 = vld [vmem:[%s16378_s1 + $0x308] sm:$0xff] }
0x1faa   :  { %13968 = vmatpush3.bf16.msra.mxu1 %v13965_v54  ;;  %v5759_v35 = vld [vmem:[%s16382_s3 + $0x50] sm:$0xff]  ;;  %v5772_v54 = vld [vmem:[%s16382_s3 + $0xb8] sm:$0xff] }
0x1fab   :  { %13970 = vmatprep.subr.bf16.mxu1 %v13969_v49  ;;  %13974 = vmatprep.subr.bf16.mxu0 %v13973_v34  ;;  %v14001_v58 = vpack.c.bf16 %v5772_v54, %v5771_v53 }
0x1fae   :  { %13972 = vmatpush3.bf16.msra.mxu1 %v13969_v49 }
0x207c   :  { %v13167_v36 = vpop.f32.mrb[44].mxu1 }
0x207d   :  { %v5519_v38 = vadd.f32 %v13167_v36, %v14937_v7  ;;  %v5507_v39 = vpop.f32.mrb[45].mxu1  ;;  %v5760_v36 = vld [vmem:[%s16382_s3 + $0x58] sm:$0xff] }
0x207e   :  { %v5518_v40 = vadd.f32 %v5507_v39, %v14939_v6  ;;  %v5762_v39 = vld [vmem:[%s16382_s3 + $0x68] sm:$0xff] }
0x207f   :  { %v15326_v41 = vadd.f32 %v11869_v37, %v5519_v38  ;;  %v5761_v38 = vld [vmem:[%s16382_s3 + $0x60] sm:$0xff] }
0x2080   :  { %v15328_v42 = vadd.f32 %v11869_v37, %v5518_v40  ;;  %v13977_v37 = vpack.c.bf16 %v5760_v36, %v5759_v35  ;;  %v13981_v40 = vpack.c.bf16 %v5762_v39, %v5761_v38  ;;  %v11881_v35 = vld [vmem:[%s16378_s1 + $0x310] sm:$0xff]  ;;  %v11882_v36 = vld [vmem:[%s16378_s1 + $0x318] sm:$0xff]  ;;  %v11883_v38 = vld [vmem:[%s16378_s1 + $0x380] sm:$0xff] }
0x2081   :  { %v5530_v43 = vsel %vm207_vm1, %v15326_v41, 0.0  ;;  %v5536_v44 = vmul.f32 %v15326_v41, %v15326_v41  ;;  %v11884_v39 = vld [vmem:[%s16378_s1 + $0x388] sm:$0xff] }
0x2082   :  { %5531 = vadd.xlane.f32.xlu1 %v5530_v43  ;;  %v5527_v55 = vsel %vm207_vm1, %v15328_v42, 0.0  ;;  %v5535_v7 = vmul.f32 %v15328_v42, %v15328_v42  ;;  %v5763_v43 = vld [vmem:[%s16382_s3 + $0x70] sm:$0xff] }
0x2083   :  { %5528 = vadd.xlane.f32.xlu0 %v5527_v55  ;;  %v5540_v6 = vsel %vm207_vm1, %v5536_v44, 0.0  ;;  %v5764_v44 = vld [vmem:[%s16382_s3 + $0x78] sm:$0xff] }
0x2084   :  { %v5537_v56 = vsel %vm207_vm1, %v5535_v7, 0.0  ;;  %v13985_v55 = vpack.c.bf16 %v5764_v44, %v5763_v43  ;;  %v5765_v7 = vld [vmem:[%s16382_s3 + $0x80] sm:$0xff] }
0x2086   :  { %5541 = vadd.xlane.f32.xlu1 %v5540_v6  ;;  %v5766_v6 = vld [vmem:[%s16382_s3 + $0x88] sm:$0xff] }
0x2087   :  { %5538 = vadd.xlane.f32.xlu0 %v5537_v56  ;;  %v13989_v56 = vpack.c.bf16 %v5766_v6, %v5765_v7 }
0x210f   :  { %v5532_v8 = vpop.xlane.xlu1 %5531 }
0x2110   :  { %v5534_v48 = vmul.f32 0.03125, %v5532_v8  ;;  %v5529_v0 = vpop.xlane.xlu0 %5528 }
0x2111   :  { %v5533_v1 = vmul.f32 0.03125, %v5529_v0 }
0x2112   :  { %v5546_v12 = vmul.f32 %v5534_v48, %v5534_v48 }
0x2113   :  { %v5542_v2 = vpop.xlane.xlu1 %5541  ;;  %v5545_v10 = vmul.f32 %v5533_v1, %v5533_v1 }
0x2114   :  { %v5544_v13 = vmul.f32 0.03125, %v5542_v2  ;;  %v5539_v14 = vpop.xlane.xlu0 %5538 }
0x2115   :  { %v5543_v11 = vmul.f32 0.03125, %v5539_v14 }
0x2116   :  { %v5548_v16 = vsub.f32 %v5544_v13, %v5546_v12 }
0x2117   :  { %v5547_v17 = vsub.f32 %v5543_v11, %v5545_v10 }
0x2118   :  { %v5550_v3 = vadd.f32 1e-05, %v5548_v16  ;;  %v11873_v16 = vld [vmem:[%s16379_s5 + $0x5] ss:$0 sm:$0xff] }
0x2119   :  { %v5549_v18 = vadd.f32 1e-05, %v5547_v17 }
0x211a   :  { %14351 = vrsqrt.f32 %v5550_v3 }
0x211b   :  { %14353 = vrsqrt.f32 %v5549_v18 }
0x2124   :  { %v14352_v57 = vpop.eup %14351 }
0x2125   :  { %v14354_v20 = vpop.eup %14353  ;;  %v5558_v25 = vmul.f32 %v14352_v57, %v5554_v5 }
0x2126   :  { %v5557_v22 = vmul.f32 %v14354_v20, %v5553_v19 }
0x2127   :  { %v5562_v23 = vmul.f32 %v5558_v25, %v5534_v48  ;;  %v5560_v29 = vmul.f32 %v5558_v25, %v15326_v41 }
0x2128   :  { %v5561_v24 = vmul.f32 %v5557_v22, %v5533_v1  ;;  %v5559_v27 = vmul.f32 %v5557_v22, %v15328_v42  ;;  %v11878_v22 = vld [vmem:[%s16379_s5 + $0x6] ss:$0 sm:$0xff] }
0x2129   :  { %v5564_v26 = vsub.f32 %v5556_v63, %v5562_v23 }
0x212a   :  { %v5563_v28 = vsub.f32 %v5555_v21, %v5561_v24 }
0x212b   :  { %v5566_v31 = vadd.f32 %v5564_v26, %v5560_v29 }
0x212c   :  { %v5565_v30 = vadd.f32 %v5563_v28, %v5559_v27 }
0x212e   :  { %13176 = vmatprep.mubr.msk.f32.mxu0 %vm207_vm1, %v5565_v30  ;;  %13187 = vmatprep.mubr.msk.f32.mxu1 %vm207_vm1, %v5565_v30 }
0x212f   :  { %13177 = vmatmul.mubr.msk.f32.vlgmr.msra.gmra.mrb[60].mxu0 %vm207_vm1, %v5566_v31  ;;  %13188 = vmatmul.mubr.msk.f32.vlgmr.msra.gmra.mrb[60].mxu1 %vm207_vm1, %v5566_v31 }
0x2130   :  { %13976 = vmatpush3.bf16.msra.mxu0 %v13973_v34  ;;  %v14005_v34 = vpack.c.bf16 %v11880_v33, %v11879_v32 }
0x2131   :  { %13978 = vmatprep.subr.bf16.mxu0 %v13977_v37 }
0x2132   :  { %14006 = vmatprep.subr.bf16.mxu1 %v14005_v34 }
0x2133   :  { %14008 = vmatpush3.bf16.msra.mxu1 %v14005_v34 }
0x2134   :  { %13980 = vmatpush3.bf16.msra.mxu0 %v13977_v37  ;;  %v14009_v37 = vpack.c.bf16 %v11882_v36, %v11881_v35 }
0x2135   :  { %13982 = vmatprep.subr.bf16.mxu0 %v13981_v40 }
0x2136   :  { %14010 = vmatprep.subr.bf16.mxu1 %v14009_v37 }
0x2137   :  { %14012 = vmatpush3.bf16.msra.mxu1 %v14009_v37 }
0x2138   :  { %13984 = vmatpush3.bf16.msra.mxu0 %v13981_v40  ;;  %v14013_v40 = vpack.c.bf16 %v11884_v39, %v11883_v38 }
0x2139   :  { %13986 = vmatprep.subr.bf16.mxu0 %v13985_v55 }
0x213a   :  { %14014 = vmatprep.subr.bf16.mxu1 %v14013_v40 }
0x213c   :  { %13988 = vmatpush3.bf16.msra.mxu0 %v13985_v55 }
0x213d   :  { %13990 = vmatprep.subr.bf16.mxu0 %v13989_v56 }
0x2140   :  { %13992 = vmatpush3.bf16.msra.mxu0 %v13989_v56 }
0x2141   :  { %13994 = vmatprep.subr.bf16.mxu0 %v13993_v47 }
0x2144   :  { %13996 = vmatpush3.bf16.msra.mxu0 %v13993_v47 }
0x2145   :  { %13998 = vmatprep.subr.bf16.mxu0 %v13997_v52 }
0x2148   :  { %14000 = vmatpush3.bf16.msra.mxu0 %v13997_v52 }
0x2149   :  { %14002 = vmatprep.subr.bf16.mxu0 %v14001_v58 }
0x214c   :  { %14004 = vmatpush3.bf16.msra.mxu0 %v14001_v58  ;;  %v5882_v58 = vld [vmem:[%s16377_s0 + $0x78] sm:$0xff] }
0x214d   :  { %13263 = vmatprep.subr.mxu0 %v14457_v9 }
0x2202   :  { %v13178_v61 = vpop.f32.mrb[60].mxu0  ;;  %v13189_v49 = vpop.f32.mrb[60].mxu1 }
0x2203   :  { %v5654_v8 = vadd.f32 %v13178_v61, %v11870_v60  ;;  %v5648_v48 = vpop.f32.mrb[61].mxu0  ;;  %v5732_v0 = vpop.f32.mrb[61].mxu1  ;;  %v5738_v5 = vadd.f32 %v13189_v49, %v11873_v16 }
0x2204   :  { %v5649_v1 = vadd.f32 %v11870_v60, %v5648_v48  ;;  %v5733_v57 = vadd.f32 %v11873_v16, %v5732_v0  ;;  %v5881_v60 = vld [vmem:[%s16377_s0 + $0x70] sm:$0xff]  ;;  %v5884_v48 = vld [vmem:[%s16377_s0 + $0xe8] sm:$0xff]  ;;  %v11886_v16 = vld [vmem:[%s16378_s1 + $0x398] sm:$0xff] }
0x2205   :  { %v11877_v2 = vmul.f32 -1.442695, %v5654_v8 }
0x2206   :  { %v11876_v12 = vmul.f32 -1.442695, %v5649_v1 }
0x2207   :  { %14355 = vpow2.f32 %v11877_v2  ;;  %v5883_v2 = vld [vmem:[%s16377_s0 + $0xe0] sm:$0xff] }
0x2208   :  { %14357 = vpow2.f32 %v11876_v12 }
0x2211   :  { %v14356_v13 = vpop.eup %14355 }
0x2212   :  { %v14358_v14 = vpop.eup %14357  ;;  %v5748_v10 = vadd.f32 1.0, %v14356_v13 }
0x2213   :  { %v5747_v11 = vadd.f32 1.0, %v14358_v14 }
0x2214   :  { %14359 = vrcp.f32 %v5748_v10 }
0x2215   :  { %14361 = vrcp.f32 %v5747_v11  ;;  %v11885_v11 = vld [vmem:[%s16378_s1 + $0x390] sm:$0xff] }
0x221e   :  { %v14360_v17 = vpop.eup %14359 }
0x221f   :  { %v14362_v3 = vpop.eup %14361  ;;  %v5754_v18 = vmul.f32 %v14360_v17, %v5654_v8 }
0x2220   :  { %v5753_v19 = vmul.f32 %v14362_v3, %v5649_v1 }
0x2221   :  { %v5756_v20 = vmul.f32 %v5754_v18, %v5738_v5  ;;  %v14017_v5 = vpack.c.bf16 %v11886_v16, %v11885_v11  ;;  %v11915_v16 = vld [vmem:[%s16378_s1 + $0x430] sm:$0xff] }
0x2222   :  { %v5755_v25 = vmul.f32 %v5753_v19, %v5733_v57  ;;  %v11887_v19 = vld [vmem:[%s16378_s1 + $0x400] sm:$0xff]  ;;  %v11888_v57 = vld [vmem:[%s16378_s1 + $0x408] sm:$0xff] }
0x2224   :  { %13222 = vmatprep.mubr.f32.mxu0 %v5755_v25  ;;  %v11889_v25 = vld [vmem:[%s16378_s1 + $0x410] sm:$0xff] }
0x2225   :  { %13223 = vmatmul.mubr.f32.vlgmr.msra.gmra.mrb[62].mxu0 %v5756_v20  ;;  %v14021_v20 = vpack.c.bf16 %v11888_v57, %v11887_v19 }
0x2226   :  { %13265 = vmatprep.mubr.msk.f32.mxu0 %vm14458_vm3, %v14457_v9 }
0x22f8   :  { %v13224_v63 = vpop.f32.mrb[62].mxu0 }
0x22f9   :  { %v5850_v21 = vadd.f32 %v13224_v63, %v11878_v22  ;;  %v5844_v23 = vpop.f32.mrb[63].mxu0 }
0x22fa   :  { %v5845_v24 = vadd.f32 %v11878_v22, %v5844_v23  ;;  %v11890_v22 = vld [vmem:[%s16378_s1 + $0x418] sm:$0xff] }
0x22fb   :  { %v15443_v26 = vadd.f32 %v5850_v21, %v15326_v41  ;;  %v14025_v63 = vpack.c.bf16 %v11890_v22, %v11889_v25 }
0x22fc   :  { %v15446_v27 = vadd.f32 %v5845_v24, %v15328_v42  ;;  %v11891_v24 = vld [vmem:[%s16379_s5 + $0x14] ss:$0 sm:$0xff] }
0x22fd   :  { %v5858_v28 = vsel %vm207_vm1, %v15443_v26, 0.0  ;;  %v5864_v29 = vmul.f32 %v15443_v26, %v15443_v26 }
0x22fe   :  { %5859 = vadd.xlane.f32.xlu1 %v5858_v28  ;;  %v5855_v30 = vsel %vm207_vm1, %v15446_v27, 0.0  ;;  %v5863_v31 = vmul.f32 %v15446_v27, %v15446_v27 }
0x22ff   :  { %5856 = vadd.xlane.f32.xlu0 %v5855_v30  ;;  %v5868_v41 = vsel %vm207_vm1, %v5864_v29, 0.0 }
0x2300   :  { %v5865_v42 = vsel %vm207_vm1, %v5863_v31, 0.0 }
0x2302   :  { %5869 = vadd.xlane.f32.xlu1 %v5868_v41 }
0x2303   :  { %5866 = vadd.xlane.f32.xlu0 %v5865_v42 }
0x238b   :  { %v5860_v43 = vpop.xlane.xlu1 %5859 }
0x238c   :  { %v5862_v44 = vmul.f32 0.03125, %v5860_v43  ;;  %v5857_v55 = vpop.xlane.xlu0 %5856 }
0x238d   :  { %v5861_v7 = vmul.f32 0.03125, %v5857_v55 }
0x238e   :  { %v5874_v56 = vmul.f32 %v5862_v44, %v5862_v44 }
0x238f   :  { %v5870_v6 = vpop.xlane.xlu1 %5869  ;;  %v5873_v47 = vmul.f32 %v5861_v7, %v5861_v7 }
0x2390   :  { %v5872_v45 = vmul.f32 0.03125, %v5870_v6  ;;  %v5867_v46 = vpop.xlane.xlu0 %5866 }
0x2391   :  { %v5871_v50 = vmul.f32 0.03125, %v5867_v46  ;;  %v11909_v46 = vld [vmem:[%s16378_s1 + $0x3a0] sm:$0xff] }
0x2392   :  { %v5876_v51 = vsub.f32 %v5872_v45, %v5874_v56 }
0x2393   :  { %v5875_v52 = vsub.f32 %v5871_v50, %v5873_v47  ;;  %v11910_v47 = vld [vmem:[%s16378_s1 + $0x3a8] sm:$0xff] }
0x2394   :  { %v5878_v53 = vadd.f32 1e-05, %v5876_v51  ;;  %v14037_v50 = vpack.c.bf16 %v11910_v47, %v11909_v46  ;;  %v11905_v51 = vld [vmem:[%s16378_s1 + $0x320] sm:$0xff]  ;;  %v11936_v47 = vld [vmem:[%s16378_s1 + $0x348] sm:$0xff] }
0x2395   :  { %v5877_v54 = vadd.f32 1e-05, %v5875_v52  ;;  %v11906_v52 = vld [vmem:[%s16378_s1 + $0x328] sm:$0xff]  ;;  %v11935_v46 = vld [vmem:[%s16378_s1 + $0x340] sm:$0xff] }
0x2396   :  { %14363 = vrsqrt.f32 %v5878_v53  ;;  %v14029_v53 = vpack.c.bf16 %v11906_v52, %v11905_v51 }
0x2397   :  { %14365 = vrsqrt.f32 %v5877_v54 }
0x23a0   :  { %v14364_v61 = vpop.eup %14363 }
0x23a1   :  { %v14366_v49 = vpop.eup %14365  ;;  %v5886_v8 = vmul.f32 %v14364_v61, %v5882_v58  ;;  %v11912_v61 = vld [vmem:[%s16378_s1 + $0x3b8] sm:$0xff] }
0x23a2   :  { %v5885_v0 = vmul.f32 %v14366_v49, %v5881_v60  ;;  %v11911_v60 = vld [vmem:[%s16378_s1 + $0x3b0] sm:$0xff] }
0x23a3   :  { %v5890_v1 = vmul.f32 %v5886_v8, %v5862_v44  ;;  %v5888_v17 = vmul.f32 %v5886_v8, %v15443_v26  ;;  %v11907_v8 = vld [vmem:[%s16378_s1 + $0x330] sm:$0xff] }
0x23a4   :  { %v5889_v12 = vmul.f32 %v5885_v0, %v5861_v7  ;;  %v5887_v14 = vmul.f32 %v5885_v0, %v15446_v27 }
0x23a5   :  { %v5892_v13 = vsub.f32 %v5884_v48, %v5890_v1  ;;  %v11908_v48 = vld [vmem:[%s16378_s1 + $0x338] sm:$0xff] }
0x23a6   :  { %v5891_v10 = vsub.f32 %v5883_v2, %v5889_v12  ;;  %v14041_v12 = vpack.c.bf16 %v11912_v61, %v11911_v60  ;;  %v11938_v60 = vld [vmem:[%s16378_s1 + $0x358] sm:$0xff] }
0x23a7   :  { %v15498_v18 = vadd.f32 %v5892_v13, %v5888_v17  ;;  %v14033_v13 = vpack.c.bf16 %v11908_v48, %v11907_v8  ;;  %v11916_v17 = vld [vmem:[%s16378_s1 + $0x438] sm:$0xff]  ;;  %v11943_v48 = vld [vmem:[%s16378_s1 + $0x440] sm:$0xff] }
0x23a8   :  { %v15496_v3 = vadd.f32 %v5891_v10, %v5887_v14  ;;  %v11913_v14 = vld [vmem:[%s16378_s1 + $0x420] sm:$0xff]  ;;  %v11914_v10 = vld [vmem:[%s16378_s1 + $0x428] sm:$0xff] }
0x23a9   :  { %v14045_v11 = vpack.c.bf16 %v11914_v10, %v11913_v14  ;;  %v11930_v14 = vld [vmem:[%s16380_s2 + $0x48] sm:$0xff]  ;;  %v11904_v10 = vld [vmem:[%s16380_s2 + $0x40] sm:$0xff] }
0x23aa   :  { %13233 = vmatprep.mubr.msk.f32.mxu1 %vm207_vm1, %v15496_v3 }
0x23ab   :  { %13234 = vmatmul.mubr.msk.f32.vlgmr.msra.gmra.mrb[62].mxu1 %vm207_vm1, %v15498_v18 }
0x23ac   :  { %14016 = vmatpush3.bf16.msra.mxu1 %v14013_v40  ;;  %13244 = vmatprep.mubr.msk.f32.mxu1 %vm207_vm1, %v15496_v3 }
0x23ad   :  { %14018 = vmatprep.subr.bf16.mxu1 %v14017_v5 }
0x23b0   :  { %14020 = vmatpush3.bf16.msra.mxu1 %v14017_v5  ;;  %v14049_v5 = vpack.c.bf16 %v11916_v17, %v11915_v16  ;;  %v11939_v16 = vld [vmem:[%s16378_s1 + $0x3c0] sm:$0xff]  ;;  %v11940_v17 = vld [vmem:[%s16378_s1 + $0x3c8] sm:$0xff] }
0x23b1   :  { %14022 = vmatprep.subr.bf16.mxu1 %v14021_v20 }
0x23b3   :  { %13245 = vmatmul.mubr.msk.f32.vlgmr.msra.gmra.mrb[64].mxu1 %vm207_vm1, %v15498_v18 }
0x23b4   :  { %14024 = vmatpush3.bf16.msra.mxu1 %v14021_v20  ;;  %13255 = vmatprep.mubr.msk.f32.mxu1 %vm207_vm1, %v15496_v3 }
0x23b5   :  { %14026 = vmatprep.subr.bf16.mxu1 %v14025_v63 }
0x23b8   :  { %14028 = vmatpush3.bf16.msra.mxu1 %v14025_v63  ;;  %v11917_v63 = vld [vmem:[%s16379_s5 + $0x15] ss:$0 sm:$0xff] }
0x23b9   :  { %13258 = vmatprep.subr.mxu1 %v14457_v9 }
0x23bb   :  { %13256 = vmatmul.mubr.msk.f32.vlgmr.msra.gmra.mrb[66].mxu1 %vm207_vm1, %v15498_v18 }
0x23bc   :  { %13260 = vmatprep.mubr.msk.f32.mxu1 %vm14458_vm3, %v14457_v9 }
0x247e   :  { %v13235_v21 = vpop.f32.mrb[62].mxu1 }
0x247f   :  { %v5987_v23 = vpop.f32.mrb[63].mxu1  ;;  %v5993_v30 = vadd.f32 %v13235_v21, %v11891_v24 }
0x2480   :  { %v5988_v31 = vadd.f32 %v11891_v24, %v5987_v23 }
0x2486   :  { %v13246_v28 = vpop.f32.mrb[64].mxu1 }
0x2487   :  { %v6062_v29 = vpop.f32.mrb[65].mxu1  ;;  %13264 = vmatpush3.xpose.msk.msra.mxu0 %vm499_vm4, %v13246_v28 }
0x2488   :  { %13259 = vmatpush3.xpose.msk.msra.mxu1 %vm499_vm4, %v6062_v29  ;;  %13273 = vmatprep.subr.mxu0 %v14457_v9 }
0x2489   :  { %13268 = vmatprep.subr.mxu1 %v14457_v9 }
0x248a   :  { %13266 = vmatmul.mubr.msk.f32.vlgmr.msra.gmra.mrb[64].mxu0 %vm499_vm4, %v5993_v30 }
0x248b   :  { %13261 = vmatmul.mubr.msk.f32.vlgmr.msra.gmra.mrb[68].mxu1 %vm499_vm4, %v5988_v31  ;;  %13275 = vmatprep.mubr.msk.f32.mxu0 %vm14458_vm3, %v14457_v9 }
0x248c   :  { %13270 = vmatprep.mubr.msk.f32.mxu1 %vm14458_vm3, %v14457_v9 }
0x248e   :  { %v13257_v41 = vpop.f32.mrb[66].mxu1 }
0x248f   :  { %v6137_v42 = vpop.f32.mrb[67].mxu1  ;;  %13274 = vmatpush3.msra.mxu0 %v13257_v41 }
0x2490   :  { %13269 = vmatpush3.msra.mxu1 %v6137_v42  ;;  %14038 = vmatprep.subr.bf16.mxu0 %v14037_v50  ;;  %v15622_v42 = vld [vmem:[%s16377_s0 + $0x30] sm:$0xff] }
0x2491   :  { %14030 = vmatprep.subr.bf16.mxu1 %v14029_v53 }
0x255d   :  { %v6294_v32 = vpop.f32.mrb[64].mxu0 }
0x255e   :  { %v6295_v33 = vadd.f32 %v15117_v15, %v6294_v32  ;;  %v6218_v34 = vpop.f32.mrb[68].mxu1  ;;  %v13267_v35 = vpop.f32.mrb[65].mxu0 }
0x255f   :  { %v6219_v36 = vadd.f32 %v15110_v4, %v6218_v34  ;;  %v13262_v37 = vpop.f32.mrb[69].mxu1 }
0x2560   :  { %v6301_v38 = vsel %vm499_vm4, %v6295_v33, -inf }
0x2561   :  { %6302 = vmax.xlane.f32.xlu0 %v6301_v38  ;;  %v6298_v39 = vsel %vm499_vm4, %v6219_v36, -inf }
0x2562   :  { %6299 = vmax.xlane.f32.xlu1 %v6298_v39 }
0x25ee   :  { %v6303_v40 = vpop.xlane.xlu0 %6302 }
0x25ef   :  { %v6305_v43 = vsub.f32 %v6295_v33, %v6303_v40  ;;  %v6300_v44 = vpop.xlane.xlu1 %6299 }
0x25f0   :  { %v6304_v55 = vsub.f32 %v6219_v36, %v6300_v44  ;;  %v15629_v36 = vld [vmem:[%s16377_s0 + $0x38] sm:$0xff] }
0x25f1   :  { %v6308_v7 = vmul.f32 1.442695, %v6305_v43 }
0x25f2   :  { %v6306_v6 = vmul.f32 1.442695, %v6304_v55 }
0x25f3   :  { %14367 = vpow2.f32 %v6308_v7 }
0x25f4   :  { %14369 = vpow2.f32 %v6306_v6 }
0x25fd   :  { %v14368_v15 = vpop.eup %14367 }
0x25fe   :  { %v14370_v56 = vpop.eup %14369  ;;  %v6313_v45 = vsel %vm499_vm4, %v14368_v15, 0.0 }
0x25ff   :  { %6314 = vadd.xlane.f32.xlu0 %v6313_v45  ;;  %v6310_v4 = vsel %vm499_vm4, %v14370_v56, 0.0 }
0x2600   :  { %6311 = vadd.xlane.f32.xlu1 %v6310_v4 }
0x268c   :  { %v6315_v54 = vpop.xlane.xlu0 %6314 }
0x268d   :  { %14371 = vrcp.f32 %v6315_v54  ;;  %v6312_v58 = vpop.xlane.xlu1 %6311 }
0x268e   :  { %14373 = vrcp.f32 %v6312_v58  ;;  %v11937_v58 = vld [vmem:[%s16378_s1 + $0x350] sm:$0xff] }
0x268f   :  { %v14057_v8 = vpack.c.bf16 %v11938_v60, %v11937_v58  ;;  %v11965_v60 = vld [vmem:[%s16378_s1 + $0x370] sm:$0xff] }
0x2697   :  { %v14372_v49 = vpop.eup %14371 }
0x2698   :  { %v14374_v0 = vpop.eup %14373  ;;  %v6319_v1 = vmul.f32 %v14372_v49, %v14368_v15 }
0x2699   :  { %v6318_v2 = vmul.f32 %v14374_v0, %v14370_v56  ;;  %v11944_v0 = vld [vmem:[%s16378_s1 + $0x448] sm:$0xff] }
0x269a   :  { %13276 = vmatmul.mubr.msk.f32.vlgmr.msra.gmra.mrb[66].mxu0 %vm499_vm4, %v6319_v1  ;;  %v14069_v1 = vpack.c.bf16 %v11944_v0, %v11943_v48 }
0x269b   :  { %14040 = vmatpush3.bf16.msra.mxu0 %v14037_v50  ;;  %13271 = vmatmul.mubr.msk.f32.vlgmr.msra.gmra.mrb[70].mxu1 %vm499_vm4, %v6318_v2  ;;  %v14053_v50 = vpack.c.bf16 %v11936_v47, %v11935_v46  ;;  %v11945_v2 = vld [vmem:[%s16378_s1 + $0x450] sm:$0xff] }
0x269c   :  { %14032 = vmatpush3.bf16.msra.mxu1 %v14029_v53  ;;  %13297 = vmatprep.mubr.msk.f32.mxu0 %vm207_vm1, %v15496_v3 }
0x269d   :  { %13286 = vmatprep.mubr.msk.f32.mxu1 %vm207_vm1, %v15496_v3  ;;  %14042 = vmatprep.subr.bf16.mxu0 %v14041_v12 }
0x269e   :  { %14034 = vmatprep.subr.bf16.mxu1 %v14033_v13 }
0x269f   :  { %14044 = vmatpush3.bf16.msra.mxu0 %v14041_v12  ;;  %v11946_v12 = vld [vmem:[%s16378_s1 + $0x458] sm:$0xff] }
0x26a0   :  { %14036 = vmatpush3.bf16.msra.mxu1 %v14033_v13  ;;  %13311 = vmatprep.subr.mxu0 %v14457_v9  ;;  %v14073_v13 = vpack.c.bf16 %v11946_v12, %v11945_v2  ;;  %v11971_v2 = vld [vmem:[%s16378_s1 + $0x460] sm:$0xff]  ;;  %v11972_v12 = vld [vmem:[%s16378_s1 + $0x468] sm:$0xff] }
0x26a1   :  { %14046 = vmatprep.subr.bf16.mxu1 %v14045_v11 }
0x26a2   :  { %13298 = vmatmul.mubr.msk.f32.vlgmr.msra.gmra.mrb[68].mxu0 %vm207_vm1, %v15498_v18 }
0x26a3   :  { %13287 = vmatmul.mubr.msk.f32.vlgmr.msra.gmra.mrb[72].mxu1 %vm207_vm1, %v15498_v18  ;;  %13313 = vmatprep.mubr.msk.f32.mxu0 %vm14458_vm3, %v14457_v9 }
0x26a4   :  { %14048 = vmatpush3.bf16.msra.mxu1 %v14045_v11  ;;  %13308 = vmatprep.mubr.msk.f32.mxu1 %vm207_vm1, %v15496_v3 }
0x26a5   :  { %14050 = vmatprep.subr.bf16.mxu1 %v14049_v5 }
0x26a8   :  { %14052 = vmatpush3.bf16.msra.mxu1 %v14049_v5 }
0x26a9   :  { %13321 = vmatprep.subr.mxu1 %v14457_v9 }
0x26ab   :  { %13309 = vmatmul.mubr.msk.f32.vlgmr.msra.gmra.mrb[74].mxu1 %vm207_vm1, %v15498_v18 }
0x26ac   :  { %13323 = vmatprep.mubr.msk.f32.mxu1 %vm14458_vm3, %v14457_v9 }
0x276d   :  { %v15602_v19 = vpop.f32.mrb[66].mxu0 }
0x276e   :  { %v15604_v57 = vpop.f32.mrb[70].mxu1  ;;  %v13277_v20 = vpop.f32.mrb[67].mxu0 }
0x276f   :  { %v13272_v25 = vpop.f32.mrb[71].mxu1  ;;  %v14061_v20 = vpack.c.bf16 %v11940_v17, %v11939_v16  ;;  %v11967_v16 = vld [vmem:[%s16378_s1 + $0x3e0] sm:$0xff]  ;;  %v11968_v17 = vld [vmem:[%s16378_s1 + $0x3e8] sm:$0xff] }
0x2775   :  { %v13299_v22 = vpop.f32.mrb[68].mxu0 }
0x2776   :  { %v13288_v21 = vpop.f32.mrb[72].mxu1  ;;  %v6629_v23 = vpop.f32.mrb[69].mxu0 }
0x2777   :  { %v6554_v24 = vpop.f32.mrb[73].mxu1  ;;  %13312 = vmatpush3.xpose.msk.msra.mxu0 %vm499_vm4, %v6629_v23  ;;  %v6560_v29 = vadd.f32 %v13288_v21, %v11917_v63  ;;  %v11942_v21 = vld [vmem:[%s16378_s1 + $0x3d8] sm:$0xff] }
0x2778   :  { %v6555_v28 = vadd.f32 %v11917_v63, %v6554_v24  ;;  %13316 = vmatprep.subr.mxu0 %v14457_v9  ;;  %v11941_v63 = vld [vmem:[%s16378_s1 + $0x3d0] sm:$0xff] }
0x2779   :  { %v14065_v23 = vpack.c.bf16 %v11942_v21, %v11941_v63 }
0x277a   :  { %13314 = vmatmul.mubr.msk.f32.vlgmr.msra.gmra.mrb[70].mxu0 %vm499_vm4, %v6555_v28 }
0x277b   :  { %13317 = vmatpush3.xpose.msk.msra.mxu0 %vm499_vm4, %v13299_v22  ;;  %13318 = vmatprep.mubr.msk.f32.mxu0 %vm14458_vm3, %v14457_v9 }
0x277c   :  { %13326 = vmatprep.subr.mxu0 %v14457_v9 }
0x277e   :  { %v13310_v30 = vpop.f32.mrb[74].mxu1  ;;  %13319 = vmatmul.mubr.msk.f32.vlgmr.msra.gmra.mrb[72].mxu0 %vm499_vm4, %v6560_v29 }
0x277f   :  { %v6704_v31 = vpop.f32.mrb[75].mxu1  ;;  %13327 = vmatpush3.msra.mxu0 %v13310_v30  ;;  %13328 = vmatprep.mubr.msk.f32.mxu0 %vm14458_vm3, %v14457_v9 }
0x2780   :  { %13322 = vmatpush3.msra.mxu1 %v6704_v31  ;;  %14054 = vmatprep.subr.bf16.mxu0 %v14053_v50 }
0x2781   :  { %13331 = vmatprep.subr.mxu1 %v11930_v14 }
0x284d   :  { %v6785_v41 = vpop.f32.mrb[70].mxu0 }
0x284e   :  { %v6786_v32 = vadd.f32 %v15622_v42, %v6785_v41  ;;  %v13315_v33 = vpop.f32.mrb[71].mxu0 }
0x2850   :  { %v6865_v34 = vsel %vm499_vm4, %v6786_v32, -inf }
0x2851   :  { %6866 = vmax.xlane.f32.xlu0 %v6865_v34  ;;  %v6861_v35 = vpop.f32.mrb[72].mxu0 }
0x2852   :  { %v6862_v37 = vadd.f32 %v15629_v36, %v6861_v35  ;;  %v13320_v38 = vpop.f32.mrb[73].mxu0 }
0x2854   :  { %v6868_v39 = vsel %vm499_vm4, %v6862_v37, -inf }
0x2855   :  { %6869 = vmax.xlane.f32.xlu1 %v6868_v39 }
0x28de   :  { %v6867_v40 = vpop.xlane.xlu0 %6866 }
0x28df   :  { %v6871_v43 = vsub.f32 %v6786_v32, %v6867_v40 }
0x28e1   :  { %v6873_v44 = vmul.f32 1.442695, %v6871_v43 }
0x28e2   :  { %v6870_v55 = vpop.xlane.xlu1 %6869 }
0x28e3   :  { %14375 = vpow2.f32 %v6873_v44  ;;  %v6872_v7 = vsub.f32 %v6862_v37, %v6870_v55 }
0x28e5   :  { %v6875_v6 = vmul.f32 1.442695, %v6872_v7 }
0x28e7   :  { %14377 = vpow2.f32 %v6875_v6 }
0x28ed   :  { %v14376_v15 = vpop.eup %14375 }
0x28ee   :  { %v6877_v56 = vsel %vm499_vm4, %v14376_v15, 0.0 }
0x28ef   :  { %6878 = vadd.xlane.f32.xlu0 %v6877_v56 }
0x28f1   :  { %v14378_v45 = vpop.eup %14377 }
0x28f2   :  { %v6880_v4 = vsel %vm499_vm4, %v14378_v45, 0.0 }
0x28f3   :  { %6881 = vadd.xlane.f32.xlu1 %v6880_v4 }
0x297c   :  { %v6879_v51 = vpop.xlane.xlu0 %6878 }
0x297d   :  { %14379 = vrcp.f32 %v6879_v51  ;;  %v11964_v51 = vld [vmem:[%s16378_s1 + $0x368] sm:$0xff] }
0x2980   :  { %v6882_v52 = vpop.xlane.xlu1 %6881 }
0x2981   :  { %14381 = vrcp.f32 %v6882_v52 }
0x2987   :  { %v14380_v53 = vpop.eup %14379 }
0x2988   :  { %v6885_v54 = vmul.f32 %v14380_v53, %v14376_v15  ;;  %v11960_v53 = vld [vmem:[%s16380_s2 + $0x50] sm:$0xff] }
0x298a   :  { %13324 = vmatmul.mubr.msk.f32.vlgmr.msra.gmra.mrb[76].mxu1 %vm499_vm4, %v6885_v54 }
0x298b   :  { %v14382_v61 = vpop.eup %14381  ;;  %13332 = vmatpush3.msra.mxu1 %v11930_v14  ;;  %v11973_v14 = vld [vmem:[%s16378_s1 + $0x470] sm:$0xff] }
0x298c   :  { %v6886_v49 = vmul.f32 %v14382_v61, %v14378_v45  ;;  %13336 = vmatprep.subr.mxu1 %v11904_v10  ;;  %v11966_v61 = vld [vmem:[%s16378_s1 + $0x378] sm:$0xff] }
0x298d   :  { %v14081_v0 = vpack.c.bf16 %v11966_v61, %v11965_v60  ;;  %v11996_v60 = vld [vmem:[%s16378_s1 + $0x500] sm:$0xff]  ;;  %v11997_v61 = vld [vmem:[%s16378_s1 + $0x508] sm:$0xff] }
0x298e   :  { %13329 = vmatmul.mubr.msk.f32.vlgmr.msra.gmra.mrb[74].mxu0 %vm499_vm4, %v6886_v49 }
0x298f   :  { %14056 = vmatpush3.bf16.msra.mxu0 %v14053_v50  ;;  %13349 = vmatprep.mubr.msk.f32.mxu0 %vm207_vm1, %v15496_v3  ;;  %v11963_v50 = vld [vmem:[%s16378_s1 + $0x360] sm:$0xff] }
0x2990   :  { %14058 = vmatprep.subr.bf16.mxu0 %v14057_v8  ;;  %v14077_v52 = vpack.c.bf16 %v11964_v51, %v11963_v50 }
0x2993   :  { %14060 = vmatpush3.bf16.msra.mxu0 %v14057_v8 }
0x2994   :  { %14070 = vmatprep.subr.bf16.mxu0 %v14069_v1 }
0x2996   :  { %13350 = vmatmul.mubr.msk.f32.vlgmr.msra.gmra.mrb[76].mxu0 %vm207_vm1, %v15498_v18 }
0x2997   :  { %14072 = vmatpush3.bf16.msra.mxu0 %v14069_v1  ;;  %13371 = vmatprep.mubr.msk.f32.mxu0 %vm207_vm1, %v15496_v3 }
0x2998   :  { %14074 = vmatprep.subr.bf16.mxu0 %v14073_v13 }
0x299b   :  { %14076 = vmatpush3.bf16.msra.mxu0 %v14073_v13  ;;  %v14093_v13 = vpack.c.bf16 %v11972_v12, %v11971_v2 }
0x299c   :  { %13379 = vmatprep.subr.mxu0 %v14457_v9 }
0x299e   :  { %13372 = vmatmul.mubr.msk.f32.vlgmr.msra.gmra.mrb[78].mxu0 %vm207_vm1, %v15498_v18 }
0x299f   :  { %13381 = vmatprep.mubr.msk.f32.mxu0 %vm14458_vm3, %v14457_v9 }
0x2a5d   :  { %v6956_v11 = vpop.f32.mrb[76].mxu1 }
0x2a5e   :  { %v13325_v5 = vpop.f32.mrb[77].mxu1  ;;  %13333 = vmatprep.mubr.msk.f32.mxu1 %vm499_vm4, %v6956_v11 }
0x2a5f   :  { %v14085_v5 = vpack.c.bf16 %v11968_v17, %v11967_v16 }
0x2a61   :  { %v7029_v25 = vpop.f32.mrb[74].mxu0 }
0x2a62   :  { %v13330_v22 = vpop.f32.mrb[75].mxu0  ;;  %13334 = vmatmul.mubr.msk.f32.vlgmr.msra.gmra.mrb[78].mxu1 %vm499_vm4, %v7029_v25  ;;  %v11970_v25 = vld [vmem:[%s16378_s1 + $0x3f8] sm:$0xff] }
0x2a63   :  { %13337 = vmatpush3.msra.mxu1 %v11904_v10  ;;  %13338 = vmatprep.mubr.msk.f32.mxu1 %vm499_vm4, %v15604_v57  ;;  %v11974_v10 = vld [vmem:[%s16378_s1 + $0x478] sm:$0xff] }
0x2a64   :  { %14062 = vmatprep.subr.bf16.mxu1 %v14061_v20  ;;  %v14097_v11 = vpack.c.bf16 %v11974_v10, %v11973_v14  ;;  %v11991_v10 = vld [vmem:[%s16379_s5 + $0x7] ss:$0 sm:$0xff] }
0x2a69   :  { %v13351_v24 = vpop.f32.mrb[76].mxu0 }
0x2a6a   :  { %v7283_v28 = vpop.f32.mrb[77].mxu0  ;;  %13339 = vmatmul.mubr.msk.f32.vlgmr.msra.gmra.mrb[78].mxu1 %vm499_vm4, %v15602_v19  ;;  %v11947_v19 = vld [vmem:[%s16379_s5 + $0x16] ss:$0 sm:$0xff] }
0x2a6b   :  { %14064 = vmatpush3.bf16.msra.mxu1 %v14061_v20  ;;  %13360 = vmatprep.mubr.msk.f32.mxu1 %vm207_vm1, %v15496_v3  ;;  %v7289_v41 = vadd.f32 %v13351_v24, %v11947_v19  ;;  %v7284_v32 = vadd.f32 %v11947_v19, %v7283_v28  ;;  %v11969_v20 = vld [vmem:[%s16378_s1 + $0x3f0] sm:$0xff] }
0x2a6c   :  { %14066 = vmatprep.subr.bf16.mxu1 %v14065_v23 }
0x2a6f   :  { %14068 = vmatpush3.bf16.msra.mxu1 %v14065_v23  ;;  %v14089_v23 = vpack.c.bf16 %v11970_v25, %v11969_v20 }
0x2a70   :  { %13374 = vmatprep.subr.mxu1 %v14457_v9 }
0x2a71   :  { %v13373_v57 = vpop.f32.mrb[78].mxu0 }
0x2a72   :  { %13361 = vmatmul.mubr.msk.f32.vlgmr.msra.gmra.mrb[80].mxu1 %vm207_vm1, %v15498_v18  ;;  %v7433_v29 = vpop.f32.mrb[79].mxu0 }
0x2a73   :  { %13376 = vmatprep.mubr.msk.f32.mxu1 %vm14458_vm3, %v14457_v9 }
0x2b45   :  { %v13362_v30 = vpop.f32.mrb[80].mxu1 }
0x2b46   :  { %v7358_v31 = vpop.f32.mrb[81].mxu1  ;;  %13380 = vmatpush3.xpose.msk.msra.mxu0 %vm499_vm4, %v13362_v30  ;;  %v11975_v30 = vld [vmem:[%s16379_s5 + $0x17] ss:$0 sm:$0xff] }
0x2b47   :  { %13375 = vmatpush3.xpose.msk.msra.mxu1 %vm499_vm4, %v7358_v31  ;;  %13389 = vmatprep.subr.mxu0 %v14457_v9 }
0x2b48   :  { %13384 = vmatprep.subr.mxu1 %v14457_v9 }
0x2b49   :  { %13382 = vmatmul.mubr.msk.f32.vlgmr.msra.gmra.mrb[80].mxu0 %vm499_vm4, %v7289_v41 }
0x2b4a   :  { %13377 = vmatmul.mubr.msk.f32.vlgmr.msra.gmra.mrb[82].mxu1 %vm499_vm4, %v7284_v32  ;;  %13390 = vmatpush3.msra.mxu0 %v13373_v57 }
0x2b4b   :  { %13385 = vmatpush3.msra.mxu1 %v7433_v29  ;;  %13391 = vmatprep.mubr.msk.f32.mxu0 %vm14458_vm3, %v14457_v9 }
0x2b4c   :  { %13386 = vmatprep.mubr.msk.f32.mxu1 %vm14458_vm3, %v14457_v9  ;;  %14078 = vmatprep.subr.bf16.mxu0 %v14077_v52 }
0x2b4d   :  { %13394 = vmatprep.subr.mxu1 %v11960_v53 }
0x2c1c   :  { %v7590_v33 = vpop.f32.mrb[80].mxu0 }
0x2c1d   :  { %v7591_v34 = vadd.f32 %v15629_v36, %v7590_v33  ;;  %v7514_v35 = vpop.f32.mrb[82].mxu1  ;;  %v13383_v37 = vpop.f32.mrb[81].mxu0 }
0x2c1e   :  { %v7515_v38 = vadd.f32 %v15622_v42, %v7514_v35  ;;  %v13378_v39 = vpop.f32.mrb[83].mxu1 }
0x2c1f   :  { %v7597_v40 = vsel %vm499_vm4, %v7591_v34, -inf }
0x2c20   :  { %7598 = vmax.xlane.f32.xlu1 %v7597_v40  ;;  %v7594_v43 = vsel %vm499_vm4, %v7515_v38, -inf }
0x2c21   :  { %7595 = vmax.xlane.f32.xlu0 %v7594_v43 }
0x2cad   :  { %v7599_v44 = vpop.xlane.xlu1 %7598 }
0x2cae   :  { %v7601_v55 = vsub.f32 %v7591_v34, %v7599_v44  ;;  %v7596_v7 = vpop.xlane.xlu0 %7595 }
0x2caf   :  { %v7600_v6 = vsub.f32 %v7515_v38, %v7596_v7 }
0x2cb0   :  { %v7604_v15 = vmul.f32 1.442695, %v7601_v55 }
0x2cb1   :  { %v7602_v56 = vmul.f32 1.442695, %v7600_v6 }
0x2cb2   :  { %14383 = vpow2.f32 %v7604_v15 }
0x2cb3   :  { %14385 = vpow2.f32 %v7602_v56 }
0x2cbc   :  { %v14384_v45 = vpop.eup %14383 }
0x2cbd   :  { %v14386_v4 = vpop.eup %14385  ;;  %v7609_v46 = vsel %vm499_vm4, %v14384_v45, 0.0 }
0x2cbe   :  { %7610 = vadd.xlane.f32.xlu1 %v7609_v46  ;;  %v7606_v47 = vsel %vm499_vm4, %v14386_v4, 0.0 }
0x2cbf   :  { %7607 = vadd.xlane.f32.xlu0 %v7606_v47 }
0x2d4b   :  { %v7611_v54 = vpop.xlane.xlu1 %7610 }
0x2d4c   :  { %14387 = vrcp.f32 %v7611_v54  ;;  %v7608_v58 = vpop.xlane.xlu0 %7607 }
0x2d4d   :  { %14389 = vrcp.f32 %v7608_v58  ;;  %v11988_v58 = vld [vmem:[%s16380_s2 + $0x58] sm:$0xff] }
0x2d56   :  { %v14388_v49 = vpop.eup %14387 }
0x2d57   :  { %v14390_v8 = vpop.eup %14389  ;;  %v7615_v48 = vmul.f32 %v14388_v49, %v14384_v45  ;;  %v14109_v49 = vpack.c.bf16 %v11997_v61, %v11996_v60 }
0x2d58   :  { %v7614_v1 = vmul.f32 %v14390_v8, %v14386_v4 }
0x2d59   :  { %13392 = vmatmul.mubr.msk.f32.vlgmr.msra.gmra.mrb[82].mxu0 %vm499_vm4, %v7615_v48  ;;  %v11998_v48 = vld [vmem:[%s16378_s1 + $0x510] sm:$0xff] }
0x2d5a   :  { %14080 = vmatpush3.bf16.msra.mxu0 %v14077_v52  ;;  %13387 = vmatmul.mubr.msk.f32.vlgmr.msra.gmra.mrb[84].mxu1 %vm499_vm4, %v7614_v1 }
0x2d5b   :  { %13407 = vmatprep.mubr.msk.f32.mxu0 %vm207_vm1, %v15496_v3  ;;  %14082 = vmatprep.subr.bf16.mxu0 %v14081_v0 }
0x2d5c   :  { %13395 = vmatpush3.msra.mxu1 %v11960_v53 }
0x2d5d   :  { %14086 = vmatprep.subr.bf16.mxu1 %v14085_v5 }
0x2d5e   :  { %14084 = vmatpush3.bf16.msra.mxu0 %v14081_v0  ;;  %v11999_v0 = vld [vmem:[%s16378_s1 + $0x518] sm:$0xff] }
0x2d5f   :  { %14094 = vmatprep.subr.bf16.mxu0 %v14093_v13  ;;  %v14113_v2 = vpack.c.bf16 %v11999_v0, %v11998_v48 }
0x2d61   :  { %13408 = vmatmul.mubr.msk.f32.vlgmr.msra.gmra.mrb[84].mxu0 %vm207_vm1, %v15498_v18 }
0x2d62   :  { %14096 = vmatpush3.bf16.msra.mxu0 %v14093_v13  ;;  %13429 = vmatprep.mubr.msk.f32.mxu0 %vm207_vm1, %v15496_v3 }
0x2d63   :  { %14098 = vmatprep.subr.bf16.mxu0 %v14097_v11 }
0x2d66   :  { %14100 = vmatpush3.bf16.msra.mxu0 %v14097_v11 }
0x2d67   :  { %13442 = vmatprep.subr.mxu0 %v14457_v9 }
0x2d69   :  { %13430 = vmatmul.mubr.msk.f32.vlgmr.msra.gmra.mrb[86].mxu0 %vm207_vm1, %v15498_v18 }
0x2d6a   :  { %13444 = vmatprep.mubr.msk.f32.mxu0 %vm14458_vm3, %v14457_v9 }
0x2e2c   :  { %v7758_v22 = vpop.f32.mrb[82].mxu0 }
0x2e2d   :  { %v7685_v63 = vpop.f32.mrb[84].mxu1  ;;  %v13393_v21 = vpop.f32.mrb[83].mxu0 }
0x2e2e   :  { %v13388_v24 = vpop.f32.mrb[85].mxu1  ;;  %13396 = vmatprep.mubr.msk.f32.mxu1 %vm499_vm4, %v7685_v63 }
0x2e2f   :  { %13397 = vmatmul.mubr.msk.f32.vlgmr.msra.gmra.mrb[78].mxu1 %vm499_vm4, %v7758_v22 }
0x2e30   :  { %14088 = vmatpush3.bf16.msra.mxu1 %v14085_v5  ;;  %13418 = vmatprep.mubr.msk.f32.mxu1 %vm207_vm1, %v15496_v3 }
0x2e31   :  { %14090 = vmatprep.subr.bf16.mxu1 %v14089_v23 }
0x2e34   :  { %v13409_v28 = vpop.f32.mrb[84].mxu0  ;;  %14092 = vmatpush3.bf16.msra.mxu1 %v14089_v23 }
0x2e35   :  { %v7933_v57 = vpop.f32.mrb[85].mxu0  ;;  %13432 = vmatprep.subr.mxu1 %v14457_v9 }
0x2e36   :  { %v7934_v41 = vadd.f32 %v11975_v30, %v7933_v57  ;;  %v11993_v57 = vld [vmem:[%s16378_s1 + $0x488] sm:$0xff] }
0x2e37   :  { %13419 = vmatmul.mubr.msk.f32.vlgmr.msra.gmra.mrb[86].mxu1 %vm207_vm1, %v15498_v18  ;;  %v7939_v18 = vadd.f32 %v13409_v28, %v11975_v30  ;;  %v11992_v28 = vld [vmem:[%s16378_s1 + $0x480] sm:$0xff]  ;;  %v11995_v30 = vld [vmem:[%s16378_s1 + $0x498] sm:$0xff] }
0x2e38   :  { %13434 = vmatprep.mubr.msk.f32.mxu1 %vm14458_vm3, %v14457_v9 }
0x2e3c   :  { %v13431_v29 = vpop.f32.mrb[86].mxu0 }
0x2e3d   :  { %v8083_v19 = vpop.f32.mrb[87].mxu0 }
0x2e3e   :  { %13443 = vmatpush3.msra.mxu0 %v8083_v19  ;;  %v11994_v19 = vld [vmem:[%s16378_s1 + $0x490] sm:$0xff] }
0x2f0a   :  { %v13420_v3 = vpop.f32.mrb[86].mxu1 }
0x2f0b   :  { %v8008_v31 = vpop.f32.mrb[87].mxu1 }
0x2f0c   :  { %13433 = vmatpush3.xpose.msk.msra.mxu1 %vm499_vm4, %v8008_v31  ;;  %v12000_v31 = vld [vmem:[%s16378_s1 + $0x580] sm:$0xff] }
0x2f0d   :  { %13437 = vmatprep.subr.mxu1 %v14457_v9 }
0x2f0f   :  { %13435 = vmatmul.mubr.msk.f32.vlgmr.msra.gmra.mrb[88].mxu1 %vm499_vm4, %v7934_v41  ;;  %v12001_v41 = vld [vmem:[%s16378_s1 + $0x588] sm:$0xff] }
0x2f10   :  { %13438 = vmatpush3.xpose.msk.msra.mxu1 %vm499_vm4, %v13420_v3  ;;  %13439 = vmatprep.mubr.msk.f32.mxu1 %vm14458_vm3, %v14457_v9  ;;  %v14105_v3 = vpack.c.bf16 %v11995_v30, %v11994_v19 }
0x2f11   :  { %13447 = vmatprep.subr.mxu1 %v14457_v9 }
0x2f13   :  { %13440 = vmatmul.mubr.msk.f32.vlgmr.msra.gmra.mrb[90].mxu1 %vm499_vm4, %v7939_v18  ;;  %v14117_v18 = vpack.c.bf16 %v12001_v41, %v12000_v31 }
0x2f14   :  { %13448 = vmatpush3.msra.mxu1 %v13431_v29  ;;  %13449 = vmatprep.mubr.msk.f32.mxu1 %vm14458_vm3, %v14457_v9  ;;  %v14101_v29 = vpack.c.bf16 %v11993_v57, %v11992_v28 }
0x2f15   :  { %13452 = vmatprep.subr.mxu1 %v11988_v58 }
0x2f16   :  { %14102 = vmatprep.subr.bf16.mxu0 %v14101_v29 }
0x2fe2   :  { %v8164_v32 = vpop.f32.mrb[88].mxu1 }
0x2fe3   :  { %v8165_v33 = vadd.f32 %v15622_v42, %v8164_v32  ;;  %v13436_v34 = vpop.f32.mrb[89].mxu1 }
0x2fe5   :  { %v8244_v35 = vsel %vm499_vm4, %v8165_v33, -inf }
0x2fe6   :  { %8245 = vmax.xlane.f32.xlu0 %v8244_v35  ;;  %v8240_v37 = vpop.f32.mrb[90].mxu1 }
0x2fe7   :  { %v8241_v38 = vadd.f32 %v15629_v36, %v8240_v37  ;;  %v13441_v39 = vpop.f32.mrb[91].mxu1 }
0x2fe9   :  { %v8247_v40 = vsel %vm499_vm4, %v8241_v38, -inf }
0x2fea   :  { %8248 = vmax.xlane.f32.xlu1 %v8247_v40 }
0x3073   :  { %v8246_v43 = vpop.xlane.xlu0 %8245 }
0x3074   :  { %v8250_v44 = vsub.f32 %v8165_v33, %v8246_v43 }
0x3076   :  { %v8252_v55 = vmul.f32 1.442695, %v8250_v44 }
0x3077   :  { %v8249_v7 = vpop.xlane.xlu1 %8248 }
0x3078   :  { %14391 = vpow2.f32 %v8252_v55  ;;  %v8251_v6 = vsub.f32 %v8241_v38, %v8249_v7 }
0x307a   :  { %v8254_v15 = vmul.f32 1.442695, %v8251_v6 }
0x307c   :  { %14393 = vpow2.f32 %v8254_v15 }
0x3082   :  { %v14392_v56 = vpop.eup %14391 }
0x3083   :  { %v8256_v45 = vsel %vm499_vm4, %v14392_v56, 0.0 }
0x3084   :  { %8257 = vadd.xlane.f32.xlu0 %v8256_v45  ;;  %v8532_v45 = vld [vmem:[%s16377_s0 + $0x80] sm:$0xff] }
0x3086   :  { %v14394_v4 = vpop.eup %14393 }
0x3087   :  { %v8259_v46 = vsel %vm499_vm4, %v14394_v4, 0.0 }
0x3088   :  { %8260 = vadd.xlane.f32.xlu1 %v8259_v46 }
0x3111   :  { %v8258_v47 = vpop.xlane.xlu0 %8257 }
0x3112   :  { %14395 = vrcp.f32 %v8258_v47 }
0x3115   :  { %v8261_v50 = vpop.xlane.xlu1 %8260 }
0x3116   :  { %14397 = vrcp.f32 %v8261_v50 }
0x311c   :  { %v14396_v51 = vpop.eup %14395 }
0x311d   :  { %v8264_v52 = vmul.f32 %v14396_v51, %v14392_v56  ;;  %v8533_v56 = vld [vmem:[%s16377_s0 + $0x88] sm:$0xff]  ;;  %v8535_v51 = vld [vmem:[%s16377_s0 + $0xf8] sm:$0xff] }
0x311f   :  { %13445 = vmatmul.mubr.msk.f32.vlgmr.msra.gmra.mrb[88].mxu0 %vm499_vm4, %v8264_v52  ;;  %v8534_v52 = vld [vmem:[%s16377_s0 + $0xf0] sm:$0xff] }
0x3120   :  { %v14398_v53 = vpop.eup %14397  ;;  %14104 = vmatpush3.bf16.msra.mxu0 %v14101_v29 }
0x3121   :  { %v8265_v54 = vmul.f32 %v14398_v53, %v14394_v4  ;;  %14106 = vmatprep.subr.bf16.mxu0 %v14105_v3 }
0x3123   :  { %13450 = vmatmul.mubr.msk.f32.vlgmr.msra.gmra.mrb[92].mxu1 %vm499_vm4, %v8265_v54 }
0x3124   :  { %13453 = vmatpush3.msra.mxu1 %v11988_v58  ;;  %14108 = vmatpush3.bf16.msra.mxu0 %v14105_v3 }
0x3125   :  { %14110 = vmatprep.subr.bf16.mxu1 %v14109_v49  ;;  %14118 = vmatprep.subr.bf16.mxu0 %v14117_v18 }
0x31f2   :  { %v8335_v8 = vpop.f32.mrb[88].mxu0 }
0x31f3   :  { %v13446_v1 = vpop.f32.mrb[89].mxu0  ;;  %13454 = vmatprep.mubr.msk.f32.mxu1 %vm499_vm4, %v8335_v8  ;;  %v12003_v8 = vld [vmem:[%s16378_s1 + $0x598] sm:$0xff] }
0x31f6   :  { %v8408_v12 = vpop.f32.mrb[92].mxu1 }
0x31f7   :  { %v13451_v13 = vpop.f32.mrb[93].mxu1  ;;  %13455 = vmatmul.mubr.msk.f32.vlgmr.msra.gmra.mrb[78].mxu1 %vm499_vm4, %v8408_v12  ;;  %v12004_v12 = vld [vmem:[%s16379_s5 + $0x18] ss:$0 sm:$0xff] }
0x31f8   :  { %14112 = vmatpush3.bf16.msra.mxu1 %v14109_v49  ;;  %13476 = vmatprep.mubr.msk.f32.mxu1 %vm207_vm1, %v14919_v59  ;;  %v12002_v49 = vld [vmem:[%s16378_s1 + $0x590] sm:$0xff] }
0x31f9   :  { %14114 = vmatprep.subr.bf16.mxu1 %v14113_v2 }
0x31fc   :  { %14116 = vmatpush3.bf16.msra.mxu1 %v14113_v2  ;;  %v14121_v2 = vpack.c.bf16 %v12003_v8, %v12002_v49 }
0x31fd   :  { %13490 = vmatprep.subr.mxu1 %v14457_v9 }
0x31ff   :  { %13477 = vmatmul.mubr.msk.f32.vlgmr.msra.gmra.mrb[94].mxu1 %vm207_vm1, %v14925_v62 }
0x3200   :  { %13492 = vmatprep.mubr.msk.f32.mxu1 %vm14458_vm3, %v14457_v9 }
0x32ca   :  { %v13456_v14 = vpop.f32.mrb[78].mxu1 }
0x32cb   :  { %v8498_v11 = vadd.f32 %v13456_v14, %v15443_v26  ;;  %v8486_v16 = vpop.f32.mrb[79].mxu1 }
0x32cc   :  { %v8497_v17 = vadd.f32 %v8486_v16, %v15446_v27 }
0x32cd   :  { %v15833_v5 = vadd.f32 %v11991_v10, %v8498_v11 }
0x32ce   :  { %v15835_v20 = vadd.f32 %v11991_v10, %v8497_v17 }
0x32cf   :  { %v8509_v25 = vsel %vm207_vm1, %v15833_v5, 0.0  ;;  %v8515_v22 = vmul.f32 %v15833_v5, %v15833_v5 }
0x32d0   :  { %8510 = vadd.xlane.f32.xlu1 %v8509_v25  ;;  %v8506_v63 = vsel %vm207_vm1, %v15835_v20, 0.0  ;;  %v8514_v26 = vmul.f32 %v15835_v20, %v15835_v20 }
0x32d1   :  { %8507 = vadd.xlane.f32.xlu0 %v8506_v63  ;;  %v8519_v23 = vsel %vm207_vm1, %v8515_v22, 0.0 }
0x32d2   :  { %v15845_v21 = vpop.f32.mrb[94].mxu1  ;;  %v8516_v24 = vsel %vm207_vm1, %v8514_v26, 0.0 }
0x32d3   :  { %v8713_v27 = vpop.f32.mrb[95].mxu1 }
0x32d4   :  { %13491 = vmatpush3.xpose.msk.msra.mxu1 %vm499_vm4, %v8713_v27  ;;  %8520 = vadd.xlane.f32.xlu1 %v8519_v23 }
0x32d5   :  { %8517 = vadd.xlane.f32.xlu0 %v8516_v24  ;;  %13500 = vmatprep.subr.mxu1 %v14457_v9 }
0x335d   :  { %v8511_v32 = vpop.xlane.xlu1 %8510 }
0x335e   :  { %v8513_v33 = vmul.f32 0.03125, %v8511_v32  ;;  %v8508_v34 = vpop.xlane.xlu0 %8507 }
0x335f   :  { %v8512_v35 = vmul.f32 0.03125, %v8508_v34  ;;  %v12025_v34 = vld [vmem:[%s16378_s1 + $0x528] sm:$0xff] }
0x3360   :  { %v8525_v38 = vmul.f32 %v8513_v33, %v8513_v33 }
0x3361   :  { %v8521_v37 = vpop.xlane.xlu1 %8520  ;;  %v8524_v43 = vmul.f32 %v8512_v35, %v8512_v35 }
0x3362   :  { %v8523_v39 = vmul.f32 0.03125, %v8521_v37  ;;  %v8518_v40 = vpop.xlane.xlu0 %8517  ;;  %v12020_v37 = vld [vmem:[%s16378_s1 + $0x4a0] sm:$0xff] }
0x3363   :  { %v8522_v44 = vmul.f32 0.03125, %v8518_v40 }
0x3364   :  { %v8527_v55 = vsub.f32 %v8523_v39, %v8525_v38  ;;  %v12021_v38 = vld [vmem:[%s16378_s1 + $0x4a8] sm:$0xff] }
0x3365   :  { %v8526_v7 = vsub.f32 %v8522_v44, %v8524_v43  ;;  %v14125_v39 = vpack.c.bf16 %v12021_v38, %v12020_v37  ;;  %v12026_v44 = vld [vmem:[%s16378_s1 + $0x530] sm:$0xff] }
0x3366   :  { %v8529_v6 = vadd.f32 1e-05, %v8527_v55  ;;  %v12027_v55 = vld [vmem:[%s16378_s1 + $0x538] sm:$0xff] }
0x3367   :  { %v8528_v15 = vadd.f32 1e-05, %v8526_v7 }
0x3368   :  { %14399 = vrsqrt.f32 %v8529_v6  ;;  %v12022_v6 = vld [vmem:[%s16378_s1 + $0x4b0] sm:$0xff] }
0x3369   :  { %14401 = vrsqrt.f32 %v8528_v15  ;;  %v12023_v15 = vld [vmem:[%s16378_s1 + $0x4b8] sm:$0xff] }
0x3372   :  { %v14400_v4 = vpop.eup %14399 }
0x3373   :  { %v14402_v46 = vpop.eup %14401  ;;  %v8537_v47 = vmul.f32 %v14400_v4, %v8533_v56 }
0x3374   :  { %v8536_v50 = vmul.f32 %v14402_v46, %v8532_v45  ;;  %v14137_v46 = vpack.c.bf16 %v12027_v55, %v12026_v44 }
0x3375   :  { %v8541_v53 = vmul.f32 %v8537_v47, %v8513_v33  ;;  %v8539_v48 = vmul.f32 %v8537_v47, %v15833_v5  ;;  %v12024_v33 = vld [vmem:[%s16378_s1 + $0x520] sm:$0xff]  ;;  %v14129_v47 = vpack.c.bf16 %v12023_v15, %v12022_v6  ;;  %v12061_v6 = vld [vmem:[%s16378_s1 + $0x5c8] sm:$0xff] }
0x3376   :  { %v8540_v54 = vmul.f32 %v8536_v50, %v8512_v35  ;;  %v8538_v60 = vmul.f32 %v8536_v50, %v15835_v20  ;;  %v14133_v35 = vpack.c.bf16 %v12025_v34, %v12024_v33  ;;  %v12028_v50 = vld [vmem:[%s16378_s1 + $0x5a0] sm:$0xff] }
0x3377   :  { %v8543_v58 = vsub.f32 %v8535_v51, %v8541_v53  ;;  %v12029_v51 = vld [vmem:[%s16378_s1 + $0x5a8] sm:$0xff]  ;;  %v12030_v53 = vld [vmem:[%s16378_s1 + $0x5b0] sm:$0xff] }
0x3378   :  { %v8542_v61 = vsub.f32 %v8534_v52, %v8540_v54  ;;  %v14141_v52 = vpack.c.bf16 %v12029_v51, %v12028_v50  ;;  %v12031_v54 = vld [vmem:[%s16378_s1 + $0x5b8] sm:$0xff]  ;;  %v12056_v51 = vld [vmem:[%s16378_s1 + $0x540] sm:$0xff] }
0x3379   :  { %v15891_v1 = vadd.f32 %v8543_v58, %v8539_v48  ;;  %v14145_v58 = vpack.c.bf16 %v12031_v54, %v12030_v53 }
0x337a   :  { %v15889_v0 = vadd.f32 %v8542_v61, %v8538_v60 }
0x337c   :  { %13465 = vmatprep.mubr.msk.f32.mxu0 %vm207_vm1, %v15889_v0 }
0x337d   :  { %13466 = vmatmul.mubr.msk.f32.vlgmr.msra.gmra.mrb[90].mxu0 %vm207_vm1, %v15891_v1 }
0x337e   :  { %14120 = vmatpush3.bf16.msra.mxu0 %v14117_v18  ;;  %13487 = vmatprep.mubr.msk.f32.mxu0 %vm207_vm1, %v14919_v59 }
0x337f   :  { %14122 = vmatprep.subr.bf16.mxu0 %v14121_v2 }
0x3382   :  { %14124 = vmatpush3.bf16.msra.mxu0 %v14121_v2  ;;  %v12032_v2 = vld [vmem:[%s16379_s5 + $0x19] ss:$0 sm:$0xff] }
0x3383   :  { %13495 = vmatprep.subr.mxu0 %v14457_v9 }
0x3385   :  { %13488 = vmatmul.mubr.msk.f32.vlgmr.msra.gmra.mrb[92].mxu0 %vm207_vm1, %v14925_v62 }
0x3386   :  { %13497 = vmatprep.mubr.msk.f32.mxu0 %vm14458_vm3, %v14457_v9 }
0x338b   :  { %13496 = vmatpush3.xpose.msk.msra.mxu0 %vm499_vm4, %v15845_v21 }
0x338c   :  { %13505 = vmatprep.subr.mxu0 %v14457_v9 }
0x3450   :  { %v13467_v13 = vpop.f32.mrb[90].mxu0 }
0x3451   :  { %v8644_v14 = vadd.f32 %v13467_v13, %v12004_v12  ;;  %v8638_v10 = vpop.f32.mrb[91].mxu0 }
0x3452   :  { %v8639_v11 = vadd.f32 %v12004_v12, %v8638_v10 }
0x3453   :  { %13498 = vmatmul.mubr.msk.f32.vlgmr.msra.gmra.mrb[94].mxu0 %vm499_vm4, %v8644_v14 }
0x3454   :  { %13493 = vmatmul.mubr.msk.f32.vlgmr.msra.gmra.mrb[96].mxu1 %vm499_vm4, %v8639_v11  ;;  %13507 = vmatprep.mubr.msk.f32.mxu0 %vm14458_vm3, %v14457_v9 }
0x3455   :  { %13502 = vmatprep.mubr.msk.f32.mxu1 %vm14458_vm3, %v14457_v9 }
0x3458   :  { %v13489_v16 = vpop.f32.mrb[92].mxu0 }
0x3459   :  { %v8788_v17 = vpop.f32.mrb[93].mxu0  ;;  %13506 = vmatpush3.msra.mxu0 %v13489_v16 }
0x345a   :  { %13501 = vmatpush3.msra.mxu1 %v8788_v17  ;;  %14134 = vmatprep.subr.bf16.mxu0 %v14133_v35 }
0x345b   :  { %14126 = vmatprep.subr.bf16.mxu1 %v14125_v39 }
0x3526   :  { %v8945_v25 = vpop.f32.mrb[94].mxu0 }
0x3527   :  { %v8946_v22 = vadd.f32 %v15629_v36, %v8945_v25  ;;  %v8869_v63 = vpop.f32.mrb[96].mxu1  ;;  %v13499_v26 = vpop.f32.mrb[95].mxu0 }
0x3528   :  { %v8870_v21 = vadd.f32 %v15622_v42, %v8869_v63  ;;  %v13494_v27 = vpop.f32.mrb[97].mxu1 }
0x3529   :  { %v8952_v23 = vsel %vm499_vm4, %v8946_v22, -inf }
0x352a   :  { %8953 = vmax.xlane.f32.xlu0 %v8952_v23  ;;  %v8949_v24 = vsel %vm499_vm4, %v8870_v21, -inf }
0x352b   :  { %8950 = vmax.xlane.f32.xlu1 %v8949_v24 }
0x35b7   :  { %v8954_v28 = vpop.xlane.xlu0 %8953 }
0x35b8   :  { %v8956_v57 = vsub.f32 %v8946_v22, %v8954_v28  ;;  %v8951_v29 = vpop.xlane.xlu1 %8950 }
0x35b9   :  { %v8955_v19 = vsub.f32 %v8870_v21, %v8951_v29 }
0x35ba   :  { %v8959_v30 = vmul.f32 1.442695, %v8956_v57 }
0x35bb   :  { %v8957_v3 = vmul.f32 1.442695, %v8955_v19 }
0x35bc   :  { %14403 = vpow2.f32 %v8959_v30 }
0x35bd   :  { %14405 = vpow2.f32 %v8957_v3 }
0x35c6   :  { %v14404_v31 = vpop.eup %14403 }
0x35c7   :  { %v14406_v41 = vpop.eup %14405  ;;  %v8964_v18 = vsel %vm499_vm4, %v14404_v31, 0.0 }
0x35c8   :  { %8965 = vadd.xlane.f32.xlu0 %v8964_v18  ;;  %v8961_v32 = vsel %vm499_vm4, %v14406_v41, 0.0 }
0x35c9   :  { %8962 = vadd.xlane.f32.xlu1 %v8961_v32  ;;  %v12053_v32 = vld [vmem:[%s16378_s1 + $0x4c8] sm:$0xff] }
0x3655   :  { %v8966_v40 = vpop.xlane.xlu0 %8965 }
0x3656   :  { %14407 = vrcp.f32 %v8966_v40  ;;  %v8963_v43 = vpop.xlane.xlu1 %8962  ;;  %v12055_v40 = vld [vmem:[%s16378_s1 + $0x4d8] sm:$0xff] }
0x3657   :  { %14409 = vrcp.f32 %v8963_v43 }
0x3660   :  { %v14408_v7 = vpop.eup %14407 }
0x3661   :  { %v14410_v56 = vpop.eup %14409  ;;  %v8970_v45 = vmul.f32 %v14408_v7, %v14404_v31  ;;  %v12060_v7 = vld [vmem:[%s16378_s1 + $0x5c0] sm:$0xff] }
0x3662   :  { %v8969_v4 = vmul.f32 %v14410_v56, %v14406_v41  ;;  %v14165_v15 = vpack.c.bf16 %v12061_v6, %v12060_v7  ;;  %v12062_v56 = vld [vmem:[%s16378_s1 + $0x5d0] sm:$0xff] }
0x3663   :  { %12016 = vst.msk [vmem:[%s16381_s7 + $0x48] sm:$0xff] %vm499_vm4, %v8970_v45  ;;  %13508 = vmatmul.mubr.msk.f32.vlgmr.msra.gmra.mrb[96].mxu0 %vm499_vm4, %v8970_v45  ;;  %v12063_v45 = vld [vmem:[%s16378_s1 + $0x5d8] sm:$0xff] }
0x3664   :  { %12015 = vst.msk [vmem:[%s16381_s7 + $0x40] sm:$0xff] %vm499_vm4, %v8969_v4  ;;  %14136 = vmatpush3.bf16.msra.mxu0 %v14133_v35  ;;  %13503 = vmatmul.mubr.msk.f32.vlgmr.msra.gmra.mrb[98].mxu1 %vm499_vm4, %v8969_v4  ;;  %v14169_v4 = vpack.c.bf16 %v12063_v45, %v12062_v56  ;;  %v12090_v56 = vld [vmem:[%s16378_s1 + $0x5e0] sm:$0xff]  ;;  %v12091_v45 = vld [vmem:[%s16378_s1 + $0x5e8] sm:$0xff] }
0x3665   :  { %14128 = vmatpush3.bf16.msra.mxu1 %v14125_v39  ;;  %13529 = vmatprep.mubr.msk.f32.mxu0 %vm207_vm1, %v14919_v59  ;;  %v12054_v39 = vld [vmem:[%s16378_s1 + $0x4d0] sm:$0xff] }
0x3666   :  { %13518 = vmatprep.mubr.msk.f32.mxu1 %vm207_vm1, %v15889_v0  ;;  %14138 = vmatprep.subr.bf16.mxu0 %v14137_v46  ;;  %v14153_v55 = vpack.c.bf16 %v12055_v40, %v12054_v39  ;;  %v12084_v40 = vld [vmem:[%s16378_s1 + $0x4f0] sm:$0xff] }
0x3667   :  { %14130 = vmatprep.subr.bf16.mxu1 %v14129_v47 }
0x3668   :  { %14140 = vmatpush3.bf16.msra.mxu0 %v14137_v46  ;;  %v12047_v46 = vld [vmem:[%s16380_s2 + $0x68] sm:$0xff] }
0x3669   :  { %14132 = vmatpush3.bf16.msra.mxu1 %v14129_v47  ;;  %13543 = vmatprep.subr.mxu0 %v14457_v9  ;;  %v12019_v47 = vld [vmem:[%s16380_s2 + $0x60] sm:$0xff] }
0x366a   :  { %14142 = vmatprep.subr.bf16.mxu1 %v14141_v52 }
0x366b   :  { %13530 = vmatmul.mubr.msk.f32.vlgmr.msra.gmra.mrb[98].mxu0 %vm207_vm1, %v14925_v62 }
0x366c   :  { %13519 = vmatmul.mubr.msk.f32.vlgmr.msra.gmra.mrb[100].mxu1 %vm207_vm1, %v15891_v1  ;;  %13545 = vmatprep.mubr.msk.f32.mxu0 %vm14458_vm3, %v14457_v9 }
0x366d   :  { %14144 = vmatpush3.bf16.msra.mxu1 %v14141_v52  ;;  %13540 = vmatprep.mubr.msk.f32.mxu1 %vm207_vm1, %v14919_v59  ;;  %v12057_v52 = vld [vmem:[%s16378_s1 + $0x548] sm:$0xff] }
0x366e   :  { %14146 = vmatprep.subr.bf16.mxu1 %v14145_v58  ;;  %v14157_v54 = vpack.c.bf16 %v12057_v52, %v12056_v51  ;;  %v12088_v52 = vld [vmem:[%s16378_s1 + $0x570] sm:$0xff] }
0x3671   :  { %14148 = vmatpush3.bf16.msra.mxu1 %v14145_v58 }
0x3672   :  { %13553 = vmatprep.subr.mxu1 %v14457_v9 }
0x3674   :  { %13541 = vmatmul.mubr.msk.f32.vlgmr.msra.gmra.mrb[102].mxu1 %vm207_vm1, %v14925_v62 }
0x3675   :  { %13555 = vmatprep.mubr.msk.f32.mxu1 %vm14458_vm3, %v14457_v9 }
0x3736   :  { %v15986_v60 = vpop.f32.mrb[96].mxu0 }
0x3737   :  { %v15988_v61 = vpop.f32.mrb[98].mxu1  ;;  %v13509_v49 = vpop.f32.mrb[97].mxu0 }
0x3738   :  { %v13504_v8 = vpop.f32.mrb[99].mxu1 }
0x3739   :  { %v12058_v8 = vld [vmem:[%s16378_s1 + $0x550] sm:$0xff] }
0x373e   :  { %v13531_v48 = vpop.f32.mrb[98].mxu0 }
0x373f   :  { %v13520_v12 = vpop.f32.mrb[100].mxu1  ;;  %v9283_v13 = vpop.f32.mrb[99].mxu0 }
0x3740   :  { %v9208_v14 = vpop.f32.mrb[101].mxu1  ;;  %13544 = vmatpush3.xpose.msk.msra.mxu0 %vm499_vm4, %v9283_v13  ;;  %v9214_v11 = vadd.f32 %v13520_v12, %v12032_v2 }
0x3741   :  { %v9209_v10 = vadd.f32 %v12032_v2, %v9208_v14  ;;  %13548 = vmatprep.subr.mxu0 %v14457_v9 }
0x3743   :  { %13546 = vmatmul.mubr.msk.f32.vlgmr.msra.gmra.mrb[100].mxu0 %vm499_vm4, %v9209_v10 }
0x3744   :  { %13549 = vmatpush3.xpose.msk.msra.mxu0 %vm499_vm4, %v13531_v48  ;;  %13550 = vmatprep.mubr.msk.f32.mxu0 %vm14458_vm3, %v14457_v9  ;;  %v12059_v48 = vld [vmem:[%s16378_s1 + $0x558] sm:$0xff] }
0x3745   :  { %13558 = vmatprep.subr.mxu0 %v14457_v9  ;;  %v14161_v2 = vpack.c.bf16 %v12059_v48, %v12058_v8 }
0x3747   :  { %v13542_v16 = vpop.f32.mrb[102].mxu1  ;;  %13551 = vmatmul.mubr.msk.f32.vlgmr.msra.gmra.mrb[102].mxu0 %vm499_vm4, %v9214_v11 }
0x3748   :  { %v9358_v17 = vpop.f32.mrb[103].mxu1  ;;  %13559 = vmatpush3.msra.mxu0 %v13542_v16  ;;  %13560 = vmatprep.mubr.msk.f32.mxu0 %vm14458_vm3, %v14457_v9 }
0x3749   :  { %13554 = vmatpush3.msra.mxu1 %v9358_v17 }
0x374a   :  { %13563 = vmatprep.subr.mxu1 %v12047_v46 }
0x3816   :  { %v9439_v25 = vpop.f32.mrb[100].mxu0 }
0x3817   :  { %v9440_v22 = vadd.f32 %v15622_v42, %v9439_v25  ;;  %v13547_v63 = vpop.f32.mrb[101].mxu0 }
0x3819   :  { %v9519_v26 = vsel %vm499_vm4, %v9440_v22, -inf }
0x381a   :  { %9520 = vmax.xlane.f32.xlu0 %v9519_v26  ;;  %v9515_v21 = vpop.f32.mrb[102].mxu0 }
0x381b   :  { %v9516_v27 = vadd.f32 %v15629_v36, %v9515_v21  ;;  %v13552_v23 = vpop.f32.mrb[103].mxu0  ;;  %v12052_v36 = vld [vmem:[%s16378_s1 + $0x4c0] sm:$0xff] }
0x381c   :  { %v14149_v33 = vpack.c.bf16 %v12053_v32, %v12052_v36 }
0x381d   :  { %v9522_v24 = vsel %vm499_vm4, %v9516_v27, -inf }
0x381e   :  { %9523 = vmax.xlane.f32.xlu1 %v9522_v24  ;;  %14150 = vmatprep.subr.bf16.mxu0 %v14149_v33 }
0x38a7   :  { %v9521_v28 = vpop.xlane.xlu0 %9520 }
0x38a8   :  { %v9525_v57 = vsub.f32 %v9440_v22, %v9521_v28  ;;  %v16101_v22 = vld [vmem:[%s16377_s0 + $0x38] sm:$0xff] }
0x38aa   :  { %v9527_v29 = vmul.f32 1.442695, %v9525_v57 }
0x38ab   :  { %v9524_v19 = vpop.xlane.xlu1 %9523 }
0x38ac   :  { %14411 = vpow2.f32 %v9527_v29  ;;  %v9526_v30 = vsub.f32 %v9516_v27, %v9524_v19  ;;  %v16107_v27 = vld [vmem:[%s16377_s0 + $0x30] sm:$0xff] }
0x38ae   :  { %v9529_v3 = vmul.f32 1.442695, %v9526_v30 }
0x38b0   :  { %14413 = vpow2.f32 %v9529_v3 }
0x38b6   :  { %v14412_v42 = vpop.eup %14411 }
0x38b7   :  { %v9531_v31 = vsel %vm499_vm4, %v14412_v42, 0.0 }
0x38b8   :  { %9532 = vadd.xlane.f32.xlu0 %v9531_v31 }
0x38ba   :  { %v14414_v41 = vpop.eup %14413 }
0x38bb   :  { %v9534_v18 = vsel %vm499_vm4, %v14414_v41, 0.0 }
0x38bc   :  { %9535 = vadd.xlane.f32.xlu1 %v9534_v18 }
0x3945   :  { %v9533_v34 = vpop.xlane.xlu0 %9532 }
0x3946   :  { %14415 = vrcp.f32 %v9533_v34  ;;  %v12083_v34 = vld [vmem:[%s16378_s1 + $0x4e8] sm:$0xff] }
0x3949   :  { %v9536_v35 = vpop.xlane.xlu1 %9535 }
0x394a   :  { %14417 = vrcp.f32 %v9536_v35 }
0x3950   :  { %v14416_v37 = vpop.eup %14415 }
0x3951   :  { %v9539_v38 = vmul.f32 %v14416_v37, %v14412_v42  ;;  %v12079_v37 = vld [vmem:[%s16380_s2 + $0x70] sm:$0xff] }
0x3953   :  { %12043 = vst.msk [vmem:[%s16381_s7 + $0x50] sm:$0xff] %vm499_vm4, %v9539_v38  ;;  %13556 = vmatmul.mubr.msk.f32.vlgmr.msra.gmra.mrb[104].mxu1 %vm499_vm4, %v9539_v38 }
0x3954   :  { %v14418_v43 = vpop.eup %14417  ;;  %13564 = vmatpush3.msra.mxu1 %v12047_v46  ;;  %v12092_v46 = vld [vmem:[%s16378_s1 + $0x5f0] sm:$0xff] }
0x3955   :  { %v9540_v44 = vmul.f32 %v14418_v43, %v14414_v41  ;;  %13568 = vmatprep.subr.mxu1 %v12019_v47  ;;  %v12085_v43 = vld [vmem:[%s16378_s1 + $0x4f8] sm:$0xff] }
0x3956   :  { %v14177_v6 = vpack.c.bf16 %v12085_v43, %v12084_v40  ;;  %v12112_v40 = vld [vmem:[%s16379_s5 + $0x8] ss:$0 sm:$0xff] }
0x3957   :  { %12044 = vst.msk [vmem:[%s16381_s7 + $0x58] sm:$0xff] %vm499_vm4, %v9540_v44  ;;  %13561 = vmatmul.mubr.msk.f32.vlgmr.msra.gmra.mrb[104].mxu0 %vm499_vm4, %v9540_v44 }
0x3958   :  { %14152 = vmatpush3.bf16.msra.mxu0 %v14149_v33  ;;  %13581 = vmatprep.mubr.msk.f32.mxu0 %vm207_vm1, %v15889_v0  ;;  %v12082_v33 = vld [vmem:[%s16378_s1 + $0x4e0] sm:$0xff] }
0x3959   :  { %14154 = vmatprep.subr.bf16.mxu0 %v14153_v55  ;;  %v14173_v35 = vpack.c.bf16 %v12083_v34, %v12082_v33  ;;  %v12109_v33 = vld [vmem:[%s16380_s2 + $0x78] sm:$0xff] }
0x395c   :  { %14156 = vmatpush3.bf16.msra.mxu0 %v14153_v55 }
0x395d   :  { %14166 = vmatprep.subr.bf16.mxu0 %v14165_v15 }
0x395f   :  { %13582 = vmatmul.mubr.msk.f32.vlgmr.msra.gmra.mrb[106].mxu0 %vm207_vm1, %v15891_v1 }
0x3960   :  { %14168 = vmatpush3.bf16.msra.mxu0 %v14165_v15  ;;  %13603 = vmatprep.mubr.msk.f32.mxu0 %vm207_vm1, %v14919_v59 }
0x3961   :  { %14170 = vmatprep.subr.bf16.mxu0 %v14169_v4 }
0x3964   :  { %14172 = vmatpush3.bf16.msra.mxu0 %v14169_v4  ;;  %v14189_v4 = vpack.c.bf16 %v12091_v45, %v12090_v56 }
0x3965   :  { %13611 = vmatprep.subr.mxu0 %v14457_v9 }
0x3967   :  { %13604 = vmatmul.mubr.msk.f32.vlgmr.msra.gmra.mrb[108].mxu0 %vm207_vm1, %v14925_v62 }
0x3968   :  { %13613 = vmatprep.mubr.msk.f32.mxu0 %vm14458_vm3, %v14457_v9 }
0x3a26   :  { %v9613_v50 = vpop.f32.mrb[104].mxu1 }
0x3a27   :  { %v13557_v53 = vpop.f32.mrb[105].mxu1  ;;  %13565 = vmatprep.mubr.msk.f32.mxu1 %vm499_vm4, %v9613_v50 }
0x3a28   :  { %v12089_v53 = vld [vmem:[%s16378_s1 + $0x578] sm:$0xff] }
0x3a29   :  { %v14185_v8 = vpack.c.bf16 %v12089_v53, %v12088_v52  ;;  %v12116_v52 = vld [vmem:[%s16382_s3 + $0xd8] sm:$0xff] }
0x3a2a   :  { %v9686_v58 = vpop.f32.mrb[104].mxu0 }
0x3a2b   :  { %v13562_v49 = vpop.f32.mrb[105].mxu0  ;;  %13566 = vmatmul.mubr.msk.f32.vlgmr.msra.gmra.mrb[106].mxu1 %vm499_vm4, %v9686_v58 }
0x3a2c   :  { %13569 = vmatpush3.msra.mxu1 %v12019_v47  ;;  %13570 = vmatprep.mubr.msk.f32.mxu1 %vm499_vm4, %v15988_v61  ;;  %v12093_v47 = vld [vmem:[%s16378_s1 + $0x5f8] sm:$0xff] }
0x3a2d   :  { %14158 = vmatprep.subr.bf16.mxu1 %v14157_v54  ;;  %v14193_v50 = vpack.c.bf16 %v12093_v47, %v12092_v46  ;;  %v12113_v46 = vld [vmem:[%s16382_s3 + $0xc0] sm:$0xff]  ;;  %v12114_v47 = vld [vmem:[%s16382_s3 + $0xc8] sm:$0xff] }
0x3a32   :  { %v13583_v12 = vpop.f32.mrb[106].mxu0 }
0x3a33   :  { %v9940_v13 = vpop.f32.mrb[107].mxu0  ;;  %13571 = vmatmul.mubr.msk.f32.vlgmr.msra.gmra.mrb[106].mxu1 %vm499_vm4, %v15986_v60  ;;  %v12064_v60 = vld [vmem:[%s16379_s5 + $0x1a] ss:$0 sm:$0xff] }
0x3a34   :  { %14160 = vmatpush3.bf16.msra.mxu1 %v14157_v54  ;;  %13592 = vmatprep.mubr.msk.f32.mxu1 %vm207_vm1, %v14919_v59  ;;  %v9946_v16 = vadd.f32 %v13583_v12, %v12064_v60  ;;  %v9941_v17 = vadd.f32 %v12064_v60, %v9940_v13 }
0x3a35   :  { %14162 = vmatprep.subr.bf16.mxu1 %v14161_v2 }
0x3a38   :  { %14164 = vmatpush3.bf16.msra.mxu1 %v14161_v2 }
0x3a39   :  { %13606 = vmatprep.subr.mxu1 %v14457_v9 }
0x3a3a   :  { %v13605_v61 = vpop.f32.mrb[108].mxu0 }
0x3a3b   :  { %13593 = vmatmul.mubr.msk.f32.vlgmr.msra.gmra.mrb[108].mxu1 %vm207_vm1, %v14925_v62  ;;  %v10090_v14 = vpop.f32.mrb[109].mxu0 }
0x3a3c   :  { %13608 = vmatprep.mubr.msk.f32.mxu1 %vm14458_vm3, %v14457_v9 }
0x3b0e   :  { %v13594_v10 = vpop.f32.mrb[108].mxu1 }
0x3b0f   :  { %v10015_v11 = vpop.f32.mrb[109].mxu1  ;;  %13612 = vmatpush3.xpose.msk.msra.mxu0 %vm499_vm4, %v13594_v10 }
0x3b10   :  { %13607 = vmatpush3.xpose.msk.msra.mxu1 %vm499_vm4, %v10015_v11  ;;  %13621 = vmatprep.subr.mxu0 %v14457_v9 }
0x3b11   :  { %13616 = vmatprep.subr.mxu1 %v14457_v9 }
0x3b12   :  { %13614 = vmatmul.mubr.msk.f32.vlgmr.msra.gmra.mrb[110].mxu0 %vm499_vm4, %v9946_v16 }
0x3b13   :  { %13609 = vmatmul.mubr.msk.f32.vlgmr.msra.gmra.mrb[110].mxu1 %vm499_vm4, %v9941_v17  ;;  %13622 = vmatpush3.msra.mxu0 %v13605_v61 }
0x3b14   :  { %13617 = vmatpush3.msra.mxu1 %v10090_v14  ;;  %13623 = vmatprep.mubr.msk.f32.mxu0 %vm14458_vm3, %v14457_v9  ;;  %v12094_v14 = vld [vmem:[%s16379_s5 + $0x1b] ss:$0 sm:$0xff] }
0x3b15   :  { %13618 = vmatprep.mubr.msk.f32.mxu1 %vm14458_vm3, %v14457_v9  ;;  %14174 = vmatprep.subr.bf16.mxu0 %v14173_v35 }
0x3b16   :  { %13626 = vmatprep.subr.mxu1 %v12079_v37 }
0x3be5   :  { %v10247_v25 = vpop.f32.mrb[110].mxu0 }
0x3be6   :  { %v10248_v63 = vadd.f32 %v16101_v22, %v10247_v25  ;;  %v10171_v26 = vpop.f32.mrb[110].mxu1  ;;  %v13615_v21 = vpop.f32.mrb[111].mxu0 }
0x3be7   :  { %v10172_v23 = vadd.f32 %v16107_v27, %v10171_v26  ;;  %v13610_v24 = vpop.f32.mrb[111].mxu1 }
0x3be8   :  { %v10254_v28 = vsel %vm499_vm4, %v10248_v63, -inf }
0x3be9   :  { %10255 = vmax.xlane.f32.xlu1 %v10254_v28  ;;  %v10251_v57 = vsel %vm499_vm4, %v10172_v23, -inf }
0x3bea   :  { %10252 = vmax.xlane.f32.xlu0 %v10251_v57 }
0x3c76   :  { %v10256_v29 = vpop.xlane.xlu1 %10255 }
0x3c77   :  { %v10258_v19 = vsub.f32 %v10248_v63, %v10256_v29  ;;  %v10253_v30 = vpop.xlane.xlu0 %10252 }
0x3c78   :  { %v10257_v3 = vsub.f32 %v10172_v23, %v10253_v30 }
0x3c79   :  { %v10261_v42 = vmul.f32 1.442695, %v10258_v19 }
0x3c7a   :  { %v10259_v31 = vmul.f32 1.442695, %v10257_v3 }
0x3c7b   :  { %14419 = vpow2.f32 %v10261_v42 }
0x3c7c   :  { %14421 = vpow2.f32 %v10259_v31 }
0x3c85   :  { %v14420_v41 = vpop.eup %14419 }
0x3c86   :  { %v14422_v18 = vpop.eup %14421  ;;  %v10266_v36 = vsel %vm499_vm4, %v14420_v41, 0.0 }
0x3c87   :  { %10267 = vadd.xlane.f32.xlu1 %v10266_v36  ;;  %v10263_v32 = vsel %vm499_vm4, %v14422_v18, 0.0 }
0x3c88   :  { %10264 = vadd.xlane.f32.xlu0 %v10263_v32 }
0x3d14   :  { %v10268_v38 = vpop.xlane.xlu1 %10267 }
0x3d15   :  { %14423 = vrcp.f32 %v10268_v38  ;;  %v10265_v39 = vpop.xlane.xlu0 %10264 }
0x3d16   :  { %14425 = vrcp.f32 %v10265_v39 }
0x3d1f   :  { %v14424_v44 = vpop.eup %14423 }
0x3d20   :  { %v14426_v55 = vpop.eup %14425  ;;  %v10272_v7 = vmul.f32 %v14424_v44, %v14420_v41 }
0x3d21   :  { %v10271_v15 = vmul.f32 %v14426_v55, %v14422_v18 }
0x3d22   :  { %12076 = vst.msk [vmem:[%s16381_s7 + $0x68] sm:$0xff] %vm499_vm4, %v10272_v7  ;;  %13624 = vmatmul.mubr.msk.f32.vlgmr.msra.gmra.mrb[112].mxu0 %vm499_vm4, %v10272_v7 }
0x3d23   :  { %12075 = vst.msk [vmem:[%s16381_s7 + $0x60] sm:$0xff] %vm499_vm4, %v10271_v15  ;;  %14176 = vmatpush3.bf16.msra.mxu0 %v14173_v35  ;;  %13619 = vmatmul.mubr.msk.f32.vlgmr.msra.gmra.mrb[112].mxu1 %vm499_vm4, %v10271_v15 }
0x3d24   :  { %13639 = vmatprep.mubr.msk.f32.mxu0 %vm207_vm1, %v15889_v0  ;;  %14178 = vmatprep.subr.bf16.mxu0 %v14177_v6  ;;  %v12086_v0 = vld [vmem:[%s16378_s1 + $0x560] sm:$0xff] }
0x3d25   :  { %13627 = vmatpush3.msra.mxu1 %v12079_v37 }
0x3d27   :  { %14180 = vmatpush3.bf16.msra.mxu0 %v14177_v6 }
0x3d28   :  { %14190 = vmatprep.subr.bf16.mxu0 %v14189_v4 }
0x3d2a   :  { %13640 = vmatmul.mubr.msk.f32.vlgmr.msra.gmra.mrb[114].mxu0 %vm207_vm1, %v15891_v1  ;;  %v12087_v1 = vld [vmem:[%s16378_s1 + $0x568] sm:$0xff] }
0x3d2b   :  { %14192 = vmatpush3.bf16.msra.mxu0 %v14189_v4  ;;  %13661 = vmatprep.mubr.msk.f32.mxu0 %vm207_vm1, %v14919_v59  ;;  %v14181_v51 = vpack.c.bf16 %v12087_v1, %v12086_v0  ;;  %v14197_v0 = vpack.c.bf16 %v12114_v47, %v12113_v46  ;;  %v12121_v1 = vld [vmem:[%s16382_s3 + $0xe8] sm:$0xff]  ;;  %v12143_v47 = vld [vmem:[%s16382_s3 + $0x170] sm:$0xff] }
0x3d2c   :  { %14194 = vmatprep.subr.bf16.mxu0 %v14193_v50 }
0x3d2d   :  { %14182 = vmatprep.subr.bf16.mxu1 %v14181_v51 }
0x3d2f   :  { %14196 = vmatpush3.bf16.msra.mxu0 %v14193_v50  ;;  %v12120_v50 = vld [vmem:[%s16382_s3 + $0xe0] sm:$0xff] }
0x3d30   :  { %13674 = vmatprep.subr.mxu0 %v14457_v9  ;;  %v14205_v53 = vpack.c.bf16 %v12121_v1, %v12120_v50  ;;  %v12144_v50 = vld [vmem:[%s16382_s3 + $0x178] sm:$0xff]  ;;  %v12117_v1 = vld [vmem:[%s16379_s5 + $0x9] ss:$0 sm:$0xff] }
0x3d32   :  { %13662 = vmatmul.mubr.msk.f32.vlgmr.msra.gmra.mrb[116].mxu0 %vm207_vm1, %v14925_v62 }
0x3d33   :  { %13676 = vmatprep.mubr.msk.f32.mxu0 %vm14458_vm3, %v14457_v9 }
0x3df5   :  { %v10418_v54 = vpop.f32.mrb[112].mxu0 }
0x3df6   :  { %v10345_v58 = vpop.f32.mrb[112].mxu1  ;;  %v13625_v49 = vpop.f32.mrb[113].mxu0 }
0x3df7   :  { %v13620_v48 = vpop.f32.mrb[113].mxu1  ;;  %13628 = vmatprep.mubr.msk.f32.mxu1 %vm499_vm4, %v10345_v58  ;;  %v12122_v58 = vld [vmem:[%s16382_s3 + $0xf0] sm:$0xff]  ;;  %v12123_v49 = vld [vmem:[%s16382_s3 + $0xf8] sm:$0xff] }
0x3df8   :  { %13629 = vmatmul.mubr.msk.f32.vlgmr.msra.gmra.mrb[106].mxu1 %vm499_vm4, %v10418_v54 }
0x3df9   :  { %14184 = vmatpush3.bf16.msra.mxu1 %v14181_v51  ;;  %13650 = vmatprep.mubr.msk.f32.mxu1 %vm207_vm1, %v14919_v59  ;;  %v12115_v51 = vld [vmem:[%s16382_s3 + $0xd0] sm:$0xff] }
0x3dfa   :  { %14186 = vmatprep.subr.bf16.mxu1 %v14185_v8  ;;  %v14201_v54 = vpack.c.bf16 %v12116_v52, %v12115_v51 }
0x3dfd   :  { %v13641_v2 = vpop.f32.mrb[114].mxu0  ;;  %14188 = vmatpush3.bf16.msra.mxu1 %v14185_v8  ;;  %v14209_v8 = vpack.c.bf16 %v12123_v49, %v12122_v58 }
0x3dfe   :  { %v10593_v12 = vpop.f32.mrb[115].mxu0  ;;  %13664 = vmatprep.subr.mxu1 %v14457_v9 }
0x3dff   :  { %v10594_v10 = vadd.f32 %v12094_v14, %v10593_v12 }
0x3e00   :  { %13651 = vmatmul.mubr.msk.f32.vlgmr.msra.gmra.mrb[114].mxu1 %vm207_vm1, %v14925_v62  ;;  %v10599_v62 = vadd.f32 %v13641_v2, %v12094_v14 }
0x3e01   :  { %13666 = vmatprep.mubr.msk.f32.mxu1 %vm14458_vm3, %v14457_v9 }
0x3e05   :  { %v13663_v13 = vpop.f32.mrb[116].mxu0 }
0x3e06   :  { %v10743_v61 = vpop.f32.mrb[117].mxu0 }
0x3e07   :  { %13675 = vmatpush3.msra.mxu0 %v10743_v61 }
0x3e08   :  { %14198 = vmatprep.subr.bf16.mxu0 %v14197_v0 }
0x3ed3   :  { %v13652_v59 = vpop.f32.mrb[114].mxu1 }
0x3ed4   :  { %v10668_v60 = vpop.f32.mrb[115].mxu1 }
0x3ed5   :  { %13665 = vmatpush3.xpose.msk.msra.mxu1 %vm499_vm4, %v10668_v60 }
0x3ed6   :  { %13669 = vmatprep.subr.mxu1 %v14457_v9 }
0x3ed8   :  { %13667 = vmatmul.mubr.msk.f32.vlgmr.msra.gmra.mrb[116].mxu1 %vm499_vm4, %v10594_v10 }
0x3ed9   :  { %13670 = vmatpush3.xpose.msk.msra.mxu1 %vm499_vm4, %v13652_v59  ;;  %13671 = vmatprep.mubr.msk.f32.mxu1 %vm14458_vm3, %v14457_v9 }
0x3eda   :  { %13679 = vmatprep.subr.mxu1 %v14457_v9 }
0x3edc   :  { %13672 = vmatmul.mubr.msk.f32.vlgmr.msra.gmra.mrb[118].mxu1 %vm499_vm4, %v10599_v62 }
0x3edd   :  { %13680 = vmatpush3.msra.mxu1 %v13663_v13  ;;  %13681 = vmatprep.mubr.msk.f32.mxu1 %vm14458_vm3, %v14457_v9 }
0x3ede   :  { %13684 = vmatprep.subr.mxu1 %v12109_v33 }
0x3fab   :  { %v10824_v11 = vpop.f32.mrb[116].mxu1 }
0x3fac   :  { %v10825_v16 = vadd.f32 %v16107_v27, %v10824_v11  ;;  %v13668_v17 = vpop.f32.mrb[117].mxu1 }
0x3fae   :  { %v10904_v25 = vsel %vm499_vm4, %v10825_v16, -inf }
0x3faf   :  { %10905 = vmax.xlane.f32.xlu0 %v10904_v25  ;;  %v10900_v63 = vpop.f32.mrb[118].mxu1 }
0x3fb0   :  { %v10901_v26 = vadd.f32 %v16101_v22, %v10900_v63  ;;  %v13673_v21 = vpop.f32.mrb[119].mxu1  ;;  %v11196_v63 = vld [vmem:[%s16377_s0 + $0x98] sm:$0xff] }
0x3fb2   :  { %v10907_v23 = vsel %vm499_vm4, %v10901_v26, -inf }
0x3fb3   :  { %10908 = vmax.xlane.f32.xlu1 %v10907_v23 }
0x403c   :  { %v10906_v24 = vpop.xlane.xlu0 %10905 }
0x403d   :  { %v10910_v28 = vsub.f32 %v10825_v16, %v10906_v24 }
0x403f   :  { %v10912_v57 = vmul.f32 1.442695, %v10910_v28 }
0x4040   :  { %v10909_v29 = vpop.xlane.xlu1 %10908 }
0x4041   :  { %14427 = vpow2.f32 %v10912_v57  ;;  %v10911_v9 = vsub.f32 %v10901_v26, %v10909_v29  ;;  %v11195_v26 = vld [vmem:[%s16377_s0 + $0x90] sm:$0xff]  ;;  %v11198_v57 = vld [vmem:[%s16377_s0 + $0x108] sm:$0xff]  ;;  %v11197_v29 = vld [vmem:[%s16377_s0 + $0x100] sm:$0xff] }
0x4043   :  { %v10914_v19 = vmul.f32 1.442695, %v10911_v9 }
0x4045   :  { %14429 = vpow2.f32 %v10914_v19 }
0x404b   :  { %v14428_v27 = vpop.eup %14427 }
0x404c   :  { %v10916_v30 = vsel %vm499_vm4, %v14428_v27, 0.0 }
0x404d   :  { %10917 = vadd.xlane.f32.xlu0 %v10916_v30 }
0x404f   :  { %v14430_v3 = vpop.eup %14429 }
0x4050   :  { %v10919_v42 = vsel %vm499_vm4, %v14430_v3, 0.0 }
0x4051   :  { %10920 = vadd.xlane.f32.xlu1 %v10919_v42 }
0x40da   :  { %v10918_v22 = vpop.xlane.xlu0 %10917 }
0x40db   :  { %14431 = vrcp.f32 %v10918_v22 }
0x40de   :  { %v10921_v31 = vpop.xlane.xlu1 %10920 }
0x40df   :  { %14433 = vrcp.f32 %v10921_v31 }
0x40e5   :  { %v14432_v41 = vpop.eup %14431 }
0x40e6   :  { %v10924_v18 = vmul.f32 %v14432_v41, %v14428_v27  ;;  %v12129_v41 = vld [vmem:[%s16382_s3 + $0x100] sm:$0xff] }
0x40e8   :  { %12105 = vst.msk [vmem:[%s16381_s7 + $0x70] sm:$0xff] %vm499_vm4, %v10924_v18  ;;  %13677 = vmatmul.mubr.msk.f32.vlgmr.msra.gmra.mrb[118].mxu0 %vm499_vm4, %v10924_v18  ;;  %v12130_v18 = vld [vmem:[%s16382_s3 + $0x108] sm:$0xff] }
0x40e9   :  { %v14434_v36 = vpop.eup %14433  ;;  %14200 = vmatpush3.bf16.msra.mxu0 %v14197_v0  ;;  %v14241_v0 = vpack.c.bf16 %v12144_v50, %v12143_v47  ;;  %v11527_v47 = vld [vmem:[%s16377_s0 + $0x118] sm:$0xff] }
0x40ea   :  { %v10925_v32 = vmul.f32 %v14434_v36, %v14430_v3  ;;  %14202 = vmatprep.subr.bf16.mxu0 %v14201_v54  ;;  %v14213_v36 = vpack.c.bf16 %v12130_v18, %v12129_v41 }
0x40ec   :  { %12106 = vst.msk [vmem:[%s16381_s7 + $0x78] sm:$0xff] %vm499_vm4, %v10925_v32  ;;  %13682 = vmatmul.mubr.msk.f32.vlgmr.msra.gmra.mrb[120].mxu1 %vm499_vm4, %v10925_v32  ;;  %v12131_v32 = vld [vmem:[%s16382_s3 + $0x110] sm:$0xff] }
0x40ed   :  { %13685 = vmatpush3.msra.mxu1 %v12109_v33  ;;  %14204 = vmatpush3.bf16.msra.mxu0 %v14201_v54  ;;  %v12132_v33 = vld [vmem:[%s16382_s3 + $0x118] sm:$0xff] }
0x40ee   :  { %14206 = vmatprep.subr.bf16.mxu1 %v14205_v53  ;;  %14214 = vmatprep.subr.bf16.mxu0 %v14213_v36 }
0x41bb   :  { %v10998_v34 = vpop.f32.mrb[118].mxu0 }
0x41bc   :  { %v13678_v35 = vpop.f32.mrb[119].mxu0  ;;  %13686 = vmatprep.mubr.msk.f32.mxu1 %vm499_vm4, %v10998_v34  ;;  %v14217_v34 = vpack.c.bf16 %v12132_v33, %v12131_v32 }
0x41bd   :  { %v12133_v35 = vld [vmem:[%s16382_s3 + $0x120] sm:$0xff] }
0x41bf   :  { %v11071_v37 = vpop.f32.mrb[120].mxu1 }
0x41c0   :  { %v13683_v38 = vpop.f32.mrb[121].mxu1  ;;  %13687 = vmatmul.mubr.msk.f32.vlgmr.msra.gmra.mrb[106].mxu1 %vm499_vm4, %v11071_v37  ;;  %v12134_v37 = vld [vmem:[%s16382_s3 + $0x128] sm:$0xff] }
0x41c1   :  { %14208 = vmatpush3.bf16.msra.mxu1 %v14205_v53  ;;  %v14221_v38 = vpack.c.bf16 %v12134_v37, %v12133_v35 }
0x41c2   :  { %14210 = vmatprep.subr.bf16.mxu1 %v14209_v8 }
0x41c5   :  { %14212 = vmatpush3.bf16.msra.mxu1 %v14209_v8 }
0x4293   :  { %v13688_v39 = vpop.f32.mrb[106].mxu1 }
0x4294   :  { %v11161_v43 = vadd.f32 %v13688_v39, %v15833_v5  ;;  %v11149_v44 = vpop.f32.mrb[107].mxu1  ;;  %v12135_v39 = vld [vmem:[%s16382_s3 + $0x130] sm:$0xff] }
0x4295   :  { %v11160_v55 = vadd.f32 %v11149_v44, %v15835_v20  ;;  %v12137_v44 = vld [vmem:[%s16382_s3 + $0x140] sm:$0xff] }
0x4296   :  { %v16222_v7 = vadd.f32 %v12112_v40, %v11161_v43 }
0x4297   :  { %v16224_v6 = vadd.f32 %v12112_v40, %v11160_v55  ;;  %v12136_v40 = vld [vmem:[%s16382_s3 + $0x138] sm:$0xff]  ;;  %v12138_v55 = vld [vmem:[%s16382_s3 + $0x148] sm:$0xff] }
0x4298   :  { %v11172_v15 = vsel %vm207_vm1, %v16222_v7, 0.0  ;;  %v11178_v56 = vmul.f32 %v16222_v7, %v16222_v7  ;;  %v14225_v43 = vpack.c.bf16 %v12136_v40, %v12135_v39 }
0x4299   :  { %11173 = vadd.xlane.f32.xlu1 %v11172_v15  ;;  %v11169_v45 = vsel %vm207_vm1, %v16224_v6, 0.0  ;;  %v11177_v5 = vmul.f32 %v16224_v6, %v16224_v6  ;;  %v14229_v15 = vpack.c.bf16 %v12138_v55, %v12137_v44 }
0x429a   :  { %11170 = vadd.xlane.f32.xlu0 %v11169_v45  ;;  %v11182_v20 = vsel %vm207_vm1, %v11178_v56, 0.0  ;;  %v12139_v56 = vld [vmem:[%s16382_s3 + $0x150] sm:$0xff]  ;;  %v12140_v45 = vld [vmem:[%s16382_s3 + $0x158] sm:$0xff] }
0x429b   :  { %v11179_v4 = vsel %vm207_vm1, %v11177_v5, 0.0  ;;  %v14233_v5 = vpack.c.bf16 %v12140_v45, %v12139_v56  ;;  %v11525_v56 = vld [vmem:[%s16377_s0 + $0xa8] sm:$0xff]  ;;  %v11524_v45 = vld [vmem:[%s16377_s0 + $0xa0] sm:$0xff] }
0x429d   :  { %11183 = vadd.xlane.f32.xlu1 %v11182_v20  ;;  %v12141_v20 = vld [vmem:[%s16382_s3 + $0x160] sm:$0xff] }
0x429e   :  { %11180 = vadd.xlane.f32.xlu0 %v11179_v4  ;;  %v12142_v4 = vld [vmem:[%s16382_s3 + $0x168] sm:$0xff] }
0x429f   :  { %v14237_v46 = vpack.c.bf16 %v12142_v4, %v12141_v20 }
0x4326   :  { %v11174_v48 = vpop.xlane.xlu1 %11173 }
0x4327   :  { %v11176_v2 = vmul.f32 0.03125, %v11174_v48  ;;  %v11171_v12 = vpop.xlane.xlu0 %11170 }
0x4328   :  { %v11175_v13 = vmul.f32 0.03125, %v11171_v12 }
0x4329   :  { %v11188_v14 = vmul.f32 %v11176_v2, %v11176_v2 }
0x432a   :  { %v11184_v61 = vpop.xlane.xlu1 %11183  ;;  %v11187_v10 = vmul.f32 %v11175_v13, %v11175_v13 }
0x432b   :  { %v11186_v59 = vmul.f32 0.03125, %v11184_v61  ;;  %v11181_v60 = vpop.xlane.xlu0 %11180 }
0x432c   :  { %v11185_v62 = vmul.f32 0.03125, %v11181_v60 }
0x432d   :  { %v11190_v11 = vsub.f32 %v11186_v59, %v11188_v14  ;;  %v12124_v14 = vld [vmem:[%s16379_s5 + $0xa] ss:$0 sm:$0xff] }
0x432e   :  { %v11189_v16 = vsub.f32 %v11185_v62, %v11187_v10 }
0x432f   :  { %v11192_v17 = vadd.f32 1e-05, %v11190_v11 }
0x4330   :  { %v11191_v25 = vadd.f32 1e-05, %v11189_v16 }
0x4331   :  { %14435 = vrsqrt.f32 %v11192_v17 }
0x4332   :  { %14437 = vrsqrt.f32 %v11191_v25 }
0x433b   :  { %v14436_v21 = vpop.eup %14435 }
0x433c   :  { %v14438_v23 = vpop.eup %14437  ;;  %v11200_v24 = vmul.f32 %v14436_v21, %v11196_v63  ;;  %v12145_v63 = vld [vmem:[%s16379_s5 + $0xb] ss:$0 sm:$0xff] }
0x433d   :  { %v11199_v28 = vmul.f32 %v14438_v23, %v11195_v26 }
0x433e   :  { %v11204_v9 = vmul.f32 %v11200_v24, %v11176_v2  ;;  %v11202_v42 = vmul.f32 %v11200_v24, %v16222_v7 }
0x433f   :  { %v11203_v19 = vmul.f32 %v11199_v28, %v11175_v13  ;;  %v11201_v30 = vmul.f32 %v11199_v28, %v16224_v6 }
0x4340   :  { %v11206_v27 = vsub.f32 %v11198_v57, %v11204_v9 }
0x4341   :  { %v11205_v3 = vsub.f32 %v11197_v29, %v11203_v19 }
0x4342   :  { %v11208_v31 = vadd.f32 %v11206_v27, %v11202_v42 }
0x4343   :  { %v11207_v22 = vadd.f32 %v11205_v3, %v11201_v30 }
0x4345   :  { %13697 = vmatprep.mubr.msk.f32.mxu0 %vm207_vm1, %v11207_v22  ;;  %13708 = vmatprep.mubr.msk.f32.mxu1 %vm207_vm1, %v11207_v22  ;;  %v11540_v22 = vld [vmem:[%s16376_s4 + $0x38] sm:$0xff] }
0x4346   :  { %13698 = vmatmul.mubr.msk.f32.vlgmr.msra.gmra.mrb[120].mxu0 %vm207_vm1, %v11208_v31  ;;  %13709 = vmatmul.mubr.msk.f32.vlgmr.msra.gmra.mrb[122].mxu1 %vm207_vm1, %v11208_v31  ;;  %v11541_v31 = vld [vmem:[%s16376_s4 + $0x40] sm:$0xff] }
0x4347   :  { %14216 = vmatpush3.bf16.msra.mxu0 %v14213_v36  ;;  %v14249_v41 = vpack.c.bf16 %v11541_v31, %v11540_v22 }
0x4348   :  { %14218 = vmatprep.subr.bf16.mxu0 %v14217_v34 }
0x434b   :  { %14220 = vmatpush3.bf16.msra.mxu0 %v14217_v34 }
0x434c   :  { %14222 = vmatprep.subr.bf16.mxu0 %v14221_v38 }
0x434f   :  { %14224 = vmatpush3.bf16.msra.mxu0 %v14221_v38 }
0x4350   :  { %14226 = vmatprep.subr.bf16.mxu0 %v14225_v43 }
0x4353   :  { %14228 = vmatpush3.bf16.msra.mxu0 %v14225_v43 }
0x4354   :  { %14230 = vmatprep.subr.bf16.mxu0 %v14229_v15 }
0x4357   :  { %14232 = vmatpush3.bf16.msra.mxu0 %v14229_v15 }
0x4358   :  { %14234 = vmatprep.subr.bf16.mxu0 %v14233_v5 }
0x435b   :  { %14236 = vmatpush3.bf16.msra.mxu0 %v14233_v5 }
0x435c   :  { %14238 = vmatprep.subr.bf16.mxu0 %v14237_v46 }
0x435f   :  { %14240 = vmatpush3.bf16.msra.mxu0 %v14237_v46 }
0x4360   :  { %14242 = vmatprep.subr.bf16.mxu0 %v14241_v0 }
0x4363   :  { %14244 = vmatpush3.bf16.msra.mxu0 %v14241_v0  ;;  %v11526_v0 = vld [vmem:[%s16377_s0 + $0x110] sm:$0xff] }
0x4419   :  { %v13699_v51 = vpop.f32.mrb[120].mxu0  ;;  %v13710_v52 = vpop.f32.mrb[122].mxu1 }
0x441a   :  { %v11297_v53 = vadd.f32 %v13699_v51, %v12117_v1  ;;  %v11291_v54 = vpop.f32.mrb[121].mxu0  ;;  %v11375_v58 = vpop.f32.mrb[123].mxu1  ;;  %v11381_v62 = vadd.f32 %v13710_v52, %v12124_v14 }
0x441b   :  { %v11292_v49 = vadd.f32 %v12117_v1, %v11291_v54  ;;  %v11376_v16 = vadd.f32 %v12124_v14, %v11375_v58 }
0x441c   :  { %v12128_v8 = vmul.f32 -1.442695, %v11297_v53 }
0x441d   :  { %v12127_v48 = vmul.f32 -1.442695, %v11292_v49 }
0x441e   :  { %14439 = vpow2.f32 %v12128_v8  ;;  %v12146_v8 = vld [vmem:[%s16379_s5] ss:$0 sm:$0xff] }
0x441f   :  { %14441 = vpow2.f32 %v12127_v48 }
0x4428   :  { %v14440_v2 = vpop.eup %14439 }
0x4429   :  { %v14442_v12 = vpop.eup %14441  ;;  %v11391_v13 = vadd.f32 1.0, %v14440_v2 }
0x442a   :  { %v11390_v61 = vadd.f32 1.0, %v14442_v12 }
0x442b   :  { %14443 = vrcp.f32 %v11391_v13 }
0x442c   :  { %14445 = vrcp.f32 %v11390_v61 }
0x4435   :  { %v14444_v59 = vpop.eup %14443 }
0x4436   :  { %v14446_v60 = vpop.eup %14445  ;;  %v11397_v10 = vmul.f32 %v14444_v59, %v11297_v53 }
0x4437   :  { %v11396_v11 = vmul.f32 %v14446_v60, %v11292_v49 }
0x4438   :  { %v11399_v17 = vmul.f32 %v11397_v10, %v11381_v62 }
0x4439   :  { %v11398_v25 = vmul.f32 %v11396_v11, %v11376_v16 }
0x443b   :  { %13743 = vmatprep.mubr.f32.mxu0 %v11398_v25 }
0x443c   :  { %13744 = vmatmul.mubr.f32.vlgmr.msra.gmra.mrb[122].mxu0 %v11399_v17 }
0x450f   :  { %v13745_v26 = vpop.f32.mrb[122].mxu0 }
0x4510   :  { %v11493_v21 = vadd.f32 %v13745_v26, %v12145_v63  ;;  %v11487_v23 = vpop.f32.mrb[123].mxu0 }
0x4511   :  { %v11488_v24 = vadd.f32 %v12145_v63, %v11487_v23 }
0x4512   :  { %v11497_v28 = vadd.f32 %v11493_v21, %v16222_v7  ;;  %v11538_v7 = vld [vmem:[%s16376_s4 + $0x28] sm:$0xff] }
0x4513   :  { %v11496_v57 = vadd.f32 %v11488_v24, %v16224_v6  ;;  %v11539_v6 = vld [vmem:[%s16376_s4 + $0x30] sm:$0xff] }
0x4514   :  { %v11501_v29 = vsel %vm207_vm1, %v11497_v28, 0.0  ;;  %v11507_v9 = vmul.f32 %v11497_v28, %v11497_v28  ;;  %v14245_v42 = vpack.c.bf16 %v11539_v6, %v11538_v7 }
0x4515   :  { %11502 = vadd.xlane.f32.xlu1 %v11501_v29  ;;  %v11498_v19 = vsel %vm207_vm1, %v11496_v57, 0.0  ;;  %v11506_v27 = vmul.f32 %v11496_v57, %v11496_v57 }
0x4516   :  { %11499 = vadd.xlane.f32.xlu0 %v11498_v19  ;;  %v11511_v30 = vsel %vm207_vm1, %v11507_v9, 0.0  ;;  %14246 = vmatprep.subr.bf16.mxu1 %v14245_v42 }
0x4517   :  { %v11508_v3 = vsel %vm207_vm1, %v11506_v27, 0.0  ;;  %14248 = vmatpush3.bf16.msra.mxu1 %v14245_v42 }
0x4518   :  { %14250 = vmatprep.subr.bf16.mxu1 %v14249_v41 }
0x4519   :  { %11512 = vadd.xlane.f32.xlu1 %v11511_v30 }
0x451a   :  { %11509 = vadd.xlane.f32.xlu0 %v11508_v3 }
0x451b   :  { %14252 = vmatpush3.bf16.msra.mxu1 %v14249_v41 }
0x45a2   :  { %v11503_v18 = vpop.xlane.xlu1 %11502 }
0x45a3   :  { %v11505_v36 = vmul.f32 0.03125, %v11503_v18  ;;  %v11500_v32 = vpop.xlane.xlu0 %11499 }
0x45a4   :  { %v11504_v33 = vmul.f32 0.03125, %v11500_v32 }
0x45a5   :  { %v11517_v35 = vmul.f32 %v11505_v36, %v11505_v36 }
0x45a6   :  { %v11513_v34 = vpop.xlane.xlu1 %11512  ;;  %v11516_v39 = vmul.f32 %v11504_v33, %v11504_v33 }
0x45a7   :  { %v11515_v37 = vmul.f32 0.03125, %v11513_v34  ;;  %v11510_v38 = vpop.xlane.xlu0 %11509 }
0x45a8   :  { %v11514_v40 = vmul.f32 0.03125, %v11510_v38 }
0x45a9   :  { %v11519_v43 = vsub.f32 %v11515_v37, %v11517_v35 }
0x45aa   :  { %v11518_v44 = vsub.f32 %v11514_v40, %v11516_v39 }
0x45ab   :  { %v11521_v55 = vadd.f32 1e-05, %v11519_v43 }
0x45ac   :  { %v11520_v15 = vadd.f32 1e-05, %v11518_v44 }
0x45ad   :  { %14447 = vrsqrt.f32 %v11521_v55 }
0x45ae   :  { %14449 = vrsqrt.f32 %v11520_v15 }
0x45b7   :  { %v14448_v5 = vpop.eup %14447 }
0x45b8   :  { %v14450_v20 = vpop.eup %14449  ;;  %v11529_v4 = vmul.f32 %v14448_v5, %v11525_v56 }
0x45b9   :  { %v11528_v46 = vmul.f32 %v14450_v20, %v11524_v45 }
0x45ba   :  { %v11533_v50 = vmul.f32 %v11529_v4, %v11505_v36  ;;  %v11531_v54 = vmul.f32 %v11529_v4, %v11497_v28 }
0x45bb   :  { %v11532_v1 = vmul.f32 %v11528_v46, %v11504_v33  ;;  %v11530_v52 = vmul.f32 %v11528_v46, %v11496_v57 }
0x45bc   :  { %v11535_v51 = vsub.f32 %v11527_v47, %v11533_v50 }
0x45bd   :  { %v11534_v53 = vsub.f32 %v11526_v0, %v11532_v1 }
0x45be   :  { %v11537_v49 = vadd.f32 %v11535_v51, %v11531_v54 }
0x45bf   :  { %v11536_v58 = vadd.f32 %v11534_v53, %v11530_v52 }
0x45c1   :  { %13754 = vmatprep.mubr.msk.f32.mxu1 %vm207_vm1, %v11536_v58 }
0x45c2   :  { %13755 = vmatmul.mubr.msk.f32.vlgmr.msra.gmra.mrb[124].mxu1 %vm207_vm1, %v11537_v49 }
0x4695   :  { %v13756_v48 = vpop.f32.mrb[124].mxu1 }
0x4696   :  { %v11625_v2 = vadd.f32 %v13756_v48, %v12146_v8  ;;  %v11619_v12 = vpop.f32.mrb[125].mxu1 }
0x4697   :  { %v11620_v13 = vadd.f32 %v12146_v8, %v11619_v12 }
0x4698   :  { %11629 = vst [vmem:[%s16383_s6 + $0x8] sm:$0xff] %v11625_v2 }
0x4699   :  { %11628 = vst [vmem:[%s16383_s6] sm:$0xff] %v11620_v13 }

</bundles_post_ra>
